<compile_context>
chip_gen: v7x
topology: tpu7x:2x2x1
jax: 0.10.0
libtpu: 0.0.40
codegen_flags: <defaults>
</compile_context>

<pallas_src>
import functools

import jax
import jax.numpy as jnp
from jax import lax
from jax.experimental import pallas as pl
from jax.experimental.pallas import tpu as pltpu

EPS = 1e-5


def _round_up(x, m):
    return (x + m - 1) // m * m


def _vmem_limit_bytes():
    # ~75% of physical VMEM: ~48 MiB on v7x (64 MiB), ~96 MiB on v5e/v6e (128 MiB).
    try:
        cap = int(getattr(pltpu.get_tpu_info(), "vmem_capacity_bytes",
                          64 * 1024 * 1024))
    except Exception:
        cap = 64 * 1024 * 1024
    return max(32 * 1024 * 1024, min(cap * 3 // 4, 100 * 1024 * 1024))


def _pick_h_tile(h, w, cout_pad, budget_bytes=2 * 1024 * 1024):
    """Output rows per pass-1 step.

    Keeps the f32 conv accumulator / output block <= ~budget so pass 1 fits
    v7x's 64 MiB VMEM at realistic H*W, while giving more grid steps for
    pipelining and the 2-TensorCore split.  h_tile must divide H; if
    h_tile < H then h_tile*W must be a multiple of 8 (sublane-aligned blocks).
    """
    if h * w * cout_pad * 4 <= budget_bytes:
        return h
    best = h
    for ht in range(h, 0, -1):
        if h % ht:
            continue
        if ht < h and (ht * w) % 8:
            continue
        best = ht
        if ht * w * cout_pad * 4 <= budget_bytes:
            return ht
    return best


def _pick_tile_m(m):
    # Large lane-dense pass-2 tiles (0.5-2 MB) get close to the HBM roofline.
    for t in (4096, 2048, 1024, 512, 256, 128, 64, 32, 16, 8):
        if m % t == 0:
            return t
    return m


# ---------------------------------------------------------------------------
# Pass 1: 3x3 conv as ONE K=9*cin_pad MXU matmul from an in-VMEM im2col slab,
#         plus per-block partial channel sum / sum-of-squares.
# ---------------------------------------------------------------------------
def _conv_stats_kernel(x_ref, w_ref, y_ref, sum_ref, ssq_ref, col_ref, *,
                       h_tile, w, k, cin_pad):
    # x_ref:   (1, H+2, W+2, cin_pad)  bf16   whole padded image (revisited
    #                                          across row tiles of the image)
    # w_ref:   (k*k*cin_pad, cout_pad) bf16   resident (constant index map)
    # y_ref:   (1, h_tile*W, cout_pad) bf16/f32 conv output rows for this step
    # sum_ref: (1, 1, 1, cout_pad)     f32    per-step partial sum
    # ssq_ref: (1, 1, 1, cout_pad)     f32    per-step partial sum of squares
    # col_ref: (h_tile*W, k*k*cin_pad) bf16   VMEM im2col scratch
    r0 = pl.program_id(1) * h_tile
    hw_t = h_tile * w
    # Build the im2col slab once (9 static-width lane slices) -> one big matmul.
    for kh in range(k):
        for kw in range(k):
            tap = kh * k + kw
            xs = x_ref[0, pl.ds(r0 + kh, h_tile), kw:kw + w, :]   # (h_tile, w, cin_pad)
            col_ref[:, tap * cin_pad:(tap + 1) * cin_pad] = xs.reshape(hw_t, cin_pad)
    # bf16 MXU operands, f32 accumulation, MXU accumulates internally over K.
    acc = jnp.dot(col_ref[...], w_ref[...],
                  preferred_element_type=jnp.float32)             # (hw_t, cout_pad)
    y_ref[0] = acc.astype(y_ref.dtype)
    # Partial batch statistics from the f32 accumulator (reduced in the wrapper).
    sum_ref[...] = jnp.sum(acc, axis=0, keepdims=True).reshape(sum_ref.shape)
    ssq_ref[...] = jnp.sum(acc * acc, axis=0, keepdims=True).reshape(ssq_ref.shape)


# ---------------------------------------------------------------------------
# Pass 2: pure y*scale + shift (scale/shift precomputed per channel).
# ---------------------------------------------------------------------------
def _bn_apply_kernel(scale_ref, shift_ref, y_ref, o_ref):
    o_ref[...] = y_ref[...].astype(jnp.float32) * scale_ref[...] + shift_ref[...]


# ---------------------------------------------------------------------------
# Wrapper
# ---------------------------------------------------------------------------
def conv_bn_forward(x_nchw, w_oihw, gamma, beta, *, y_dtype=jnp.bfloat16):
    """x_nchw: (N, Cin, H, W) f32; w_oihw: (Cout, Cin, 3, 3); gamma/beta: (Cout,)."""
    N, Cin, H, W = x_nchw.shape
    Cout, Cin2, K, K2 = w_oihw.shape
    assert (K, K2) == (3, 3) and Cin2 == Cin

    cin_pad = _round_up(Cin, 16)        # bf16 sublane packing
    cout_pad = _round_up(Cout, 128)     # lane-dense (unmasked vst) outputs
    Hp, Wp = H + 2, W + 2
    HW = H * W
    M = N * HW

    h_tile = _pick_h_tile(H, W, cout_pad)
    n_ht = H // h_tile
    vmem_limit = _vmem_limit_bytes()

    # --- layout glue: NCHW -> NHWC, spatial pad 1, channel pad; cast to bf16 ONCE.
    x_nhwc = jnp.transpose(x_nchw, (0, 2, 3, 1))
    xp = jnp.pad(x_nhwc, ((0, 0), (1, 1), (1, 1), (0, cin_pad - Cin)))
    xp = xp.astype(jnp.bfloat16)                                  # (N, Hp, Wp, cin_pad)

    # weights (Cout,Cin,kh,kw) -> (kh,kw,cin,cout) -> (9*cin_pad, cout_pad) bf16
    w_k = jnp.transpose(w_oihw, (2, 3, 1, 0))
    w_k = jnp.pad(w_k, ((0, 0), (0, 0), (0, cin_pad - Cin), (0, cout_pad - Cout)))
    w2 = w_k.reshape(K * K * cin_pad, cout_pad).astype(jnp.bfloat16)

    # --- pass 1: conv + per-block partial statistics (both axes parallel) ---
    kernel1 = functools.partial(_conv_stats_kernel, h_tile=h_tile, w=W, k=K,
                                cin_pad=cin_pad)
    # TODO(synk): on v7x the resident weight operand could be single-buffered
    # (pipeline_mode=pl.Buffered(1)) to free VMEM for larger row tiles.
    y, psum, pssq = pl.pallas_call(
        kernel1,
        grid=(N, n_ht),                 # row-tile axis innermost: the padded image
        in_specs=[                      # block index is unchanged -> no re-DMA
            pl.BlockSpec((1, Hp, Wp, cin_pad), lambda n, t: (n, 0, 0, 0)),
            pl.BlockSpec((K * K * cin_pad, cout_pad), lambda n, t: (0, 0)),
        ],
        out_specs=[
            pl.BlockSpec((1, h_tile * W, cout_pad), lambda n, t: (n, t, 0)),
            pl.BlockSpec((1, 1, 1, cout_pad), lambda n, t: (n, t, 0, 0)),
            pl.BlockSpec((1, 1, 1, cout_pad), lambda n, t: (n, t, 0, 0)),
        ],
        out_shape=[
            jax.ShapeDtypeStruct((N, HW, cout_pad), y_dtype),
            jax.ShapeDtypeStruct((N, n_ht, 1, cout_pad), jnp.float32),
            jax.ShapeDtypeStruct((N, n_ht, 1, cout_pad), jnp.float32),
        ],
        scratch_shapes=[pltpu.VMEM((h_tile * W, K * K * cin_pad), jnp.bfloat16)],
        compiler_params=pltpu.CompilerParams(
            dimension_semantics=("parallel", "parallel"),  # no resident accumulators
            vmem_limit_bytes=vmem_limit),
    )(xp, w2)

    # --- tiny XLA epilogue: reduce partials, fold BN affine into scale/shift ---
    ssum = jnp.sum(psum, axis=(0, 1, 2))                          # (cout_pad,)
    ssq = jnp.sum(pssq, axis=(0, 1, 2))
    mean = ssum / M
    # TODO(synk): E[y^2]-E[y]^2 in f32 can lose precision for huge M / large means;
    # switch to a shifted variance if tolerances tighten.
    var = jnp.maximum(ssq / M - mean * mean, 0.0)
    inv_std = lax.rsqrt(var + EPS)
    gamma_p = jnp.pad(gamma.astype(jnp.float32), (0, cout_pad - Cout))
    beta_p = jnp.pad(beta.astype(jnp.float32), (0, cout_pad - Cout))
    scale = (gamma_p * inv_std).reshape(1, cout_pad)
    shift = (beta_p - mean * gamma_p * inv_std).reshape(1, cout_pad)

    # --- pass 2: y*scale + shift, tiled over M (HBM-bound; bf16 y halves reads) ---
    tile_m = _pick_tile_m(M)
    out2d = pl.pallas_call(
        _bn_apply_kernel,
        grid=(M // tile_m,),
        in_specs=[
            pl.BlockSpec((1, cout_pad), lambda i: (0, 0)),         # scale (resident)
            pl.BlockSpec((1, cout_pad), lambda i: (0, 0)),         # shift (resident)
            pl.BlockSpec((tile_m, cout_pad), lambda i: (i, 0)),    # y tile
        ],
        out_specs=pl.BlockSpec((tile_m, cout_pad), lambda i: (i, 0)),
        out_shape=jax.ShapeDtypeStruct((M, cout_pad), jnp.float32),
        compiler_params=pltpu.CompilerParams(
            dimension_semantics=("parallel",),
            vmem_limit_bytes=vmem_limit),
    )(scale, shift, y.reshape(M, cout_pad))

    # --- glue: drop channel padding, back to NCHW ---
    # TODO(synk): if the downstream consumer accepts NHWC, skip this un-pad +
    # transpose (it is an extra full HBM read+write of the output).
    out = out2d[:, :Cout].reshape(N, H, W, Cout)
    return jnp.transpose(out, (0, 3, 1, 2))


# ---------------------------------------------------------------------------
# Reference (pure XLA, f32)
# ---------------------------------------------------------------------------
def reference(x_nchw, w_oihw, gamma, beta):
    y = lax.conv_general_dilated(
        x_nchw, w_oihw, window_strides=(1, 1), padding=((1, 1), (1, 1)),
        dimension_numbers=("NCHW", "OIHW", "NCHW"),
        precision=lax.Precision.HIGHEST)
    mean = jnp.mean(y, axis=(0, 2, 3), keepdims=True)
    var = jnp.mean((y - mean) ** 2, axis=(0, 2, 3), keepdims=True)   # biased, like BN
    g = gamma.reshape(1, -1, 1, 1)
    b = beta.reshape(1, -1, 1, 1)
    return (y - mean) * lax.rsqrt(var + EPS) * g + b


if __name__ == "__main__":
    key = jax.random.PRNGKey(0)
    kx, kw = jax.random.split(key)

    N, Cin, H, W = 2, 4, 16, 16
    Cout, K = 8, 3

    x = jax.random.normal(kx, (N, Cin, H, W), dtype=jnp.float32)
    fan_in = Cin * K * K
    w = jax.random.normal(kw, (Cout, Cin, K, K), dtype=jnp.float32) * (1.0 / fan_in) ** 0.5
    gamma = jnp.ones((Cout,), dtype=jnp.float32)   # BatchNorm2d default init
    beta = jnp.zeros((Cout,), dtype=jnp.float32)

    fwd = jax.jit(conv_bn_forward, static_argnames=("y_dtype",))

    # Default (perf) configuration: bf16 intermediate conv output.
    out = jax.block_until_ready(fwd(x, w, gamma, beta))
    assert out.shape == (N, Cout, H, W)

    # Tight check: f32 intermediate y isolates the kernel math (only the bf16
    # MXU operands differ) against an f32 reference fed the same bf16-rounded
    # inputs.
    out_f32y = fwd(x, w, gamma, beta, y_dtype=jnp.float32)
    ref_bf16_in = reference(x.astype(jnp.bfloat16).astype(jnp.float32),
                            w.astype(jnp.bfloat16).astype(jnp.float32), gamma, beta)
    assert jnp.max(jnp.abs(out_f32y - ref_bf16_in)) < 2e-3

    # Loose check for the default bf16-intermediate path vs the pure-f32
    # reference (bf16 conv operands + bf16-stored y => looser tolerance).
    ref_f32 = reference(x, w, gamma, beta)
    assert jnp.max(jnp.abs(out - ref_f32)) < 1e-1

    print("KERNEL_OK")
</pallas_src>

<mosaic_0001>
module attributes {stable_mosaic.version = 11 : i64} {
  func.func @_bn_apply_kernel(%arg0: i32, %arg1: memref<1x128xf32, #tpu.memory_space<vmem>>, %arg2: memref<1x128xf32, #tpu.memory_space<vmem>>, %arg3: memref<512x128xbf16, #tpu.memory_space<vmem>>, %arg4: memref<512x128xf32, #tpu.memory_space<vmem>>) attributes {dimension_semantics = [#tpu.dimension_semantics<parallel>], iteration_bounds = array<i64: 1>, scalar_prefetch = 0 : i64, scratch_operands = 0 : i64, tpu.core_type = #tpu.core_type<tc>, window_params = [{pipeline_mode = #tpu.pipeline_mode<synchronous>, transform_indices = @transform_0, window_bounds = array<i64: 1, 128>}, {pipeline_mode = #tpu.pipeline_mode<synchronous>, transform_indices = @transform_1, window_bounds = array<i64: 1, 128>}, {transform_indices = @transform_2, window_bounds = array<i64: 512, 128>}, {transform_indices = @transform_3, window_bounds = array<i64: 512, 128>}]} {
    %c0 = arith.constant 0 : index
    %c0_0 = arith.constant 0 : index
    %0 = vector.load %arg3[%c0, %c0_0] : memref<512x128xbf16, #tpu.memory_space<vmem>>, vector<512x128xbf16>
    %1 = arith.extf %0 : vector<512x128xbf16> to vector<512x128xf32>
    %c0_1 = arith.constant 0 : index
    %c0_2 = arith.constant 0 : index
    %2 = vector.load %arg1[%c0_1, %c0_2] : memref<1x128xf32, #tpu.memory_space<vmem>>, vector<1x128xf32>
    %3 = vector.broadcast %2 : vector<1x128xf32> to vector<512x128xf32>
    %4 = arith.mulf %1, %3 : vector<512x128xf32>
    %c0_3 = arith.constant 0 : index
    %c0_4 = arith.constant 0 : index
    %5 = vector.load %arg2[%c0_3, %c0_4] : memref<1x128xf32, #tpu.memory_space<vmem>>, vector<1x128xf32>
    %6 = vector.broadcast %5 : vector<1x128xf32> to vector<512x128xf32>
    %7 = arith.addf %4, %6 : vector<512x128xf32>
    %c0_5 = arith.constant 0 : index
    %c0_6 = arith.constant 0 : index
    %8 = vector.load %arg4[%c0_5, %c0_6] : memref<512x128xf32, #tpu.memory_space<vmem>>, vector<512x128xf32>
    tpu.vector_store %arg4[%c0_5, %c0_6], %7 {strides = array<i32>} : memref<512x128xf32, #tpu.memory_space<vmem>>, vector<512x128xf32>,
    return
  }
  func.func @transform_0(%arg0: i32) -> (i32, i32) {
    %c0_i32 = arith.constant 0 : i32
    %c0_i32_0 = arith.constant 0 : i32
    %c0_i32_1 = arith.constant 0 : i32
    return %c0_i32, %c0_i32_0 : i32, i32
  }
  func.func @transform_1(%arg0: i32) -> (i32, i32) {
    %c0_i32 = arith.constant 0 : i32
    %c0_i32_0 = arith.constant 0 : i32
    %c0_i32_1 = arith.constant 0 : i32
    return %c0_i32, %c0_i32_0 : i32, i32
  }
  func.func @transform_2(%arg0: i32) -> (i32, i32) {
    %c0_i32 = arith.constant 0 : i32
    %c0_i32_0 = arith.constant 0 : i32
    return %arg0, %c0_i32 : i32, i32
  }
  func.func @transform_3(%arg0: i32) -> (i32, i32) {
    %c0_i32 = arith.constant 0 : i32
    %c0_i32_0 = arith.constant 0 : i32
    return %arg0, %c0_i32 : i32, i32
  }
}

module attributes {stable_mosaic.version = 11 : i64} {
  func.func @_conv_stats_kernel(%arg0: i32, %arg1: i32, %arg2: memref<1x18x18x16xbf16, #tpu.memory_space<vmem>>, %arg3: memref<144x128xbf16, #tpu.memory_space<vmem>>, %arg4: memref<1x256x128xbf16, #tpu.memory_space<vmem>>, %arg5: memref<1x1x1x128xf32, #tpu.memory_space<vmem>>, %arg6: memref<1x1x1x128xf32, #tpu.memory_space<vmem>>, %arg7: memref<256x144xbf16, #tpu.memory_space<vmem>>) attributes {dimension_semantics = [#tpu.dimension_semantics<parallel>, #tpu.dimension_semantics<parallel>], iteration_bounds = array<i64: 2, 1>, scalar_prefetch = 0 : i64, scratch_operands = 1 : i64, tpu.core_type = #tpu.core_type<tc>, window_params = [{transform_indices = @transform_0, window_bounds = array<i64: 1, 18, 18, 16>}, {pipeline_mode = #tpu.pipeline_mode<synchronous>, transform_indices = @transform_1, window_bounds = array<i64: 144, 128>}, {transform_indices = @transform_2, window_bounds = array<i64: 1, 256, 128>}, {transform_indices = @transform_3, window_bounds = array<i64: 1, 1, 1, 128>}, {transform_indices = @transform_4, window_bounds = array<i64: 1, 1, 1, 128>}]} {
    %c16_i32 = arith.constant 16 : i32
    %0 = arith.muli %arg1, %c16_i32 : i32
    %c0_i32 = arith.constant 0 : i32
    %1 = arith.addi %0, %c0_i32 : i32
    %c0 = arith.constant 0 : index
    %2 = arith.index_cast %1 : i32 to index
    %c0_0 = arith.constant 0 : index
    %c0_1 = arith.constant 0 : index
    %3 = vector.load %arg2[%c0, %2, %c0_0, %c0_1] : memref<1x18x18x16xbf16, #tpu.memory_space<vmem>>, vector<1x16x16x16xbf16>
    %4 = vector.shape_cast %3 : vector<1x16x16x16xbf16> to vector<16x16x16xbf16>
    %5 = vector.shape_cast %4 : vector<16x16x16xbf16> to vector<256x16xbf16>
    %c0_2 = arith.constant 0 : index
    %c0_3 = arith.constant 0 : index
    %6 = vector.load %arg7[%c0_2, %c0_3] : memref<256x144xbf16, #tpu.memory_space<vmem>>, vector<256x16xbf16>
    tpu.vector_store %arg7[%c0_2, %c0_3], %5 {strides = array<i32>} : memref<256x144xbf16, #tpu.memory_space<vmem>>, vector<256x16xbf16>,
    %c0_i32_4 = arith.constant 0 : i32
    %7 = arith.addi %0, %c0_i32_4 : i32
    %c0_5 = arith.constant 0 : index
    %8 = arith.index_cast %7 : i32 to index
    %c1 = arith.constant 1 : index
    %c0_6 = arith.constant 0 : index
    %9 = vector.load %arg2[%c0_5, %8, %c1, %c0_6] : memref<1x18x18x16xbf16, #tpu.memory_space<vmem>>, vector<1x16x16x16xbf16>
    %10 = vector.shape_cast %9 : vector<1x16x16x16xbf16> to vector<16x16x16xbf16>
    %11 = vector.shape_cast %10 : vector<16x16x16xbf16> to vector<256x16xbf16>
    %c0_7 = arith.constant 0 : index
    %c16 = arith.constant 16 : index
    %12 = vector.load %arg7[%c0_7, %c16] : memref<256x144xbf16, #tpu.memory_space<vmem>>, vector<256x16xbf16>
    tpu.vector_store %arg7[%c0_7, %c16], %11 {strides = array<i32>} : memref<256x144xbf16, #tpu.memory_space<vmem>>, vector<256x16xbf16>,
    %c0_i32_8 = arith.constant 0 : i32
    %13 = arith.addi %0, %c0_i32_8 : i32
    %c0_9 = arith.constant 0 : index
    %14 = arith.index_cast %13 : i32 to index
    %c2 = arith.constant 2 : index
    %c0_10 = arith.constant 0 : index
    %15 = vector.load %arg2[%c0_9, %14, %c2, %c0_10] : memref<1x18x18x16xbf16, #tpu.memory_space<vmem>>, vector<1x16x16x16xbf16>
    %16 = vector.shape_cast %15 : vector<1x16x16x16xbf16> to vector<16x16x16xbf16>
    %17 = vector.shape_cast %16 : vector<16x16x16xbf16> to vector<256x16xbf16>
    %c0_11 = arith.constant 0 : index
    %c32 = arith.constant 32 : index
    %18 = vector.load %arg7[%c0_11, %c32] : memref<256x144xbf16, #tpu.memory_space<vmem>>, vector<256x16xbf16>
    tpu.vector_store %arg7[%c0_11, %c32], %17 {strides = array<i32>} : memref<256x144xbf16, #tpu.memory_space<vmem>>, vector<256x16xbf16>,
    %c1_i32 = arith.constant 1 : i32
    %19 = arith.addi %0, %c1_i32 : i32
    %c0_12 = arith.constant 0 : index
    %20 = arith.index_cast %19 : i32 to index
    %c0_13 = arith.constant 0 : index
    %c0_14 = arith.constant 0 : index
    %21 = vector.load %arg2[%c0_12, %20, %c0_13, %c0_14] : memref<1x18x18x16xbf16, #tpu.memory_space<vmem>>, vector<1x16x16x16xbf16>
    %22 = vector.shape_cast %21 : vector<1x16x16x16xbf16> to vector<16x16x16xbf16>
    %23 = vector.shape_cast %22 : vector<16x16x16xbf16> to vector<256x16xbf16>
    %c0_15 = arith.constant 0 : index
    %c48 = arith.constant 48 : index
    %24 = vector.load %arg7[%c0_15, %c48] : memref<256x144xbf16, #tpu.memory_space<vmem>>, vector<256x16xbf16>
    tpu.vector_store %arg7[%c0_15, %c48], %23 {strides = array<i32>} : memref<256x144xbf16, #tpu.memory_space<vmem>>, vector<256x16xbf16>,
    %c1_i32_16 = arith.constant 1 : i32
    %25 = arith.addi %0, %c1_i32_16 : i32
    %c0_17 = arith.constant 0 : index
    %26 = arith.index_cast %25 : i32 to index
    %c1_18 = arith.constant 1 : index
    %c0_19 = arith.constant 0 : index
    %27 = vector.load %arg2[%c0_17, %26, %c1_18, %c0_19] : memref<1x18x18x16xbf16, #tpu.memory_space<vmem>>, vector<1x16x16x16xbf16>
    %28 = vector.shape_cast %27 : vector<1x16x16x16xbf16> to vector<16x16x16xbf16>
    %29 = vector.shape_cast %28 : vector<16x16x16xbf16> to vector<256x16xbf16>
    %c0_20 = arith.constant 0 : index
    %c64 = arith.constant 64 : index
    %30 = vector.load %arg7[%c0_20, %c64] : memref<256x144xbf16, #tpu.memory_space<vmem>>, vector<256x16xbf16>
    tpu.vector_store %arg7[%c0_20, %c64], %29 {strides = array<i32>} : memref<256x144xbf16, #tpu.memory_space<vmem>>, vector<256x16xbf16>,
    %c1_i32_21 = arith.constant 1 : i32
    %31 = arith.addi %0, %c1_i32_21 : i32
    %c0_22 = arith.constant 0 : index
    %32 = arith.index_cast %31 : i32 to index
    %c2_23 = arith.constant 2 : index
    %c0_24 = arith.constant 0 : index
    %33 = vector.load %arg2[%c0_22, %32, %c2_23, %c0_24] : memref<1x18x18x16xbf16, #tpu.memory_space<vmem>>, vector<1x16x16x16xbf16>
    %34 = vector.shape_cast %33 : vector<1x16x16x16xbf16> to vector<16x16x16xbf16>
    %35 = vector.shape_cast %34 : vector<16x16x16xbf16> to vector<256x16xbf16>
    %c0_25 = arith.constant 0 : index
    %c80 = arith.constant 80 : index
    %36 = vector.load %arg7[%c0_25, %c80] : memref<256x144xbf16, #tpu.memory_space<vmem>>, vector<256x16xbf16>
    tpu.vector_store %arg7[%c0_25, %c80], %35 {strides = array<i32>} : memref<256x144xbf16, #tpu.memory_space<vmem>>, vector<256x16xbf16>,
    %c2_i32 = arith.constant 2 : i32
    %37 = arith.addi %0, %c2_i32 : i32
    %c0_26 = arith.constant 0 : index
    %38 = arith.index_cast %37 : i32 to index
    %c0_27 = arith.constant 0 : index
    %c0_28 = arith.constant 0 : index
    %39 = vector.load %arg2[%c0_26, %38, %c0_27, %c0_28] : memref<1x18x18x16xbf16, #tpu.memory_space<vmem>>, vector<1x16x16x16xbf16>
    %40 = vector.shape_cast %39 : vector<1x16x16x16xbf16> to vector<16x16x16xbf16>
    %41 = vector.shape_cast %40 : vector<16x16x16xbf16> to vector<256x16xbf16>
    %c0_29 = arith.constant 0 : index
    %c96 = arith.constant 96 : index
    %42 = vector.load %arg7[%c0_29, %c96] : memref<256x144xbf16, #tpu.memory_space<vmem>>, vector<256x16xbf16>
    tpu.vector_store %arg7[%c0_29, %c96], %41 {strides = array<i32>} : memref<256x144xbf16, #tpu.memory_space<vmem>>, vector<256x16xbf16>,
    %c2_i32_30 = arith.constant 2 : i32
    %43 = arith.addi %0, %c2_i32_30 : i32
    %c0_31 = arith.constant 0 : index
    %44 = arith.index_cast %43 : i32 to index
    %c1_32 = arith.constant 1 : index
    %c0_33 = arith.constant 0 : index
    %45 = vector.load %arg2[%c0_31, %44, %c1_32, %c0_33] : memref<1x18x18x16xbf16, #tpu.memory_space<vmem>>, vector<1x16x16x16xbf16>
    %46 = vector.shape_cast %45 : vector<1x16x16x16xbf16> to vector<16x16x16xbf16>
    %47 = vector.shape_cast %46 : vector<16x16x16xbf16> to vector<256x16xbf16>
    %c0_34 = arith.constant 0 : index
    %c112 = arith.constant 112 : index
    %48 = vector.load %arg7[%c0_34, %c112] : memref<256x144xbf16, #tpu.memory_space<vmem>>, vector<256x16xbf16>
    tpu.vector_store %arg7[%c0_34, %c112], %47 {strides = array<i32>} : memref<256x144xbf16, #tpu.memory_space<vmem>>, vector<256x16xbf16>,
    %c2_i32_35 = arith.constant 2 : i32
    %49 = arith.addi %0, %c2_i32_35 : i32
    %c0_36 = arith.constant 0 : index
    %50 = arith.index_cast %49 : i32 to index
    %c2_37 = arith.constant 2 : index
    %c0_38 = arith.constant 0 : index
    %51 = vector.load %arg2[%c0_36, %50, %c2_37, %c0_38] : memref<1x18x18x16xbf16, #tpu.memory_space<vmem>>, vector<1x16x16x16xbf16>
    %52 = vector.shape_cast %51 : vector<1x16x16x16xbf16> to vector<16x16x16xbf16>
    %53 = vector.shape_cast %52 : vector<16x16x16xbf16> to vector<256x16xbf16>
    %c0_39 = arith.constant 0 : index
    %c128 = arith.constant 128 : index
    %54 = vector.load %arg7[%c0_39, %c128] : memref<256x144xbf16, #tpu.memory_space<vmem>>, vector<256x16xbf16>
    tpu.vector_store %arg7[%c0_39, %c128], %53 {strides = array<i32>} : memref<256x144xbf16, #tpu.memory_space<vmem>>, vector<256x16xbf16>,
    %c0_40 = arith.constant 0 : index
    %c0_41 = arith.constant 0 : index
    %55 = vector.load %arg7[%c0_40, %c0_41] : memref<256x144xbf16, #tpu.memory_space<vmem>>, vector<256x144xbf16>
    %c0_42 = arith.constant 0 : index
    %c0_43 = arith.constant 0 : index
    %56 = vector.load %arg3[%c0_42, %c0_43] : memref<144x128xbf16, #tpu.memory_space<vmem>>, vector<144x128xbf16>
    %cst = arith.constant dense<0.000000e+00> : vector<256x128xf32>
    %57 = tpu.matmul %55, %56, %cst {dimension_numbers = #tpu.dot_dimension_numbers<[1], [0], [0], [1], [0, 0, 1, 1], [], []>} : vector<256x144xbf16>, vector<144x128xbf16>, vector<256x128xf32> -> vector<256x128xf32>
    %58 = arith.truncf %57 : vector<256x128xf32> to vector<256x128xbf16>
    %c0_44 = arith.constant 0 : index
    %c0_45 = arith.constant 0 : index
    %c0_46 = arith.constant 0 : index
    %59 = vector.load %arg4[%c0_44, %c0_45, %c0_46] : memref<1x256x128xbf16, #tpu.memory_space<vmem>>, vector<1x256x128xbf16>
    %60 = vector.shape_cast %59 : vector<1x256x128xbf16> to vector<256x128xbf16>
    %61 = vector.shape_cast %58 : vector<256x128xbf16> to vector<1x256x128xbf16>
    tpu.vector_store %arg4[%c0_44, %c0_45, %c0_46], %61 {strides = array<i32>} : memref<1x256x128xbf16, #tpu.memory_space<vmem>>, vector<1x256x128xbf16>,
    %cst_47 = arith.constant dense<0.000000e+00> : vector<128xf32>
    %62 = vector.multi_reduction <add>, %57, %cst_47 [0] : vector<256x128xf32> to vector<128xf32>
    %63 = vector.shape_cast %62 : vector<128xf32> to vector<1x128xf32>
    %64 = vector.shape_cast %63 : vector<1x128xf32> to vector<1x1x1x128xf32>
    %c0_48 = arith.constant 0 : index
    %c0_49 = arith.constant 0 : index
    %c0_50 = arith.constant 0 : index
    %c0_51 = arith.constant 0 : index
    %65 = vector.load %arg5[%c0_48, %c0_49, %c0_50, %c0_51] : memref<1x1x1x128xf32, #tpu.memory_space<vmem>>, vector<1x1x1x128xf32>
    tpu.vector_store %arg5[%c0_48, %c0_49, %c0_50, %c0_51], %64 {strides = array<i32>} : memref<1x1x1x128xf32, #tpu.memory_space<vmem>>, vector<1x1x1x128xf32>,
    %66 = arith.mulf %57, %57 : vector<256x128xf32>
    %cst_52 = arith.constant dense<0.000000e+00> : vector<128xf32>
    %67 = vector.multi_reduction <add>, %66, %cst_52 [0] : vector<256x128xf32> to vector<128xf32>
    %68 = vector.shape_cast %67 : vector<128xf32> to vector<1x128xf32>
    %69 = vector.shape_cast %68 : vector<1x128xf32> to vector<1x1x1x128xf32>
    %c0_53 = arith.constant 0 : index
    %c0_54 = arith.constant 0 : index
    %c0_55 = arith.constant 0 : index
    %c0_56 = arith.constant 0 : index
    %70 = vector.load %arg6[%c0_53, %c0_54, %c0_55, %c0_56] : memref<1x1x1x128xf32, #tpu.memory_space<vmem>>, vector<1x1x1x128xf32>
    tpu.vector_store %arg6[%c0_53, %c0_54, %c0_55, %c0_56], %69 {strides = array<i32>} : memref<1x1x1x128xf32, #tpu.memory_space<vmem>>, vector<1x1x1x128xf32>,
    return
  }
  func.func @transform_0(%arg0: i32, %arg1: i32) -> (i32, i32, i32, i32) {
    %c0_i32 = arith.constant 0 : i32
    %c0_i32_0 = arith.constant 0 : i32
    %c0_i32_1 = arith.constant 0 : i32
    %c0_i32_2 = arith.constant 0 : i32
    return %arg0, %c0_i32, %c0_i32_0, %c0_i32_1 : i32, i32, i32, i32
  }
  func.func @transform_1(%arg0: i32, %arg1: i32) -> (i32, i32) {
    %c0_i32 = arith.constant 0 : i32
    %c0_i32_0 = arith.constant 0 : i32
    %c0_i32_1 = arith.constant 0 : i32
    return %c0_i32, %c0_i32_0 : i32, i32
  }
  func.func @transform_2(%arg0: i32, %arg1: i32) -> (i32, i32, i32) {
    %c0_i32 = arith.constant 0 : i32
    %c0_i32_0 = arith.constant 0 : i32
    return %arg0, %arg1, %c0_i32 : i32, i32, i32
  }
  func.func @transform_3(%arg0: i32, %arg1: i32) -> (i32, i32, i32, i32) {
    %c0_i32 = arith.constant 0 : i32
    %c0_i32_0 = arith.constant 0 : i32
    %c0_i32_1 = arith.constant 0 : i32
    return %arg0, %arg1, %c0_i32, %c0_i32_0 : i32, i32, i32, i32
  }
  func.func @transform_4(%arg0: i32, %arg1: i32) -> (i32, i32, i32, i32) {
    %c0_i32 = arith.constant 0 : i32
    %c0_i32_0 = arith.constant 0 : i32
    %c0_i32_1 = arith.constant 0 : i32
    return %arg0, %arg1, %c0_i32, %c0_i32_0 : i32, i32, i32, i32
  }
}

</mosaic_0001>

<bundles_post_ra>
// kernel: conv_bn_forward.3
= control target key start
LH: loop header
LB: loop body
LE: loop exit
PB: predicated region body
PF: predicated region fallthrough
CT: control target
= control target key end

     0   :  { %s959_s0 = inlined_call_operand.vmem [shape: f32[1,128], index: 0, kind: input, shape index: {}]   ;;  %s960_s1 = inlined_call_operand.vmem [shape: f32[1,128], index: 1, kind: input, shape index: {}]   ;;  %s961_s2 = inlined_call_operand.vmem [shape: bf16[512,128], index: 2, kind: input, shape index: {}]   ;;  %s962_s3 = inlined_call_operand.vmem [shape: f32[512,128], index: 3, kind: output, shape index: {}]  }
   0x1   :  { %v355_v0 = vld [vmem:[%s961_s2] sm:$0xff]   ;;  %v482_v4 = vld [vmem:[%s961_s2 + $0x8] sm:$0xff]   ;;  %v483_v5 = vld [vmem:[%s961_s2 + $0x10] sm:$0xff]  }
   0x2   :  { %v539_v1 = vld [vmem:[%s959_s0] ss:$0 sm:$0xff]  ;;  %v356_v2 = vunpack.c.l.bf16 %v355_v0  ;;  %v357_v3 = vunpack.c.h.bf16 %v355_v0  ;;  %v484_v6 = vld [vmem:[%s961_s2 + $0x18] sm:$0xff]   ;;  %v360_v8 = vunpack.c.l.bf16 %v482_v4  ;;  %v361_v9 = vunpack.c.h.bf16 %v482_v4  ;;  %v486_v25 = vld [vmem:[%s961_s2 + $0x28] sm:$0xff]  }
   0x3   :  { %v553_v7 = vld [vmem:[%s960_s1] ss:$0 sm:$0xff]  ;;  %v364_v10 = vunpack.c.l.bf16 %v483_v5  ;;  %v365_v11 = vunpack.c.h.bf16 %v483_v5  ;;  %v368_v14 = vunpack.c.l.bf16 %v484_v6  ;;  %v369_v15 = vunpack.c.h.bf16 %v484_v6  ;;  %v487_v26 = vld [vmem:[%s961_s2 + $0x30] sm:$0xff]   ;;  %v488_v31 = vld [vmem:[%s961_s2 + $0x38] sm:$0xff]  }
   0x4   :  { %v149_v12 = vmul.f32 %v356_v2, %v539_v1  ;;  %v150_v13 = vmul.f32 %v357_v3, %v539_v1  ;;  %v151_v16 = vmul.f32 %v360_v8, %v539_v1  ;;  %v152_v17 = vmul.f32 %v361_v9, %v539_v1  ;;  %v485_v20 = vld [vmem:[%s961_s2 + $0x20] sm:$0xff]   ;;  %v490_v53 = vld [vmem:[%s961_s2 + $0x48] sm:$0xff]   ;;  %v491_v54 = vld [vmem:[%s961_s2 + $0x50] sm:$0xff]  }
   0x5   :  { %v153_v18 = vmul.f32 %v364_v10, %v539_v1  ;;  %v154_v19 = vmul.f32 %v365_v11, %v539_v1  ;;  %v155_v23 = vmul.f32 %v368_v14, %v539_v1  ;;  %v156_v24 = vmul.f32 %v369_v15, %v539_v1  ;;  %v489_v48 = vld [vmem:[%s961_s2 + $0x40] sm:$0xff]   ;;  %v492_v59 = vld [vmem:[%s961_s2 + $0x58] sm:$0xff]  }
   0x6   :  { %v220_v21 = vadd.f32 %v553_v7, %v149_v12  ;;  %v221_v22 = vadd.f32 %v553_v7, %v150_v13  ;;  %v222_v27 = vadd.f32 %v553_v7, %v151_v16  ;;  %v223_v28 = vadd.f32 %v553_v7, %v152_v17  ;;  %v493_v14 = vld [vmem:[%s961_s2 + $0x60] sm:$0xff]  }
   0x7   :  { %v224_v29 = vadd.f32 %v553_v7, %v153_v18  ;;  %v225_v30 = vadd.f32 %v553_v7, %v154_v19  ;;  %v226_v32 = vadd.f32 %v553_v7, %v155_v23  ;;  %v227_v33 = vadd.f32 %v553_v7, %v156_v24  ;;  %v494_v19 = vld [vmem:[%s961_s2 + $0x68] sm:$0xff]  }
   0x8   :  { %284 = vst [vmem:[%s962_s3] sm:$0xff] %v220_v21  ;;  %285 = vst [vmem:[%s962_s3 + $0x8] sm:$0xff] %v221_v22  ;;  %v372_v34 = vunpack.c.l.bf16 %v485_v20  ;;  %v373_v35 = vunpack.c.h.bf16 %v485_v20  ;;  %v376_v36 = vunpack.c.l.bf16 %v486_v25  ;;  %v377_v37 = vunpack.c.h.bf16 %v486_v25  ;;  %v495_v20 = vld [vmem:[%s961_s2 + $0x70] sm:$0xff]   ;;  %v496_v25 = vld [vmem:[%s961_s2 + $0x78] sm:$0xff]  }
   0x9   :  { %286 = vst [vmem:[%s962_s3 + $0x10] sm:$0xff] %v222_v27  ;;  %287 = vst [vmem:[%s962_s3 + $0x18] sm:$0xff] %v223_v28  ;;  %v380_v38 = vunpack.c.l.bf16 %v487_v26  ;;  %v381_v39 = vunpack.c.h.bf16 %v487_v26  ;;  %v384_v42 = vunpack.c.l.bf16 %v488_v31  ;;  %v385_v43 = vunpack.c.h.bf16 %v488_v31 }
   0xa   :  { %288 = vst [vmem:[%s962_s3 + $0x20] sm:$0xff] %v224_v29  ;;  %289 = vst [vmem:[%s962_s3 + $0x28] sm:$0xff] %v225_v30  ;;  %v157_v40 = vmul.f32 %v372_v34, %v539_v1  ;;  %v158_v41 = vmul.f32 %v373_v35, %v539_v1  ;;  %v159_v44 = vmul.f32 %v376_v36, %v539_v1  ;;  %v388_v62 = vunpack.c.l.bf16 %v489_v48 }
   0xb   :  { %290 = vst [vmem:[%s962_s3 + $0x30] sm:$0xff] %v226_v32  ;;  %291 = vst [vmem:[%s962_s3 + $0x38] sm:$0xff] %v227_v33  ;;  %v160_v45 = vmul.f32 %v377_v37, %v539_v1  ;;  %v161_v46 = vmul.f32 %v380_v38, %v539_v1  ;;  %v162_v47 = vmul.f32 %v381_v39, %v539_v1  ;;  %v389_v63 = vunpack.c.h.bf16 %v489_v48  ;;  %v499_v48 = vld [vmem:[%s961_s2 + $0x90] sm:$0xff]  }
   0xc   :  { %v228_v49 = vadd.f32 %v553_v7, %v157_v40  ;;  %v229_v50 = vadd.f32 %v553_v7, %v158_v41  ;;  %v163_v51 = vmul.f32 %v384_v42, %v539_v1  ;;  %v164_v52 = vmul.f32 %v385_v43, %v539_v1  ;;  %v497_v42 = vld [vmem:[%s961_s2 + $0x80] sm:$0xff]  }
   0xd   :  { %v230_v55 = vadd.f32 %v553_v7, %v159_v44  ;;  %v231_v56 = vadd.f32 %v553_v7, %v160_v45  ;;  %v232_v57 = vadd.f32 %v553_v7, %v161_v46  ;;  %v233_v58 = vadd.f32 %v553_v7, %v162_v47  ;;  %v498_v47 = vld [vmem:[%s961_s2 + $0x88] sm:$0xff]  }
   0xe   :  { %292 = vst [vmem:[%s962_s3 + $0x40] sm:$0xff] %v228_v49  ;;  %293 = vst [vmem:[%s962_s3 + $0x48] sm:$0xff] %v229_v50  ;;  %v234_v60 = vadd.f32 %v553_v7, %v163_v51  ;;  %v235_v61 = vadd.f32 %v553_v7, %v164_v52  ;;  %v392_v0 = vunpack.c.l.bf16 %v490_v53  ;;  %v393_v2 = vunpack.c.h.bf16 %v490_v53  ;;  %v500_v53 = vld [vmem:[%s961_s2 + $0x98] sm:$0xff]  }
   0xf   :  { %294 = vst [vmem:[%s962_s3 + $0x50] sm:$0xff] %v230_v55  ;;  %295 = vst [vmem:[%s962_s3 + $0x58] sm:$0xff] %v231_v56  ;;  %v396_v3 = vunpack.c.l.bf16 %v491_v54  ;;  %v397_v4 = vunpack.c.h.bf16 %v491_v54  ;;  %v165_v5 = vmul.f32 %v388_v62, %v539_v1  ;;  %v166_v6 = vmul.f32 %v389_v63, %v539_v1 }
  0x10   :  { %296 = vst [vmem:[%s962_s3 + $0x60] sm:$0xff] %v232_v57  ;;  %297 = vst [vmem:[%s962_s3 + $0x68] sm:$0xff] %v233_v58  ;;  %v400_v8 = vunpack.c.l.bf16 %v492_v59  ;;  %v401_v9 = vunpack.c.h.bf16 %v492_v59  ;;  %v167_v10 = vmul.f32 %v392_v0, %v539_v1  ;;  %v168_v11 = vmul.f32 %v393_v2, %v539_v1 }
  0x11   :  { %298 = vst [vmem:[%s962_s3 + $0x70] sm:$0xff] %v234_v60  ;;  %299 = vst [vmem:[%s962_s3 + $0x78] sm:$0xff] %v235_v61  ;;  %v169_v12 = vmul.f32 %v396_v3, %v539_v1  ;;  %v170_v13 = vmul.f32 %v397_v4, %v539_v1  ;;  %v236_v15 = vadd.f32 %v553_v7, %v165_v5  ;;  %v404_v28 = vunpack.c.l.bf16 %v493_v14 }
  0x12   :  { %v237_v16 = vadd.f32 %v553_v7, %v166_v6  ;;  %v171_v17 = vmul.f32 %v400_v8, %v539_v1  ;;  %v172_v18 = vmul.f32 %v401_v9, %v539_v1  ;;  %v238_v21 = vadd.f32 %v553_v7, %v167_v10  ;;  %v501_v8 = vld [vmem:[%s961_s2 + $0xa0] sm:$0xff]  }
  0x13   :  { %v239_v22 = vadd.f32 %v553_v7, %v168_v11  ;;  %v240_v23 = vadd.f32 %v553_v7, %v169_v12  ;;  %v241_v24 = vadd.f32 %v553_v7, %v170_v13  ;;  %300 = vst [vmem:[%s962_s3 + $0x80] sm:$0xff] %v236_v15  ;;  %v405_v29 = vunpack.c.h.bf16 %v493_v14  ;;  %v502_v13 = vld [vmem:[%s961_s2 + $0xa8] sm:$0xff]   ;;  %v503_v14 = vld [vmem:[%s961_s2 + $0xb0] sm:$0xff]  }
  0x14   :  { %301 = vst [vmem:[%s962_s3 + $0x88] sm:$0xff] %v237_v16  ;;  %v242_v26 = vadd.f32 %v553_v7, %v171_v17  ;;  %v243_v27 = vadd.f32 %v553_v7, %v172_v18  ;;  %302 = vst [vmem:[%s962_s3 + $0x90] sm:$0xff] %v238_v21  ;;  %v408_v30 = vunpack.c.l.bf16 %v494_v19  ;;  %v409_v31 = vunpack.c.h.bf16 %v494_v19  ;;  %v504_v19 = vld [vmem:[%s961_s2 + $0xb8] sm:$0xff]  }
  0x15   :  { %303 = vst [vmem:[%s962_s3 + $0x98] sm:$0xff] %v239_v22  ;;  %304 = vst [vmem:[%s962_s3 + $0xa0] sm:$0xff] %v240_v23  ;;  %v412_v32 = vunpack.c.l.bf16 %v495_v20  ;;  %v413_v33 = vunpack.c.h.bf16 %v495_v20  ;;  %v173_v34 = vmul.f32 %v404_v28, %v539_v1  ;;  %v174_v35 = vmul.f32 %v405_v29, %v539_v1 }
  0x16   :  { %305 = vst [vmem:[%s962_s3 + $0xa8] sm:$0xff] %v241_v24  ;;  %306 = vst [vmem:[%s962_s3 + $0xb0] sm:$0xff] %v242_v26  ;;  %v416_v36 = vunpack.c.l.bf16 %v496_v25  ;;  %v417_v37 = vunpack.c.h.bf16 %v496_v25  ;;  %v175_v38 = vmul.f32 %v408_v30, %v539_v1  ;;  %v176_v39 = vmul.f32 %v409_v31, %v539_v1 }
  0x17   :  { %307 = vst [vmem:[%s962_s3 + $0xb8] sm:$0xff] %v243_v27  ;;  %v177_v40 = vmul.f32 %v412_v32, %v539_v1  ;;  %v178_v41 = vmul.f32 %v413_v33, %v539_v1  ;;  %v244_v43 = vadd.f32 %v553_v7, %v173_v34  ;;  %v245_v44 = vadd.f32 %v553_v7, %v174_v35 }
  0x18   :  { %v179_v45 = vmul.f32 %v416_v36, %v539_v1  ;;  %v180_v46 = vmul.f32 %v417_v37, %v539_v1  ;;  %v246_v49 = vadd.f32 %v553_v7, %v175_v38  ;;  %v247_v50 = vadd.f32 %v553_v7, %v176_v39  ;;  %v505_v36 = vld [vmem:[%s961_s2 + $0xc0] sm:$0xff]  }
  0x19   :  { %v248_v51 = vadd.f32 %v553_v7, %v177_v40  ;;  %v249_v52 = vadd.f32 %v553_v7, %v178_v41  ;;  %308 = vst [vmem:[%s962_s3 + $0xc0] sm:$0xff] %v244_v43  ;;  %309 = vst [vmem:[%s962_s3 + $0xc8] sm:$0xff] %v245_v44  ;;  %v420_v56 = vunpack.c.l.bf16 %v497_v42  ;;  %v421_v57 = vunpack.c.h.bf16 %v497_v42  ;;  %v506_v41 = vld [vmem:[%s961_s2 + $0xc8] sm:$0xff]   ;;  %v507_v42 = vld [vmem:[%s961_s2 + $0xd0] sm:$0xff]  }
  0x1a   :  { %v250_v54 = vadd.f32 %v553_v7, %v179_v45  ;;  %v251_v55 = vadd.f32 %v553_v7, %v180_v46  ;;  %310 = vst [vmem:[%s962_s3 + $0xd0] sm:$0xff] %v246_v49  ;;  %311 = vst [vmem:[%s962_s3 + $0xd8] sm:$0xff] %v247_v50  ;;  %v424_v58 = vunpack.c.l.bf16 %v498_v47  ;;  %v425_v59 = vunpack.c.h.bf16 %v498_v47  ;;  %v508_v47 = vld [vmem:[%s961_s2 + $0xd8] sm:$0xff]  }
  0x1b   :  { %312 = vst [vmem:[%s962_s3 + $0xe0] sm:$0xff] %v248_v51  ;;  %313 = vst [vmem:[%s962_s3 + $0xe8] sm:$0xff] %v249_v52  ;;  %v428_v60 = vunpack.c.l.bf16 %v499_v48  ;;  %v429_v61 = vunpack.c.h.bf16 %v499_v48  ;;  %v181_v62 = vmul.f32 %v420_v56, %v539_v1  ;;  %v182_v63 = vmul.f32 %v421_v57, %v539_v1 }
  0x1c   :  { %314 = vst [vmem:[%s962_s3 + $0xf0] sm:$0xff] %v250_v54  ;;  %315 = vst [vmem:[%s962_s3 + $0xf8] sm:$0xff] %v251_v55  ;;  %v432_v0 = vunpack.c.l.bf16 %v500_v53  ;;  %v433_v2 = vunpack.c.h.bf16 %v500_v53  ;;  %v183_v3 = vmul.f32 %v424_v58, %v539_v1  ;;  %v184_v4 = vmul.f32 %v425_v59, %v539_v1 }
  0x1d   :  { %v185_v5 = vmul.f32 %v428_v60, %v539_v1  ;;  %v186_v6 = vmul.f32 %v429_v61, %v539_v1  ;;  %v252_v9 = vadd.f32 %v553_v7, %v181_v62  ;;  %v253_v10 = vadd.f32 %v553_v7, %v182_v63 }
  0x1e   :  { %v187_v11 = vmul.f32 %v432_v0, %v539_v1  ;;  %v188_v12 = vmul.f32 %v433_v2, %v539_v1  ;;  %v254_v15 = vadd.f32 %v553_v7, %v183_v3  ;;  %v255_v16 = vadd.f32 %v553_v7, %v184_v4  ;;  %v509_v0 = vld [vmem:[%s961_s2 + $0xe0] sm:$0xff]  }
  0x1f   :  { %v256_v17 = vadd.f32 %v553_v7, %v185_v5  ;;  %v257_v18 = vadd.f32 %v553_v7, %v186_v6  ;;  %316 = vst [vmem:[%s962_s3 + $0x100] sm:$0xff] %v252_v9  ;;  %317 = vst [vmem:[%s962_s3 + $0x108] sm:$0xff] %v253_v10  ;;  %v436_v22 = vunpack.c.l.bf16 %v501_v8  ;;  %v437_v23 = vunpack.c.h.bf16 %v501_v8  ;;  %v510_v6 = vld [vmem:[%s961_s2 + $0xe8] sm:$0xff]   ;;  %v511_v8 = vld [vmem:[%s961_s2 + $0xf0] sm:$0xff]  }
  0x20   :  { %v258_v20 = vadd.f32 %v553_v7, %v187_v11  ;;  %v259_v21 = vadd.f32 %v553_v7, %v188_v12  ;;  %318 = vst [vmem:[%s962_s3 + $0x110] sm:$0xff] %v254_v15  ;;  %319 = vst [vmem:[%s962_s3 + $0x118] sm:$0xff] %v255_v16  ;;  %v440_v24 = vunpack.c.l.bf16 %v502_v13  ;;  %v441_v25 = vunpack.c.h.bf16 %v502_v13  ;;  %v512_v13 = vld [vmem:[%s961_s2 + $0xf8] sm:$0xff]  }
  0x21   :  { %320 = vst [vmem:[%s962_s3 + $0x120] sm:$0xff] %v256_v17  ;;  %321 = vst [vmem:[%s962_s3 + $0x128] sm:$0xff] %v257_v18  ;;  %v444_v26 = vunpack.c.l.bf16 %v503_v14  ;;  %v445_v27 = vunpack.c.h.bf16 %v503_v14  ;;  %v189_v28 = vmul.f32 %v436_v22, %v539_v1  ;;  %v190_v29 = vmul.f32 %v437_v23, %v539_v1 }
  0x22   :  { %322 = vst [vmem:[%s962_s3 + $0x130] sm:$0xff] %v258_v20  ;;  %323 = vst [vmem:[%s962_s3 + $0x138] sm:$0xff] %v259_v21  ;;  %v448_v30 = vunpack.c.l.bf16 %v504_v19  ;;  %v449_v31 = vunpack.c.h.bf16 %v504_v19  ;;  %v191_v32 = vmul.f32 %v440_v24, %v539_v1  ;;  %v192_v33 = vmul.f32 %v441_v25, %v539_v1 }
  0x23   :  { %v193_v34 = vmul.f32 %v444_v26, %v539_v1  ;;  %v194_v35 = vmul.f32 %v445_v27, %v539_v1  ;;  %v260_v37 = vadd.f32 %v553_v7, %v189_v28  ;;  %v261_v38 = vadd.f32 %v553_v7, %v190_v29 }
  0x24   :  { %v195_v39 = vmul.f32 %v448_v30, %v539_v1  ;;  %v196_v40 = vmul.f32 %v449_v31, %v539_v1  ;;  %v262_v43 = vadd.f32 %v553_v7, %v191_v32  ;;  %v263_v44 = vadd.f32 %v553_v7, %v192_v33 }
  0x25   :  { %v264_v45 = vadd.f32 %v553_v7, %v193_v34  ;;  %v265_v46 = vadd.f32 %v553_v7, %v194_v35  ;;  %324 = vst [vmem:[%s962_s3 + $0x140] sm:$0xff] %v260_v37  ;;  %325 = vst [vmem:[%s962_s3 + $0x148] sm:$0xff] %v261_v38  ;;  %v452_v50 = vunpack.c.l.bf16 %v505_v36  ;;  %v453_v51 = vunpack.c.h.bf16 %v505_v36 }
  0x26   :  { %v266_v48 = vadd.f32 %v553_v7, %v195_v39  ;;  %v267_v49 = vadd.f32 %v553_v7, %v196_v40  ;;  %326 = vst [vmem:[%s962_s3 + $0x150] sm:$0xff] %v262_v43  ;;  %327 = vst [vmem:[%s962_s3 + $0x158] sm:$0xff] %v263_v44  ;;  %v456_v52 = vunpack.c.l.bf16 %v506_v41  ;;  %v457_v53 = vunpack.c.h.bf16 %v506_v41 }
  0x27   :  { %328 = vst [vmem:[%s962_s3 + $0x160] sm:$0xff] %v264_v45  ;;  %329 = vst [vmem:[%s962_s3 + $0x168] sm:$0xff] %v265_v46  ;;  %v460_v54 = vunpack.c.l.bf16 %v507_v42  ;;  %v461_v55 = vunpack.c.h.bf16 %v507_v42  ;;  %v197_v56 = vmul.f32 %v452_v50, %v539_v1  ;;  %v198_v57 = vmul.f32 %v453_v51, %v539_v1 }
  0x28   :  { %330 = vst [vmem:[%s962_s3 + $0x170] sm:$0xff] %v266_v48  ;;  %331 = vst [vmem:[%s962_s3 + $0x178] sm:$0xff] %v267_v49  ;;  %v464_v58 = vunpack.c.l.bf16 %v508_v47  ;;  %v465_v59 = vunpack.c.h.bf16 %v508_v47  ;;  %v199_v60 = vmul.f32 %v456_v52, %v539_v1  ;;  %v200_v61 = vmul.f32 %v457_v53, %v539_v1 }
  0x29   :  { %v201_v62 = vmul.f32 %v460_v54, %v539_v1  ;;  %v202_v63 = vmul.f32 %v461_v55, %v539_v1  ;;  %v268_v2 = vadd.f32 %v553_v7, %v197_v56  ;;  %v269_v3 = vadd.f32 %v553_v7, %v198_v57 }
  0x2a   :  { %v203_v4 = vmul.f32 %v464_v58, %v539_v1  ;;  %v204_v5 = vmul.f32 %v465_v59, %v539_v1  ;;  %v270_v9 = vadd.f32 %v553_v7, %v199_v60  ;;  %v271_v10 = vadd.f32 %v553_v7, %v200_v61 }
  0x2b   :  { %v272_v11 = vadd.f32 %v553_v7, %v201_v62  ;;  %v273_v12 = vadd.f32 %v553_v7, %v202_v63  ;;  %332 = vst [vmem:[%s962_s3 + $0x180] sm:$0xff] %v268_v2  ;;  %333 = vst [vmem:[%s962_s3 + $0x188] sm:$0xff] %v269_v3  ;;  %v468_v16 = vunpack.c.l.bf16 %v509_v0  ;;  %v469_v17 = vunpack.c.h.bf16 %v509_v0 }
  0x2c   :  { %v274_v14 = vadd.f32 %v553_v7, %v203_v4  ;;  %v275_v15 = vadd.f32 %v553_v7, %v204_v5  ;;  %334 = vst [vmem:[%s962_s3 + $0x190] sm:$0xff] %v270_v9  ;;  %335 = vst [vmem:[%s962_s3 + $0x198] sm:$0xff] %v271_v10  ;;  %v472_v18 = vunpack.c.l.bf16 %v510_v6  ;;  %v473_v19 = vunpack.c.h.bf16 %v510_v6 }
  0x2d   :  { %336 = vst [vmem:[%s962_s3 + $0x1a0] sm:$0xff] %v272_v11  ;;  %337 = vst [vmem:[%s962_s3 + $0x1a8] sm:$0xff] %v273_v12  ;;  %v476_v20 = vunpack.c.l.bf16 %v511_v8  ;;  %v477_v21 = vunpack.c.h.bf16 %v511_v8  ;;  %v205_v22 = vmul.f32 %v468_v16, %v539_v1  ;;  %v206_v23 = vmul.f32 %v469_v17, %v539_v1 }
  0x2e   :  { %338 = vst [vmem:[%s962_s3 + $0x1b0] sm:$0xff] %v274_v14  ;;  %339 = vst [vmem:[%s962_s3 + $0x1b8] sm:$0xff] %v275_v15  ;;  %v480_v24 = vunpack.c.l.bf16 %v512_v13  ;;  %v481_v25 = vunpack.c.h.bf16 %v512_v13  ;;  %v207_v26 = vmul.f32 %v472_v18, %v539_v1  ;;  %v208_v27 = vmul.f32 %v473_v19, %v539_v1 }
  0x2f   :  { %v209_v28 = vmul.f32 %v476_v20, %v539_v1  ;;  %v210_v29 = vmul.f32 %v477_v21, %v539_v1  ;;  %v276_v30 = vadd.f32 %v553_v7, %v205_v22  ;;  %v277_v31 = vadd.f32 %v553_v7, %v206_v23 }
  0x30   :  { %v211_v32 = vmul.f32 %v480_v24, %v539_v1  ;;  %v212_v33 = vmul.f32 %v481_v25, %v539_v1  ;;  %v278_v34 = vadd.f32 %v553_v7, %v207_v26  ;;  %v279_v35 = vadd.f32 %v553_v7, %v208_v27 }
  0x31   :  { %v280_v36 = vadd.f32 %v553_v7, %v209_v28  ;;  %v281_v37 = vadd.f32 %v553_v7, %v210_v29  ;;  %340 = vst [vmem:[%s962_s3 + $0x1c0] sm:$0xff] %v276_v30  ;;  %341 = vst [vmem:[%s962_s3 + $0x1c8] sm:$0xff] %v277_v31 }
  0x32   :  { %v282_v38 = vadd.f32 %v553_v7, %v211_v32  ;;  %v283_v1 = vadd.f32 %v553_v7, %v212_v33  ;;  %342 = vst [vmem:[%s962_s3 + $0x1d0] sm:$0xff] %v278_v34  ;;  %343 = vst [vmem:[%s962_s3 + $0x1d8] sm:$0xff] %v279_v35 }
  0x33   :  { %344 = vst [vmem:[%s962_s3 + $0x1e0] sm:$0xff] %v280_v36  ;;  %345 = vst [vmem:[%s962_s3 + $0x1e8] sm:$0xff] %v281_v37 }
  0x34   :  { %346 = vst [vmem:[%s962_s3 + $0x1f0] sm:$0xff] %v282_v38  ;;  %347 = vst [vmem:[%s962_s3 + $0x1f8] sm:$0xff] %v283_v1 }

// kernel: conv_bn_forward.2
= control target key start
LH: loop header
LB: loop body
LE: loop exit
PB: predicated region body
PF: predicated region fallthrough
CT: control target
= control target key end

     0   :  { %s4887_s15 = smov 0   ;;  %s4889_s16 = smov 0   ;;  %s6082_s0 = inlined_call_operand.vmem [shape: bf16[2,18,18,16], index: 0, kind: input, shape index: {}]   ;;  %s6083_s1 = inlined_call_operand.vmem [shape: bf16[144,128], index: 1, kind: input, shape index: {}]   ;;  %s6084_s2 = inlined_call_operand.vmem [shape: bf16[2,256,128], index: 2, kind: output, shape index: {0}]   ;;  %s6085_s3 = inlined_call_operand.vmem [shape: f32[2,1,1,128], index: 3, kind: output, shape index: {1}]   ;;  %s6086_s4 = inlined_call_operand.vmem [shape: f32[2,1,1,128], index: 4, kind: output, shape index: {2}]  }
   0x1   :  { %s4891_s17 = smov 0  }
   0x2 LB: > { %s27_s18 = sadd.s32 1, %s4848_s16  ;;  %p4083_p0 = scmp.ge.s32.totalorder %s4852_s17, 1  ;;  %s4852_s17 = sphi %s4891_s17, %s15_s17   ;;  %s4848_s16 = sphi %s4889_s16, %s6092_s16   ;;  %s4844_s15 = sphi %s4887_s15, %s6091_s15  }
   0x3   : > { %p29_p1 = scmp.ge.s32.totalorder %s27_s18, 2  ;;  %p185_p2 = scmp.lt.s32.totalorder %s4852_s17, 3 }
   0x5   : > { %s6094_s18 = smov (%p29_p1, %s27_s18), 0  ;;  %p186_p3 = pnand %p4083_p0, %p185_p2 }
   0x6   : > { %p227_p4 = scmp.lt.s32.totalorder (!%p186_p3), %s4844_s15, 1  ;;  %vm1048_vm0 = vcmask (!%p186_p3), 1042432   ;;  %vm1049_vm1 = vcmask (!%p186_p3), 1046532   ;;  %s4854_s23 = smov (!%p186_p3), 48   ;;  %vm452_vm3 = vsmask.f32 (!%p186_p3), 3328 }
   0x7   : > { %189 = sbr.rel (%p186_p3) target bundleno = 652 (0x28c), region = 28  ;;  %vm4908_vm2 = vmor (!%p186_p3), %vm1048_vm0, %vm1049_vm1  ;;  %vm453_vm4 = vsmask.f32 (!%p186_p3), 7440  ;;  %s4855_s24 = smov (!%p186_p3), 96   ;;  %vm387_vm6 = vcmask (!%p186_p3), 130048   ;;  %vm935_vm7 = vcmask (!%p186_p3), 261248  }
   0x8   : > { %s4856_s25 = smov (!%p186_p3), 32   ;;  %vm4950_vm5 = vmor (!%p186_p3), %vm452_vm3, %vm453_vm4  ;;  %s4857_s26 = smov (!%p186_p3), 80   ;;  %vm1259_vm8 = vcmask (!%p186_p3), 392448   ;;  %vm1440_vm9 = vcmask (!%p186_p3), 523648   ;;  %vm1985_vm10 = vcmask (!%p186_p3), 654848   ;;  %vm2306_vm11 = vcmask (!%p186_p3), 786048  }
   0x9   : > { %s4858_s27 = smov (!%p186_p3), 64   ;;  %s4859_s28 = smov (!%p186_p3), 16   ;;  %vm2487_vm12 = vcmask (!%p186_p3), 917248   ;;  %vm3032_vm13 = vcmask (!%p186_p3), 1048448  }
   0xa   : > { %s4860_s29 = smov (!%p186_p3), 112  }
   0xe   : > { %s6096_s15 = smov (!%p227_p4, %s4844_s15), 1 }
   0xf   : > { %s4740_s19 = smul.u32 216, %s6096_s15  ;;  %s253_s9 = scalar_lea.vmem %s6086_s4, %s6096_s15 }
  0x11   : > { %s4915_s22 = scalar_lea.vmem %s6082_s0, %s4740_s19 }
  0x12   : > { %v4773_v1 = vld [vmem:[%s4915_s22 + $0xc] sm:$0xff]   ;;  %v4774_v2 = vld [vmem:[%s4915_s22 + $0x18] sm:$0xff]   ;;  %v952_v3 = vld [vmem:[%s4915_s22] sm:$0xe] }
  0x13   : > { %1392 = vrot.lane.b32.xlu1 %v4773_v1, %s4854_s23  ;;  %v953_v4 = vld [vmem:[%s4915_s22 + $0x4] sm:$0xf]  ;;  %v954_v5 = vld [vmem:[%s4915_s22 + $0x8] sm:$0x1]  ;;  %v4119_v6 = vrot.slane %v952_v3, 9  ;;  %v4775_v16 = vld [vmem:[%s4915_s22 + $0x18] sm:$0xff]  }
  0x14   : > { %v1053_v7 = vrot.slane %v953_v4, 5  ;;  %v1056_v8 = vrot.slane %v954_v5, 5  ;;  %v4263_v9 = vld [vmem:[%s4915_s22 + $0xc] sm:$0xe]  ;;  %v4264_v10 = vld [vmem:[%s4915_s22 + $0x10] sm:$0xf] }
  0x15   : > { %v4265_v13 = vld [vmem:[%s4915_s22 + $0x14] sm:$0x1]  ;;  %v4311_v14 = vrot.slane %v4263_v9, 9  ;;  %v2100_v15 = vrot.slane %v4264_v10, 5  ;;  %v4199_v18 = vld [vmem:[%s4915_s22 + $0xc] sm:$0xf] }
  0x16   : > { %v1054_v11 = vsel %vm4908_vm2, %v4119_v6, %v1053_v7  ;;  %v1055_v12 = vrot.slane %v1053_v7, 4  ;;  %v2103_v17 = vrot.slane %v4265_v13, 5  ;;  %v4200_v19 = vld [vmem:[%s4915_s22 + $0x10] sm:$0xf]  ;;  %v4201_v23 = vld [vmem:[%s4915_s22 + $0x14] sm:$0x1] }
  0x17   : > { %2439 = vrot.lane.b32.xlu1 %v4774_v2, %s4855_s24  ;;  %v2101_v21 = vsel %vm4908_vm2, %v4311_v14, %v2100_v15  ;;  %v2102_v22 = vrot.slane %v2100_v15, 4  ;;  %v1506_v24 = vshrl.u32 %v4199_v18, 16  ;;  %v955_v25 = vld [vmem:[%s4915_s22 + $0xc] sm:$0xe]  ;;  %v1509_v27 = vshll.u32 %v4199_v18, 16 }
  0x18   : > { %v1057_v20 = vsel %vm4908_vm2, %v1055_v12, %v1056_v8  ;;  %v1515_v28 = vshll.u32 %v4200_v19, 16  ;;  %v1519_v29 = vshrl.u32 %v4200_v19, 16  ;;  %v956_v30 = vld [vmem:[%s4915_s22 + $0x10] sm:$0xf]  ;;  %v1525_v33 = vshll.u32 %v4201_v23, 16 }
  0x19   : > { %v4135_v26 = vcombine.low %v1054_v11, %v1057_v20  ;;  %v2104_v31 = vsel %vm4908_vm2, %v2102_v22, %v2103_v17  ;;  %v1508_v32 = vrot.slane %v1506_v24, 4  ;;  %v957_v34 = vld [vmem:[%s4915_s22 + $0x14] sm:$0x1]  ;;  %v4120_v35 = vrot.slane %v955_v25, 9  ;;  %v407_v40 = vld [vmem:[%s4915_s22 + $0xc] sm:$0xf] }
  0x1a   : > { %v4327_v36 = vcombine.low %v2101_v21, %v2104_v31  ;;  %v1511_v37 = vrot.slane %v1509_v27, 5  ;;  %v1517_v38 = vrot.slane %v1515_v28, 5  ;;  %v1521_v39 = vrot.slane %v1519_v29, 4  ;;  %v408_v44 = vld [vmem:[%s4915_s22 + $0x10] sm:$0xf] }
  0x1b   : > { %1211 = vrot.lane.b32.xlu0 %v4135_v26, %s4856_s25  ;;  %1394 = vrot.lane.b32.xlu1 %v4775_v16, %s4854_s23  ;;  %v1527_v41 = vrot.slane %v1525_v33, 5  ;;  %v1060_v42 = vrot.slane %v956_v30, 5  ;;  %v1063_v43 = vrot.slane %v957_v34, 5  ;;  %v480_v45 = vshrl.u32 %v407_v40, 16  ;;  %v409_v48 = vld [vmem:[%s4915_s22 + $0x14] sm:$0x1] }
  0x1c   : > { %v1512_v46 = vor.u32 %v1511_v37, %v1508_v32  ;;  %v1522_v47 = vor.u32 %v1521_v39, %v1517_v38  ;;  %v483_v49 = vshll.u32 %v407_v40, 16  ;;  %v489_v50 = vshll.u32 %v408_v44, 16  ;;  %v404_v51 = vld [vmem:[%s4915_s22] sm:$0xf]  ;;  %v405_v1 = vld [vmem:[%s4915_s22 + $0x4] sm:$0xf] }
  0x1d   : > { %v1061_v53 = vsel %vm4908_vm2, %v4120_v35, %v1060_v42  ;;  %v1062_v54 = vrot.slane %v1060_v42, 4  ;;  %v482_v55 = vrot.slane %v480_v45, 4  ;;  %v493_v56 = vshrl.u32 %v408_v44, 16  ;;  %v406_v7 = vld [vmem:[%s4915_s22 + $0x8] sm:$0x1] }
  0x1e   : > { %v1513_v57 = vrot.slane %v1512_v46, 4  ;;  %v1523_v58 = vrot.slane %v1522_v47, 4  ;;  %v485_v59 = vrot.slane %v483_v49, 5  ;;  %v491_v60 = vrot.slane %v489_v50, 5  ;;  %v4391_v8 = vld [vmem:[%s4915_s22 + $0x18] sm:$0xf] }
  0x1f   : > { %2258 = vrot.lane.b32.xlu0 %v4327_v36, %s4857_s26  ;;  %v1064_v61 = vsel %vm4908_vm2, %v1062_v54, %v1063_v43  ;;  %v495_v62 = vrot.slane %v493_v56, 4  ;;  %v499_v63 = vshll.u32 %v409_v48, 16  ;;  %v456_v2 = vshrl.u32 %v404_v51, 16  ;;  %v4392_v17 = vld [vmem:[%s4915_s22 + $0x1c] sm:$0xf] }
  0x20   : > { %v1518_v3 = vsel %vm4950_vm5, %v1513_v57, %v1517_v38  ;;  %v1528_v4 = vsel %vm4950_vm5, %v1523_v58, %v1527_v41  ;;  %v4136_v5 = vcombine.low %v1061_v53, %v1064_v61  ;;  %v486_v6 = vor.u32 %v485_v59, %v482_v55  ;;  %v4393_v20 = vld [vmem:[%s4915_s22 + $0x20] sm:$0x1]  ;;  %v4266_v27 = vld [vmem:[%s4915_s22 + $0x18] sm:$0xe]  ;;  %v4267_v32 = vld [vmem:[%s4915_s22 + $0x1c] sm:$0xf] }
  0x21   : > { %v4247_v9 = vcombine.low %v1518_v3, %v1528_v4  ;;  %v496_v10 = vor.u32 %v495_v62, %v491_v60  ;;  %v501_v11 = vrot.slane %v499_v63, 5  ;;  %v458_v12 = vrot.slane %v456_v2, 4  ;;  %v4268_v37 = vld [vmem:[%s4915_s22 + $0x20] sm:$0x1]  ;;  %v4202_v38 = vld [vmem:[%s4915_s22 + $0x18] sm:$0xf] }
  0x22   : > { %v487_v13 = vrot.slane %v486_v6, 4  ;;  %v459_v14 = vshll.u32 %v404_v51, 16  ;;  %v465_v15 = vshll.u32 %v405_v1, 16  ;;  %v469_v16 = vshrl.u32 %v405_v1, 16  ;;  %v4203_v51 = vld [vmem:[%s4915_s22 + $0x1c] sm:$0xf] }
  0x23   : > { %1213 = vrot.lane.b32.xlu0 %v4136_v5, %s4856_s25  ;;  %1937 = vrot.lane.b32.xlu1 %v4247_v9, %s4858_s27  ;;  %v497_v18 = vrot.slane %v496_v10, 4  ;;  %v475_v19 = vshll.u32 %v406_v7, 16  ;;  %v2553_v21 = vshrl.u32 %v4391_v8, 16  ;;  %v2556_v22 = vshll.u32 %v4391_v8, 16  ;;  %v4204_v57 = vld [vmem:[%s4915_s22 + $0x20] sm:$0x1] }
  0x24   : > { %v492_v23 = vsel %vm4950_vm5, %v487_v13, %v491_v60  ;;  %v461_v24 = vrot.slane %v459_v14, 5  ;;  %v467_v25 = vrot.slane %v465_v15, 5  ;;  %v471_v26 = vrot.slane %v469_v16, 4  ;;  %v4394_v62 = vld [vmem:[%s4915_s22 + $0x24] sm:$0xf] }
  0x25   : > { %v502_v28 = vsel %vm4950_vm5, %v497_v18, %v501_v11  ;;  %v477_v29 = vrot.slane %v475_v19, 5  ;;  %v2555_v30 = vrot.slane %v2553_v21, 4  ;;  %v2558_v31 = vrot.slane %v2556_v22, 5  ;;  %v4395_v63 = vld [vmem:[%s4915_s22 + $0x28] sm:$0xf] }
  0x26   : > { %v4104_v33 = vcombine.low %v492_v23, %v502_v28  ;;  %v462_v34 = vor.u32 %v461_v24, %v458_v12  ;;  %v472_v35 = vor.u32 %v471_v26, %v467_v25  ;;  %v2562_v36 = vshll.u32 %v4392_v17, 16  ;;  %v4396_v5 = vld [vmem:[%s4915_s22 + $0x2c] sm:$0x1]  ;;  %v958_v10 = vld [vmem:[%s4915_s22 + $0x18] sm:$0xe] }
  0x27   : > { %v2559_v39 = vor.u32 %v2558_v31, %v2555_v30  ;;  %v2566_v40 = vshrl.u32 %v4392_v17, 16  ;;  %v2572_v41 = vshll.u32 %v4393_v20, 16  ;;  %v4312_v42 = vrot.slane %v4266_v27, 9  ;;  %v959_v15 = vld [vmem:[%s4915_s22 + $0x1c] sm:$0xf] }
  0x28   : > { %889 = vrot.lane.b32.xlu1 %v4104_v33, %s4859_s28  ;;  %v463_v43 = vrot.slane %v462_v34, 4  ;;  %v473_v44 = vrot.slane %v472_v35, 4  ;;  %v2564_v45 = vrot.slane %v2562_v36, 5  ;;  %v2107_v46 = vrot.slane %v4267_v32, 5  ;;  %v960_v20 = vld [vmem:[%s4915_s22 + $0x20] sm:$0x1] }
  0x29   : > { %v2560_v47 = vrot.slane %v2559_v39, 4  ;;  %v2568_v48 = vrot.slane %v2566_v40, 4  ;;  %v2574_v49 = vrot.slane %v2572_v41, 5  ;;  %v2110_v50 = vrot.slane %v4268_v37, 5 }
  0x2a   : > { %v468_v53 = vsel %vm4950_vm5, %v463_v43, %v467_v25  ;;  %v478_v54 = vsel %vm4950_vm5, %v473_v44, %v477_v29  ;;  %v2108_v55 = vsel %vm4908_vm2, %v4312_v42, %v2107_v46  ;;  %v2109_v56 = vrot.slane %v2107_v46, 4  ;;  %v410_v25 = vld [vmem:[%s4915_s22 + $0x18] sm:$0xf]  ;;  %v412_v46 = vld [vmem:[%s4915_s22 + $0x20] sm:$0x1] }
  0x2b   : > { %v4103_v58 = vcombine.low %v468_v53, %v478_v54  ;;  %v2565_v59 = vsel %vm4950_vm5, %v2560_v47, %v2564_v45  ;;  %v2569_v60 = vor.u32 %v2568_v48, %v2564_v45  ;;  %v1530_v61 = vshrl.u32 %v4202_v38, 16  ;;  %v4205_v48 = vld [vmem:[%s4915_s22 + $0x24] sm:$0xf] }
  0x2c   : > { %v2111_v1 = vsel %vm4908_vm2, %v2109_v56, %v2110_v50  ;;  %v1533_v2 = vshll.u32 %v4202_v38, 16  ;;  %v1539_v3 = vshll.u32 %v4203_v51, 16  ;;  %v1543_v4 = vshrl.u32 %v4203_v51, 16  ;;  %v411_v38 = vld [vmem:[%s4915_s22 + $0x1c] sm:$0xf] }
  0x2d   : > { %887 = vrot.lane.b32.xlu0 %v4103_v58, %s4859_s28  ;;  %v2570_v6 = vrot.slane %v2569_v60, 4  ;;  %v4328_v7 = vcombine.low %v2108_v55, %v2111_v1  ;;  %v1532_v8 = vrot.slane %v1530_v61, 4  ;;  %v1549_v9 = vshll.u32 %v4204_v57, 16  ;;  %v4206_v55 = vld [vmem:[%s4915_s22 + $0x28] sm:$0xf] }
  0x2e   : > { %v1535_v11 = vrot.slane %v1533_v2, 5  ;;  %v1541_v12 = vrot.slane %v1539_v3, 5  ;;  %v1545_v13 = vrot.slane %v1543_v4, 4  ;;  %v2577_v14 = vshrl.u32 %v4394_v62, 16  ;;  %v4207_v60 = vld [vmem:[%s4915_s22 + $0x2c] sm:$0x1] }
  0x2f   : > { %v2575_v16 = vsel %vm4950_vm5, %v2570_v6, %v2574_v49  ;;  %2260 = vrot.lane.b32.xlu1 %v4328_v7, %s4857_s26  ;;  %v1551_v17 = vrot.slane %v1549_v9, 5  ;;  %v2580_v18 = vshll.u32 %v4394_v62, 16  ;;  %v2586_v19 = vshll.u32 %v4395_v63, 16  ;;  %v4776_v49 = vld [vmem:[%s4915_s22 + $0x24] sm:$0xff]  }
  0x30   : > { %v4439_v21 = vcombine.low %v2565_v59, %v2575_v16  ;;  %v1536_v22 = vor.u32 %v1535_v11, %v1532_v8  ;;  %v1546_v23 = vor.u32 %v1545_v13, %v1541_v12  ;;  %v2579_v24 = vrot.slane %v2577_v14, 4  ;;  %v4269_v61 = vld [vmem:[%s4915_s22 + $0x24] sm:$0xe]  ;;  %v4270_v3 = vld [vmem:[%s4915_s22 + $0x28] sm:$0xf] }
  0x31   : > { %v2582_v26 = vrot.slane %v2580_v18, 5  ;;  %v2588_v27 = vrot.slane %v2586_v19, 5  ;;  %v2590_v28 = vshrl.u32 %v4395_v63, 16  ;;  %v2596_v29 = vshll.u32 %v4396_v5, 16 }
  0x32   : > { %2984 = vrot.lane.b32.xlu0 %v4439_v21, %s4860_s29  ;;  %v1537_v30 = vrot.slane %v1536_v22, 4  ;;  %v1547_v31 = vrot.slane %v1546_v23, 4  ;;  %v4121_v32 = vrot.slane %v958_v10, 9  ;;  %v1067_v33 = vrot.slane %v959_v15, 5 }
  0x33   : > { %v2583_v34 = vor.u32 %v2582_v26, %v2579_v24  ;;  %v2592_v35 = vrot.slane %v2590_v28, 4  ;;  %v2598_v36 = vrot.slane %v2596_v29, 5  ;;  %v1070_v37 = vrot.slane %v960_v20, 5  ;;  %v414_v26 = vld [vmem:[%s4915_s22 + $0x28] sm:$0xf] }
  0x34   : > { %v1542_v39 = vsel %vm4950_vm5, %v1537_v30, %v1541_v12  ;;  %v1552_v40 = vsel %vm4950_vm5, %v1547_v31, %v1551_v17  ;;  %v1068_v41 = vsel %vm4908_vm2, %v4121_v32, %v1067_v33  ;;  %v1069_v42 = vrot.slane %v1067_v33, 4  ;;  %v4271_v12 = vld [vmem:[%s4915_s22 + $0x2c] sm:$0x1]  ;;  %v413_v17 = vld [vmem:[%s4915_s22 + $0x24] sm:$0xf] }
  0x35   : > { %v4248_v43 = vcombine.low %v1542_v39, %v1552_v40  ;;  %v2584_v44 = vrot.slane %v2583_v34, 4  ;;  %v2593_v45 = vor.u32 %v2592_v35, %v2588_v27  ;;  %v504_v47 = vshrl.u32 %v410_v25, 16  ;;  %v415_v30 = vld [vmem:[%s4915_s22 + $0x2c] sm:$0x1] }
  0x36   : > { %v1071_v50 = vsel %vm4908_vm2, %v1069_v42, %v1070_v37  ;;  %v507_v51 = vshll.u32 %v410_v25, 16  ;;  %v513_v53 = vshll.u32 %v411_v38, 16  ;;  %v517_v54 = vshrl.u32 %v411_v38, 16 }
  0x37   : > { %1939 = vrot.lane.b32.xlu0 %v4248_v43, %s4858_s27  ;;  %v2589_v56 = vsel %vm4950_vm5, %v2584_v44, %v2588_v27  ;;  %v2594_v57 = vrot.slane %v2593_v45, 4  ;;  %v4137_v58 = vcombine.low %v1068_v41, %v1071_v50  ;;  %v506_v59 = vrot.slane %v504_v47, 4  ;;  %v4398_v41 = vld [vmem:[%s4915_s22 + $0x34] sm:$0xf]  ;;  %v4777_v44 = vld [vmem:[%s4915_s22 + $0x24] sm:$0xff]  }
  0x38   : > { %v509_v62 = vrot.slane %v507_v51, 5  ;;  %v515_v63 = vrot.slane %v513_v53, 5  ;;  %v519_v1 = vrot.slane %v517_v54, 4  ;;  %v523_v2 = vshll.u32 %v412_v46, 16  ;;  %v4399_v47 = vld [vmem:[%s4915_s22 + $0x38] sm:$0x1] }
  0x39   : > { %v2599_v4 = vsel %vm4950_vm5, %v2594_v57, %v2598_v36  ;;  %v1554_v5 = vshrl.u32 %v4205_v48, 16  ;;  %v1557_v6 = vshll.u32 %v4205_v48, 16  ;;  %v1563_v7 = vshll.u32 %v4206_v55, 16  ;;  %v4397_v36 = vld [vmem:[%s4915_s22 + $0x30] sm:$0xf] }
  0x3a   : > { %v4440_v8 = vcombine.low %v2589_v56, %v2599_v4  ;;  %v510_v9 = vor.u32 %v509_v62, %v506_v59  ;;  %v520_v10 = vor.u32 %v519_v1, %v515_v63  ;;  %v525_v11 = vrot.slane %v523_v2, 5  ;;  %v961_v53 = vld [vmem:[%s4915_s22 + $0x24] sm:$0xe]  ;;  %v4778_v1 = vld [vmem:[%s4915_s22 + $0x30] sm:$0xff]  }
  0x3b   : > { %2441 = vrot.lane.b32.xlu0 %v4776_v49, %s4855_s24  ;;  %v1556_v13 = vrot.slane %v1554_v5, 4  ;;  %v1559_v14 = vrot.slane %v1557_v6, 5  ;;  %v1565_v15 = vrot.slane %v1563_v7, 5  ;;  %v1567_v16 = vshrl.u32 %v4206_v55, 16  ;;  %v4272_v6 = vld [vmem:[%s4915_s22 + $0x30] sm:$0xe] }
  0x3c   : > { %2986 = vrot.lane.b32.xlu1 %v4440_v8, %s4860_s29  ;;  %v511_v18 = vrot.slane %v510_v9, 4  ;;  %v521_v19 = vrot.slane %v520_v10, 4  ;;  %v1573_v20 = vshll.u32 %v4207_v60, 16  ;;  %v4313_v21 = vrot.slane %v4269_v61, 9 }
  0x3d   : > { %v1560_v22 = vor.u32 %v1559_v14, %v1556_v13  ;;  %v1569_v23 = vrot.slane %v1567_v16, 4  ;;  %v2114_v24 = vrot.slane %v4270_v3, 5  ;;  %v2117_v25 = vrot.slane %v4271_v12, 5  ;;  %v4274_v16 = vld [vmem:[%s4915_s22 + $0x38] sm:$0x1] }
  0x3e   : > { %v516_v27 = vsel %vm4950_vm5, %v511_v18, %v515_v63  ;;  %v526_v28 = vsel %vm4950_vm5, %v521_v19, %v525_v11  ;;  %v1575_v29 = vrot.slane %v1573_v20, 5  ;;  %v528_v31 = vshrl.u32 %v413_v17, 16  ;;  %v963_v63 = vld [vmem:[%s4915_s22 + $0x2c] sm:$0x1]  ;;  %v4273_v11 = vld [vmem:[%s4915_s22 + $0x34] sm:$0xf] }
  0x3f   : > { %v4105_v32 = vcombine.low %v516_v27, %v526_v28  ;;  %v1561_v33 = vrot.slane %v1560_v22, 4  ;;  %v1570_v34 = vor.u32 %v1569_v23, %v1565_v15  ;;  %v2115_v35 = vsel %vm4908_vm2, %v4313_v21, %v2114_v24  ;;  %v4208_v21 = vld [vmem:[%s4915_s22 + $0x30] sm:$0xf] }
  0x40   : > { %1215 = vrot.lane.b32.xlu1 %v4137_v58, %s4856_s25  ;;  %v2116_v37 = vrot.slane %v2114_v24, 4  ;;  %v530_v38 = vrot.slane %v528_v31, 4  ;;  %v531_v39 = vshll.u32 %v413_v17, 16  ;;  %v537_v40 = vshll.u32 %v414_v26, 16  ;;  %v962_v58 = vld [vmem:[%s4915_s22 + $0x28] sm:$0xf] }
  0x41   : > { %891 = vrot.lane.b32.xlu0 %v4105_v32, %s4859_s28  ;;  %v1566_v42 = vsel %vm4950_vm5, %v1561_v33, %v1565_v15  ;;  %v1571_v43 = vrot.slane %v1570_v34, 4  ;;  %v541_v45 = vshrl.u32 %v414_v26, 16  ;;  %v547_v46 = vshll.u32 %v415_v30, 16  ;;  %v4209_v26 = vld [vmem:[%s4915_s22 + $0x34] sm:$0xf] }
  0x42   : > { %v2118_v48 = vsel %vm4908_vm2, %v2116_v37, %v2117_v25  ;;  %v533_v49 = vrot.slane %v531_v39, 5  ;;  %v539_v50 = vrot.slane %v537_v40, 5  ;;  %v2601_v51 = vshrl.u32 %v4397_v36, 16  ;;  %v4210_v31 = vld [vmem:[%s4915_s22 + $0x38] sm:$0x1] }
  0x43   : > { %v1576_v54 = vsel %vm4950_vm5, %v1571_v43, %v1575_v29  ;;  %v4329_v55 = vcombine.low %v2115_v35, %v2118_v48  ;;  %v543_v56 = vrot.slane %v541_v45, 4  ;;  %v549_v57 = vrot.slane %v547_v46, 5 }
  0x44   : > { %v4249_v59 = vcombine.low %v1566_v42, %v1576_v54  ;;  %v534_v60 = vor.u32 %v533_v49, %v530_v38  ;;  %v2603_v61 = vrot.slane %v2601_v51, 4  ;;  %v2604_v62 = vshll.u32 %v4397_v36, 16  ;;  %v4400_v36 = vld [vmem:[%s4915_s22 + $0x3c] sm:$0xf]  ;;  %v4402_v42 = vld [vmem:[%s4915_s22 + $0x44] sm:$0x1] }
  0x45   : > { %1396 = vrot.lane.b32.xlu0 %v4777_v44, %s4854_s23  ;;  %v544_v2 = vor.u32 %v543_v56, %v539_v50  ;;  %v2610_v3 = vshll.u32 %v4398_v41, 16  ;;  %v2614_v4 = vshrl.u32 %v4398_v41, 16  ;;  %v2620_v5 = vshll.u32 %v4399_v47, 16  ;;  %v4401_v41 = vld [vmem:[%s4915_s22 + $0x40] sm:$0xf]  ;;  %v4779_v44 = vld [vmem:[%s4915_s22 + $0x30] sm:$0xff]  }
  0x46   : > { %1941 = vrot.lane.b32.xlu1 %v4249_v59, %s4858_s27  ;;  %v535_v7 = vrot.slane %v534_v60, 4  ;;  %v2606_v8 = vrot.slane %v2604_v62, 5  ;;  %v4122_v9 = vrot.slane %v961_v53, 9  ;;  %v1074_v10 = vrot.slane %v962_v58, 5 }
  0x47   : > { %v545_v12 = vrot.slane %v544_v2, 4  ;;  %v2612_v13 = vrot.slane %v2610_v3, 5  ;;  %v2616_v14 = vrot.slane %v2614_v4, 4  ;;  %v2622_v15 = vrot.slane %v2620_v5, 5  ;;  %v429_v3 = vld [vmem:[%s4915_s22 + $0x64] sm:$0xf] }
  0x48   : > { %v540_v17 = vsel %vm4950_vm5, %v535_v7, %v539_v50  ;;  %v2607_v18 = vor.u32 %v2606_v8, %v2603_v61  ;;  %v1075_v19 = vsel %vm4908_vm2, %v4122_v9, %v1074_v10  ;;  %v1076_v20 = vrot.slane %v1074_v10, 4  ;;  %v430_v7 = vld [vmem:[%s4915_s22 + $0x68] sm:$0x1] }
  0x49   : > { %2262 = vrot.lane.b32.xlu0 %v4329_v55, %s4857_s26  ;;  %v550_v22 = vsel %vm4950_vm5, %v545_v12, %v549_v57  ;;  %v2617_v23 = vor.u32 %v2616_v14, %v2612_v13  ;;  %v1077_v24 = vrot.slane %v963_v63, 5  ;;  %v4314_v25 = vrot.slane %v4272_v6, 9  ;;  %v428_v57 = vld [vmem:[%s4915_s22 + $0x60] sm:$0xf] }
  0x4a   : > { %2443 = vrot.lane.b32.xlu1 %v4778_v1, %s4855_s24  ;;  %v4106_v27 = vcombine.low %v540_v17, %v550_v22  ;;  %v2608_v28 = vrot.slane %v2607_v18, 4  ;;  %v2121_v29 = vrot.slane %v4273_v11, 5  ;;  %v2124_v30 = vrot.slane %v4274_v16, 5  ;;  %v417_v22 = vld [vmem:[%s4915_s22 + $0x34] sm:$0xf] }
  0x4b   : > { %v2618_v32 = vrot.slane %v2617_v23, 4  ;;  %v1078_v33 = vsel %vm4908_vm2, %v1076_v20, %v1077_v24  ;;  %v1578_v34 = vshrl.u32 %v4208_v21, 16  ;;  %v1581_v35 = vshll.u32 %v4208_v21, 16 }
  0x4c   : > { %v2613_v37 = vsel %vm4950_vm5, %v2608_v28, %v2612_v13  ;;  %v4138_v38 = vcombine.low %v1075_v19, %v1078_v33  ;;  %v2122_v39 = vsel %vm4908_vm2, %v4314_v25, %v2121_v29  ;;  %v2123_v40 = vrot.slane %v2121_v29, 4  ;;  %v416_v13 = vld [vmem:[%s4915_s22 + $0x30] sm:$0xf]  ;;  %v977_v33 = vld [vmem:[%s4915_s22 + $0x64] sm:$0xf] }
  0x4d   : > { %v2623_v43 = vsel %vm4950_vm5, %v2618_v32, %v2622_v15  ;;  %v1580_v45 = vrot.slane %v1578_v34, 4  ;;  %v1583_v46 = vrot.slane %v1581_v35, 5  ;;  %v1587_v47 = vshll.u32 %v4209_v26, 16  ;;  %v976_v32 = vld [vmem:[%s4915_s22 + $0x60] sm:$0xe] }
  0x4e   : > { %893 = vrot.lane.b32.xlu1 %v4106_v27, %s4859_s28  ;;  %v4441_v48 = vcombine.low %v2613_v37, %v2623_v43  ;;  %v2125_v49 = vsel %vm4908_vm2, %v2123_v40, %v2124_v30  ;;  %v1591_v50 = vshrl.u32 %v4209_v26, 16  ;;  %v1597_v51 = vshll.u32 %v4210_v31, 16  ;;  %v418_v26 = vld [vmem:[%s4915_s22 + $0x38] sm:$0x1]  ;;  %v4780_v35 = vld [vmem:[%s4915_s22 + $0x3c] sm:$0xff]  }
  0x4f   : > { %v4330_v53 = vcombine.low %v2122_v39, %v2125_v49  ;;  %v1584_v54 = vor.u32 %v1583_v46, %v1580_v45  ;;  %v1589_v55 = vrot.slane %v1587_v47, 5  ;;  %v2625_v56 = vshrl.u32 %v4400_v36, 16  ;;  %v978_v39 = vld [vmem:[%s4915_s22 + $0x68] sm:$0x1]  ;;  %v964_v40 = vld [vmem:[%s4915_s22 + $0x30] sm:$0xe] }
  0x50   : > { %2988 = vrot.lane.b32.xlu0 %v4441_v48, %s4860_s29  ;;  %v1593_v58 = vrot.slane %v1591_v50, 4  ;;  %v1599_v59 = vrot.slane %v1597_v51, 5  ;;  %v2628_v60 = vshll.u32 %v4400_v36, 16  ;;  %v2634_v61 = vshll.u32 %v4401_v41, 16  ;;  %v965_v45 = vld [vmem:[%s4915_s22 + $0x34] sm:$0xf] }
  0x51   : > { %v1585_v62 = vrot.slane %v1584_v54, 4  ;;  %v2627_v63 = vrot.slane %v2625_v56, 4  ;;  %v2638_v1 = vshrl.u32 %v4401_v41, 16  ;;  %v2644_v2 = vshll.u32 %v4402_v42, 16  ;;  %v966_v50 = vld [vmem:[%s4915_s22 + $0x38] sm:$0x1] }
  0x52   : > { %1398 = vrot.lane.b32.xlu1 %v4779_v44, %s4854_s23  ;;  %v1594_v4 = vor.u32 %v1593_v58, %v1589_v55  ;;  %v2630_v5 = vrot.slane %v2628_v60, 5  ;;  %v2636_v6 = vrot.slane %v2634_v61, 5  ;;  %v648_v8 = vshrl.u32 %v428_v57, 16 }
  0x53   : > { %v1590_v9 = vsel %vm4950_vm5, %v1585_v62, %v1589_v55  ;;  %v2640_v10 = vrot.slane %v2638_v1, 4  ;;  %v2646_v11 = vrot.slane %v2644_v2, 5  ;;  %v651_v12 = vshll.u32 %v428_v57, 16  ;;  %v4223_v1 = vld [vmem:[%s4915_s22 + $0x6c] sm:$0xf] }
  0x54   : > { %1217 = vrot.lane.b32.xlu0 %v4138_v38, %s4856_s25  ;;  %v1595_v14 = vrot.slane %v1594_v4, 4  ;;  %v2631_v15 = vor.u32 %v2630_v5, %v2627_v63  ;;  %v650_v16 = vrot.slane %v648_v8, 4  ;;  %v657_v17 = vshll.u32 %v429_v3, 16 }
  0x55   : > { %v2641_v18 = vor.u32 %v2640_v10, %v2636_v6  ;;  %v653_v19 = vrot.slane %v651_v12, 5  ;;  %v661_v20 = vshrl.u32 %v429_v3, 16  ;;  %v667_v21 = vshll.u32 %v430_v7, 16 }
  0x56   : > { %2264 = vrot.lane.b32.xlu1 %v4330_v53, %s4857_s26  ;;  %v1600_v23 = vsel %vm4950_vm5, %v1595_v14, %v1599_v59  ;;  %v2632_v24 = vrot.slane %v2631_v15, 4  ;;  %v659_v25 = vrot.slane %v657_v17, 5  ;;  %v552_v27 = vshrl.u32 %v416_v13, 16 }
  0x57   : > { %v4250_v28 = vcombine.low %v1590_v9, %v1600_v23  ;;  %v2642_v29 = vrot.slane %v2641_v18, 4  ;;  %v654_v30 = vor.u32 %v653_v19, %v650_v16  ;;  %v663_v31 = vrot.slane %v661_v20, 4  ;;  %v4211_v20 = vld [vmem:[%s4915_s22 + $0x3c] sm:$0xf] }
  0x58   : > { %v2637_v34 = vsel %vm4950_vm5, %v2632_v24, %v2636_v6  ;;  %v669_v36 = vrot.slane %v667_v21, 5  ;;  %v554_v37 = vrot.slane %v552_v27, 4  ;;  %v555_v38 = vshll.u32 %v416_v13, 16  ;;  %v4224_v6 = vld [vmem:[%s4915_s22 + $0x70] sm:$0xf] }
  0x59   : > { %1943 = vrot.lane.b32.xlu0 %v4250_v28, %s4858_s27  ;;  %v2647_v41 = vsel %vm4950_vm5, %v2642_v29, %v2646_v11  ;;  %v655_v42 = vrot.slane %v654_v30, 4  ;;  %v664_v43 = vor.u32 %v663_v31, %v659_v25  ;;  %v561_v44 = vshll.u32 %v417_v22, 16  ;;  %v4225_v13 = vld [vmem:[%s4915_s22 + $0x74] sm:$0x1]  ;;  %v4212_v21 = vld [vmem:[%s4915_s22 + $0x40] sm:$0xf] }
  0x5a   : > { %v4442_v46 = vcombine.low %v2637_v34, %v2647_v41  ;;  %v557_v47 = vrot.slane %v555_v38, 5  ;;  %v565_v48 = vshrl.u32 %v417_v22, 16  ;;  %v571_v49 = vshll.u32 %v418_v26, 16  ;;  %v4213_v26 = vld [vmem:[%s4915_s22 + $0x44] sm:$0x1]  ;;  %v4781_v28 = vld [vmem:[%s4915_s22 + $0x6c] sm:$0xff]  }
  0x5b   : > { %v660_v51 = vsel %vm4950_vm5, %v655_v42, %v659_v25  ;;  %v665_v53 = vrot.slane %v664_v43, 4  ;;  %v563_v54 = vrot.slane %v561_v44, 5  ;;  %v4127_v55 = vrot.slane %v976_v32, 9  ;;  %v4287_v32 = vld [vmem:[%s4915_s22 + $0x6c] sm:$0xe] }
  0x5c   : > { %2990 = vrot.lane.b32.xlu1 %v4442_v46, %s4860_s29  ;;  %v558_v56 = vor.u32 %v557_v47, %v554_v37  ;;  %v567_v57 = vrot.slane %v565_v48, 4  ;;  %v573_v58 = vrot.slane %v571_v49, 5  ;;  %v1109_v59 = vrot.slane %v977_v33, 5  ;;  %v4288_v37 = vld [vmem:[%s4915_s22 + $0x70] sm:$0xf] }
  0x5d   : > { %2445 = vrot.lane.b32.xlu0 %v4780_v35, %s4855_s24  ;;  %v670_v60 = vsel %vm4950_vm5, %v665_v53, %v669_v36  ;;  %v1112_v61 = vrot.slane %v978_v39, 5  ;;  %v4123_v62 = vrot.slane %v964_v40, 9  ;;  %v1081_v63 = vrot.slane %v965_v45, 5  ;;  %v4289_v42 = vld [vmem:[%s4915_s22 + $0x74] sm:$0x1] }
  0x5e   : > { %v4111_v2 = vcombine.low %v660_v51, %v670_v60  ;;  %v559_v3 = vrot.slane %v558_v56, 4  ;;  %v568_v4 = vor.u32 %v567_v57, %v563_v54  ;;  %v1110_v5 = vsel %vm4908_vm2, %v4127_v55, %v1109_v59  ;;  %v4275_v43 = vld [vmem:[%s4915_s22 + $0x3c] sm:$0xe]  ;;  %v4276_v48 = vld [vmem:[%s4915_s22 + $0x40] sm:$0xf] }
  0x5f   : > { %v1111_v7 = vrot.slane %v1109_v59, 4  ;;  %v1082_v8 = vsel %vm4908_vm2, %v4123_v62, %v1081_v63  ;;  %v1083_v9 = vrot.slane %v1081_v63, 4  ;;  %v1084_v10 = vrot.slane %v966_v50, 5  ;;  %v4415_v59 = vld [vmem:[%s4915_s22 + $0x78] sm:$0xf]  ;;  %v4782_v60 = vld [vmem:[%s4915_s22 + $0x3c] sm:$0xff]  }
  0x60   : > { %903 = vrot.lane.b32.xlu1 %v4111_v2, %s4859_s28  ;;  %v564_v11 = vsel %vm4950_vm5, %v559_v3, %v563_v54  ;;  %v569_v12 = vrot.slane %v568_v4, 4  ;;  %v1698_v14 = vshrl.u32 %v4223_v1, 16  ;;  %v1701_v15 = vshll.u32 %v4223_v1, 16  ;;  %v4277_v54 = vld [vmem:[%s4915_s22 + $0x44] sm:$0x1] }
  0x61   : > { %v1113_v16 = vsel %vm4908_vm2, %v1111_v7, %v1112_v61  ;;  %v1085_v17 = vsel %vm4908_vm2, %v1083_v9, %v1084_v10  ;;  %v1707_v18 = vshll.u32 %v4224_v6, 16  ;;  %v1711_v19 = vshrl.u32 %v4224_v6, 16  ;;  %v4416_v2 = vld [vmem:[%s4915_s22 + $0x7c] sm:$0xf]  ;;  %v4417_v7 = vld [vmem:[%s4915_s22 + $0x80] sm:$0x1] }
  0x62   : > { %v574_v22 = vsel %vm4950_vm5, %v569_v12, %v573_v58  ;;  %v4143_v23 = vcombine.low %v1110_v5, %v1113_v16  ;;  %v4139_v24 = vcombine.low %v1082_v8, %v1085_v17  ;;  %v1700_v25 = vrot.slane %v1698_v14, 4  ;;  %v4403_v16 = vld [vmem:[%s4915_s22 + $0x48] sm:$0xf] }
  0x63   : > { %v4107_v27 = vcombine.low %v564_v11, %v574_v22  ;;  %v1703_v29 = vrot.slane %v1701_v15, 5  ;;  %v1709_v30 = vrot.slane %v1707_v18, 5  ;;  %v1713_v31 = vrot.slane %v1711_v19, 4 }
  0x64   : > { %1227 = vrot.lane.b32.xlu1 %v4143_v23, %s4856_s25  ;;  %v1717_v33 = vshll.u32 %v4225_v13, 16  ;;  %v1602_v34 = vshrl.u32 %v4211_v20, 16  ;;  %v1605_v35 = vshll.u32 %v4211_v20, 16  ;;  %v1611_v36 = vshll.u32 %v4212_v21, 16 }
  0x65   : > { %895 = vrot.lane.b32.xlu0 %v4107_v27, %s4859_s28  ;;  %v1704_v38 = vor.u32 %v1703_v29, %v1700_v25  ;;  %v1714_v39 = vor.u32 %v1713_v31, %v1709_v30  ;;  %v1615_v40 = vshrl.u32 %v4212_v21, 16  ;;  %v1621_v41 = vshll.u32 %v4213_v26, 16  ;;  %v4404_v21 = vld [vmem:[%s4915_s22 + $0x4c] sm:$0xf]  ;;  %v4405_v29 = vld [vmem:[%s4915_s22 + $0x50] sm:$0x1] }
  0x66   : > { %v1719_v44 = vrot.slane %v1717_v33, 5  ;;  %v1604_v45 = vrot.slane %v1602_v34, 4  ;;  %v1607_v46 = vrot.slane %v1605_v35, 5  ;;  %v1613_v47 = vrot.slane %v1611_v36, 5  ;;  %v431_v36 = vld [vmem:[%s4915_s22 + $0x6c] sm:$0xf] }
  0x67   : > { %v1705_v49 = vrot.slane %v1704_v38, 4  ;;  %v1715_v50 = vrot.slane %v1714_v39, 4  ;;  %v1617_v51 = vrot.slane %v1615_v40, 4  ;;  %v1623_v53 = vrot.slane %v1621_v41, 5  ;;  %v432_v41 = vld [vmem:[%s4915_s22 + $0x70] sm:$0xf] }
  0x68   : > { %1408 = vrot.lane.b32.xlu1 %v4781_v28, %s4854_s23  ;;  %v1608_v55 = vor.u32 %v1607_v46, %v1604_v45  ;;  %v4319_v56 = vrot.slane %v4287_v32, 9  ;;  %v2156_v57 = vrot.slane %v4288_v37, 5  ;;  %v2159_v58 = vrot.slane %v4289_v42, 5  ;;  %v4783_v32 = vld [vmem:[%s4915_s22 + $0x78] sm:$0xff]  }
  0x69   : > { %1219 = vrot.lane.b32.xlu0 %v4139_v24, %s4856_s25  ;;  %v1710_v61 = vsel %vm4950_vm5, %v1705_v49, %v1709_v30  ;;  %v1720_v62 = vsel %vm4950_vm5, %v1715_v50, %v1719_v44  ;;  %v1618_v63 = vor.u32 %v1617_v51, %v1613_v47  ;;  %v4315_v1 = vrot.slane %v4275_v43, 9 }
  0x6a   : > { %v4255_v3 = vcombine.low %v1710_v61, %v1720_v62  ;;  %v1609_v4 = vrot.slane %v1608_v55, 4  ;;  %v2157_v5 = vsel %vm4908_vm2, %v4319_v56, %v2156_v57  ;;  %v2158_v6 = vrot.slane %v2156_v57, 4  ;;  %v419_v56 = vld [vmem:[%s4915_s22 + $0x3c] sm:$0xf]  ;;  %v4784_v57 = vld [vmem:[%s4915_s22 + $0x48] sm:$0xff]  }
  0x6b   : > { %v1619_v8 = vrot.slane %v1618_v63, 4  ;;  %v2128_v9 = vrot.slane %v4276_v48, 5  ;;  %v2131_v10 = vrot.slane %v4277_v54, 5  ;;  %v2745_v11 = vshrl.u32 %v4415_v59, 16  ;;  %v433_v48 = vld [vmem:[%s4915_s22 + $0x74] sm:$0x1] }
  0x6c   : > { %1953 = vrot.lane.b32.xlu1 %v4255_v3, %s4858_s27  ;;  %v1614_v12 = vsel %vm4950_vm5, %v1609_v4, %v1613_v47  ;;  %v2160_v13 = vsel %vm4908_vm2, %v2158_v6, %v2159_v58  ;;  %v2748_v14 = vshll.u32 %v4415_v59, 16  ;;  %v2754_v15 = vshll.u32 %v4416_v2, 16  ;;  %v420_v62 = vld [vmem:[%s4915_s22 + $0x40] sm:$0xf] }
  0x6d   : > { %1400 = vrot.lane.b32.xlu0 %v4782_v60, %s4854_s23  ;;  %v1624_v17 = vsel %vm4950_vm5, %v1619_v8, %v1623_v53  ;;  %v4335_v18 = vcombine.low %v2157_v5, %v2160_v13  ;;  %v2129_v19 = vsel %vm4908_vm2, %v4315_v1, %v2128_v9  ;;  %v2130_v20 = vrot.slane %v2128_v9, 4  ;;  %v979_v13 = vld [vmem:[%s4915_s22 + $0x6c] sm:$0xe] }
  0x6e   : > { %v4251_v22 = vcombine.low %v1614_v12, %v1624_v17  ;;  %v2747_v23 = vrot.slane %v2745_v11, 4  ;;  %v2750_v24 = vrot.slane %v2748_v14, 5  ;;  %v2756_v25 = vrot.slane %v2754_v15, 5  ;;  %v421_v12 = vld [vmem:[%s4915_s22 + $0x44] sm:$0x1] }
  0x6f   : > { %v2132_v26 = vsel %vm4908_vm2, %v2130_v20, %v2131_v10  ;;  %v2758_v27 = vshrl.u32 %v4416_v2, 16  ;;  %v2764_v28 = vshll.u32 %v4417_v7, 16  ;;  %v2649_v30 = vshrl.u32 %v4403_v16, 16 }
  0x70   : > { %2274 = vrot.lane.b32.xlu1 %v4335_v18, %s4857_s26  ;;  %v4331_v31 = vcombine.low %v2129_v19, %v2132_v26  ;;  %v2751_v33 = vor.u32 %v2750_v24, %v2747_v23  ;;  %v2652_v34 = vshll.u32 %v4403_v16, 16  ;;  %v2658_v35 = vshll.u32 %v4404_v21, 16  ;;  %v980_v18 = vld [vmem:[%s4915_s22 + $0x70] sm:$0xf]  ;;  %v981_v23 = vld [vmem:[%s4915_s22 + $0x74] sm:$0x1] }
  0x71   : > { %1945 = vrot.lane.b32.xlu0 %v4251_v22, %s4858_s27  ;;  %v2760_v37 = vrot.slane %v2758_v27, 4  ;;  %v2766_v38 = vrot.slane %v2764_v28, 5  ;;  %v2651_v39 = vrot.slane %v2649_v30, 4  ;;  %v2662_v40 = vshrl.u32 %v4404_v21, 16  ;;  %v967_v24 = vld [vmem:[%s4915_s22 + $0x3c] sm:$0xe] }
  0x72   : > { %v2752_v42 = vrot.slane %v2751_v33, 4  ;;  %v2654_v43 = vrot.slane %v2652_v34, 5  ;;  %v2660_v44 = vrot.slane %v2658_v35, 5  ;;  %v2668_v45 = vshll.u32 %v4405_v29, 16  ;;  %v968_v29 = vld [vmem:[%s4915_s22 + $0x40] sm:$0xf] }
  0x73   : > { %v2761_v46 = vor.u32 %v2760_v37, %v2756_v25  ;;  %v2664_v47 = vrot.slane %v2662_v40, 4  ;;  %v672_v49 = vshrl.u32 %v431_v36, 16  ;;  %v675_v50 = vshll.u32 %v431_v36, 16  ;;  %v969_v34 = vld [vmem:[%s4915_s22 + $0x44] sm:$0x1] }
  0x74   : > { %2455 = vrot.lane.b32.xlu1 %v4783_v32, %s4855_s24  ;;  %v2757_v51 = vsel %vm4950_vm5, %v2752_v42, %v2756_v25  ;;  %v2655_v53 = vor.u32 %v2654_v43, %v2651_v39  ;;  %v2670_v54 = vrot.slane %v2668_v45, 5  ;;  %v681_v55 = vshll.u32 %v432_v41, 16  ;;  %v4226_v39 = vld [vmem:[%s4915_s22 + $0x78] sm:$0xf] }
  0x75   : > { %2266 = vrot.lane.b32.xlu0 %v4331_v31, %s4857_s26  ;;  %v2762_v58 = vrot.slane %v2761_v46, 4  ;;  %v2665_v59 = vor.u32 %v2664_v47, %v2660_v44  ;;  %v674_v60 = vrot.slane %v672_v49, 4  ;;  %v677_v61 = vrot.slane %v675_v50, 5 }
  0x76   : > { %v2656_v63 = vrot.slane %v2655_v53, 4  ;;  %v683_v1 = vrot.slane %v681_v55, 5  ;;  %v685_v2 = vshrl.u32 %v432_v41, 16  ;;  %v691_v3 = vshll.u32 %v433_v48, 16  ;;  %v4227_v48 = vld [vmem:[%s4915_s22 + $0x7c] sm:$0xf] }
  0x77   : > { %v2767_v4 = vsel %vm4950_vm5, %v2762_v58, %v2766_v38  ;;  %v2666_v5 = vrot.slane %v2665_v59, 4  ;;  %v678_v6 = vor.u32 %v677_v61, %v674_v60  ;;  %v576_v7 = vshrl.u32 %v419_v56, 16  ;;  %v4214_v59 = vld [vmem:[%s4915_s22 + $0x48] sm:$0xf]  ;;  %v4215_v60 = vld [vmem:[%s4915_s22 + $0x4c] sm:$0xf] }
  0x78   : > { %v4447_v8 = vcombine.low %v2757_v51, %v2767_v4  ;;  %v2661_v9 = vsel %vm4950_vm5, %v2656_v63, %v2660_v44  ;;  %v687_v10 = vrot.slane %v685_v2, 4  ;;  %v693_v11 = vrot.slane %v691_v3, 5  ;;  %v4228_v51 = vld [vmem:[%s4915_s22 + $0x80] sm:$0x1]  ;;  %v4216_v2 = vld [vmem:[%s4915_s22 + $0x50] sm:$0x1] }
  0x79   : > { %2447 = vrot.lane.b32.xlu0 %v4784_v57, %s4855_s24  ;;  %v2671_v14 = vsel %vm4950_vm5, %v2666_v5, %v2670_v54  ;;  %v679_v15 = vrot.slane %v678_v6, 4  ;;  %v578_v16 = vrot.slane %v576_v7, 4  ;;  %v579_v17 = vshll.u32 %v419_v56, 16  ;;  %v4785_v5 = vld [vmem:[%s4915_s22 + $0x78] sm:$0xff]  }
  0x7a   : > { %3000 = vrot.lane.b32.xlu1 %v4447_v8, %s4860_s29  ;;  %v4443_v19 = vcombine.low %v2661_v9, %v2671_v14  ;;  %v688_v20 = vor.u32 %v687_v10, %v683_v1  ;;  %v585_v21 = vshll.u32 %v420_v62, 16  ;;  %v589_v22 = vshrl.u32 %v420_v62, 16  ;;  %v4290_v8 = vld [vmem:[%s4915_s22 + $0x78] sm:$0xe]  ;;  %v4291_v9 = vld [vmem:[%s4915_s22 + $0x7c] sm:$0xf] }
  0x7b   : > { %v684_v25 = vsel %vm4950_vm5, %v679_v15, %v683_v1  ;;  %v581_v26 = vrot.slane %v579_v17, 5  ;;  %v595_v27 = vshll.u32 %v421_v12, 16  ;;  %v4128_v28 = vrot.slane %v979_v13, 9  ;;  %v4292_v14 = vld [vmem:[%s4915_s22 + $0x80] sm:$0x1] }
  0x7c   : > { %v689_v30 = vrot.slane %v688_v20, 4  ;;  %v587_v31 = vrot.slane %v585_v21, 5  ;;  %v591_v32 = vrot.slane %v589_v22, 4  ;;  %v1116_v33 = vrot.slane %v980_v18, 5  ;;  %v4278_v15 = vld [vmem:[%s4915_s22 + $0x48] sm:$0xe] }
  0x7d   : > { %2992 = vrot.lane.b32.xlu0 %v4443_v19, %s4860_s29  ;;  %v582_v35 = vor.u32 %v581_v26, %v578_v16  ;;  %v597_v36 = vrot.slane %v595_v27, 5  ;;  %v1119_v37 = vrot.slane %v981_v23, 5  ;;  %v4124_v38 = vrot.slane %v967_v24, 9  ;;  %v4279_v20 = vld [vmem:[%s4915_s22 + $0x4c] sm:$0xf] }
  0x7e   : > { %v694_v40 = vsel %vm4950_vm5, %v689_v30, %v693_v11  ;;  %v592_v41 = vor.u32 %v591_v32, %v587_v31  ;;  %v1117_v42 = vsel %vm4908_vm2, %v4128_v28, %v1116_v33  ;;  %v1118_v43 = vrot.slane %v1116_v33, 4  ;;  %v4280_v33 = vld [vmem:[%s4915_s22 + $0x50] sm:$0x1] }
  0x7f   : > { %v4112_v44 = vcombine.low %v684_v25, %v694_v40  ;;  %v583_v45 = vrot.slane %v582_v35, 4  ;;  %v1088_v46 = vrot.slane %v968_v29, 5  ;;  %v1091_v47 = vrot.slane %v969_v34, 5  ;;  %v4786_v34 = vld [vmem:[%s4915_s22 + $0x48] sm:$0xff]  }
  0x80   : > { %v593_v49 = vrot.slane %v592_v41, 4  ;;  %v1120_v50 = vsel %vm4908_vm2, %v1118_v43, %v1119_v37  ;;  %v1722_v53 = vshrl.u32 %v4226_v39, 16  ;;  %v1725_v54 = vshll.u32 %v4226_v39, 16  ;;  %v4789_v39 = vld [vmem:[%s6083_s1] sm:$0xff]  }
  0x81   : > { %905 = vrot.lane.b32.xlu1 %v4112_v44, %s4859_s28  ;;  %v588_v55 = vsel %vm4950_vm5, %v583_v45, %v587_v31  ;;  %v4144_v56 = vcombine.low %v1117_v42, %v1120_v50  ;;  %v1089_v57 = vsel %vm4908_vm2, %v4124_v38, %v1088_v46  ;;  %v1090_v58 = vrot.slane %v1088_v46, 4  ;;  %v4418_v44 = vld [vmem:[%s4915_s22 + $0x84] sm:$0xf]  ;;  %v4419_v45 = vld [vmem:[%s4915_s22 + $0x88] sm:$0xf] }
  0x82   : > { %v598_v61 = vsel %vm4950_vm5, %v593_v49, %v597_v36  ;;  %v1724_v62 = vrot.slane %v1722_v53, 4  ;;  %v1727_v63 = vrot.slane %v1725_v54, 5  ;;  %v1731_v1 = vshll.u32 %v4227_v48, 16  ;;  %v4420_v49 = vld [vmem:[%s4915_s22 + $0x8c] sm:$0x1] }
  0x83   : > { %v4108_v3 = vcombine.low %v588_v55, %v598_v61  ;;  %v1092_v4 = vsel %vm4908_vm2, %v1090_v58, %v1091_v47  ;;  %v1735_v6 = vshrl.u32 %v4227_v48, 16  ;;  %v1741_v7 = vshll.u32 %v4228_v51, 16  ;;  %v4790_v58 = vld [vmem:[%s6083_s1 + $0x8] sm:$0xff]  }
  0x84   : > { %v4140_v10 = vcombine.low %v1089_v57, %v1092_v4  ;;  %v1728_v11 = vor.u32 %v1727_v63, %v1724_v62  ;;  %v1733_v12 = vrot.slane %v1731_v1, 5  ;;  %v1626_v13 = vshrl.u32 %v4214_v59, 16  ;;  %v4407_v63 = vld [vmem:[%s4915_s22 + $0x58] sm:$0xf] }
  0x85   : > { %897 = vrot.lane.b32.xlu0 %v4108_v3, %s4859_s28  ;;  %1229 = vrot.lane.b32.xlu1 %v4144_v56, %s4856_s25  ;;  %v1737_v16 = vrot.slane %v1735_v6, 4  ;;  %v1743_v17 = vrot.slane %v1741_v7, 5  ;;  %v1629_v18 = vshll.u32 %v4214_v59, 16  ;;  %v1635_v19 = vshll.u32 %v4215_v60, 16  ;;  %v4406_v56 = vld [vmem:[%s4915_s22 + $0x54] sm:$0xf]  ;;  %v5254_v57 = vpop.permute.xlu1 %1392 }
  0x86   : > { %v1729_v21 = vrot.slane %v1728_v11, 4  ;;  %v1628_v22 = vrot.slane %v1626_v13, 4  ;;  %v1639_v23 = vshrl.u32 %v4215_v60, 16  ;;  %v1645_v24 = vshll.u32 %v4216_v2, 16  ;;  %v4408_v6 = vld [vmem:[%s4915_s22 + $0x5c] sm:$0x1] }
  0x87   : > { %v1738_v25 = vor.u32 %v1737_v16, %v1733_v12  ;;  %v1631_v26 = vrot.slane %v1629_v18, 5  ;;  %v1637_v27 = vrot.slane %v1635_v19, 5  ;;  %v4320_v28 = vrot.slane %v4290_v8, 9  ;;  %v434_v11 = vld [vmem:[%s4915_s22 + $0x78] sm:$0xf] }
  0x88   : > { %v1734_v29 = vsel %vm4950_vm5, %v1729_v21, %v1733_v12  ;;  %v1641_v30 = vrot.slane %v1639_v23, 4  ;;  %v1647_v31 = vrot.slane %v1645_v24, 5  ;;  %v2163_v32 = vrot.slane %v4291_v9, 5  ;;  %v4787_v21 = vld [vmem:[%s4915_s22 + $0x84] sm:$0xff]  }
  0x89   : > { %1221 = vrot.lane.b32.xlu0 %v4140_v10, %s4856_s25  ;;  %1410 = vrot.lane.b32.xlu1 %v4785_v5, %s4854_s23  ;;  %v1739_v35 = vrot.slane %v1738_v25, 4  ;;  %v1632_v36 = vor.u32 %v1631_v26, %v1628_v22  ;;  %v2166_v37 = vrot.slane %v4292_v14, 5  ;;  %v4316_v38 = vrot.slane %v4278_v15, 9  ;;  %v435_v26 = vld [vmem:[%s4915_s22 + $0x7c] sm:$0xf] }
  0x8a   : > { %v1642_v40 = vor.u32 %v1641_v30, %v1637_v27  ;;  %v2164_v41 = vsel %vm4908_vm2, %v4320_v28, %v2163_v32  ;;  %v2165_v42 = vrot.slane %v2163_v32, 4  ;;  %v2135_v43 = vrot.slane %v4279_v20, 5  ;;  %v4791_v20 = vld [vmem:[%s6083_s1 + $0x10] sm:$0xff]   ;;  %v436_v32 = vld [vmem:[%s4915_s22 + $0x80] sm:$0x1] }
  0x8b   : > { %v1744_v46 = vsel %vm4950_vm5, %v1739_v35, %v1743_v17  ;;  %v1633_v47 = vrot.slane %v1632_v36, 4  ;;  %v2138_v48 = vrot.slane %v4280_v33, 5  ;;  %v4861_v55 = vmov 0   ;;  %v4788_v28 = vld [vmem:[%s4915_s22 + $0x54] sm:$0xff]  }
  0x8c   : > { %v4256_v50 = vcombine.low %v1734_v29, %v1744_v46  ;;  %v1643_v51 = vrot.slane %v1642_v40, 4  ;;  %v2167_v53 = vsel %vm4908_vm2, %v2165_v42, %v2166_v37  ;;  %v5250_v54 = vsel %vm4908_vm2, %v4316_v38, %v2135_v43  ;;  %3489 = vmatprep.subr.bf16.mxu0 %v4861_v55  ;;  %4722 = vmatprep.subr.bf16.mxu1 %v4861_v55  ;;  %v5292_v40 = vld [vmem:[%s4915_s22 + $0x4c] sm:$0xf] }
  0x8d   : > { %1402 = vrot.lane.b32.xlu0 %v4786_v34, %s4854_s23  ;;  %v1638_v59 = vsel %vm4950_vm5, %v1633_v47, %v1637_v27  ;;  %v4336_v60 = vcombine.low %v2164_v41, %v2167_v53  ;;  %v2137_v61 = vrot.slane %v2135_v43, 4  ;;  %3490 = vmatpush1.bf16.msra.mxu0 %v4789_v39  ;;  %v2769_v62 = vshrl.u32 %v4418_v44, 16  ;;  %v5264_v1 = vpop.permute.xlu0 %1211  ;;  %v5284_v27 = vpop.permute.xlu1 %2439  ;;  %v422_v34 = vld [vmem:[%s4915_s22 + $0x48] sm:$0xf] }
  0x8e   : > { %1955 = vrot.lane.b32.xlu1 %v4256_v50, %s4858_s27  ;;  %v1648_v2 = vsel %vm4950_vm5, %v1643_v51, %v1647_v31  ;;  %v2772_v3 = vshll.u32 %v4418_v44, 16  ;;  %v2778_v4 = vshll.u32 %v4419_v45, 16  ;;  %v2782_v5 = vshrl.u32 %v4419_v45, 16  ;;  %3491 = vmatprep.subr.bf16.mxu0 %v4861_v55  ;;  %v4792_v45 = vld [vmem:[%s6083_s1 + $0x18] sm:$0xff]  }
  0x8f   : > { %v4252_v7 = vcombine.low %v1638_v59, %v1648_v2  ;;  %v2139_v8 = vsel %vm4908_vm2, %v2137_v61, %v2138_v48  ;;  %v2771_v9 = vrot.slane %v2769_v62, 4  ;;  %v2788_v10 = vshll.u32 %v4420_v49, 16  ;;  %4731 = vmatpush1.bf16.msra.mxu1 %v4789_v39  ;;  %v4795_v59 = vld [vmem:[%s6083_s1 + $0x20] sm:$0xff]  }
  0x90   : > { %v4332_v12 = vcombine.low %v5250_v54, %v2139_v8  ;;  %v2774_v13 = vrot.slane %v2772_v3, 5  ;;  %v2780_v14 = vrot.slane %v2778_v4, 5  ;;  %v2784_v15 = vrot.slane %v2782_v5, 4  ;;  %4723 = vmatprep.subr.bf16.mxu1 %v4861_v55 }
  0x91   : > { %1947 = vrot.lane.b32.xlu0 %v4252_v7, %s4858_s27  ;;  %v2790_v16 = vrot.slane %v2788_v10, 5  ;;  %v2673_v17 = vshrl.u32 %v4406_v56, 16  ;;  %v2676_v18 = vshll.u32 %v4406_v56, 16  ;;  %v2682_v19 = vshll.u32 %v4407_v63, 16  ;;  %3492 = vmatpush1.bf16.msra.mxu0 %v4790_v58  ;;  %v5289_v35 = vpop.permute.xlu0 %2258  ;;  %v424_v56 = vld [vmem:[%s4915_s22 + $0x50] sm:$0x1]  ;;  %v5310_v2 = vpop.permute.xlu1 %1394 }
  0x92   : > { %2276 = vrot.lane.b32.xlu1 %v4336_v60, %s4857_s26  ;;  %v2775_v22 = vor.u32 %v2774_v13, %v2771_v9  ;;  %v2785_v23 = vor.u32 %v2784_v15, %v2780_v14  ;;  %v2686_v24 = vshrl.u32 %v4407_v63, 16  ;;  %v2692_v25 = vshll.u32 %v4408_v6, 16  ;;  %3493 = vmatprep.subr.bf16.mxu0 %v4861_v55  ;;  %v983_v7 = vld [vmem:[%s4915_s22 + $0x7c] sm:$0xf]  ;;  %v984_v13 = vld [vmem:[%s4915_s22 + $0x80] sm:$0x1] }
  0x93   : > { %v2675_v29 = vrot.slane %v2673_v17, 4  ;;  %v2678_v30 = vrot.slane %v2676_v18, 5  ;;  %v2684_v31 = vrot.slane %v2682_v19, 5  ;;  %v696_v33 = vshrl.u32 %v434_v11, 16  ;;  %4732 = vmatpush1.bf16.msra.mxu1 %v4790_v58  ;;  %v982_v58 = vld [vmem:[%s4915_s22 + $0x78] sm:$0xe] }
  0x94   : > { %v2776_v36 = vrot.slane %v2775_v22, 4  ;;  %v2786_v37 = vrot.slane %v2785_v23, 4  ;;  %v2688_v38 = vrot.slane %v2686_v24, 4  ;;  %v2694_v39 = vrot.slane %v2692_v25, 5  ;;  %4724 = vmatprep.subr.bf16.mxu1 %v4861_v55  ;;  %v971_v19 = vld [vmem:[%s4915_s22 + $0x4c] sm:$0xf] }
  0x95   : > { %2268 = vrot.lane.b32.xlu0 %v4332_v12, %s4857_s26  ;;  %v2679_v41 = vor.u32 %v2678_v30, %v2675_v29  ;;  %v698_v42 = vrot.slane %v696_v33, 4  ;;  %v699_v43 = vshll.u32 %v434_v11, 16  ;;  %v705_v44 = vshll.u32 %v435_v26, 16  ;;  %3494 = vmatpush1.bf16.msra.mxu0 %v4791_v20  ;;  %v5318_v8 = vpop.permute.xlu0 %1213 }
  0x96   : > { %2457 = vrot.lane.b32.xlu1 %v4787_v21, %s4855_s24  ;;  %v2781_v46 = vsel %vm4950_vm5, %v2776_v36, %v2780_v14  ;;  %v2791_v47 = vsel %vm4950_vm5, %v2786_v37, %v2790_v16  ;;  %v2689_v48 = vor.u32 %v2688_v38, %v2684_v31  ;;  %v709_v49 = vshrl.u32 %v435_v26, 16  ;;  %3495 = vmatprep.subr.bf16.mxu0 %v4861_v55  ;;  %v970_v14 = vld [vmem:[%s4915_s22 + $0x48] sm:$0xe]  ;;  %v4229_v26 = vld [vmem:[%s4915_s22 + $0x84] sm:$0xf]  ;;  %v5344_v38 = vpop.permute.xlu1 %1937 }
  0x97   : > { %v4448_v50 = vcombine.low %v2781_v46, %v2791_v47  ;;  %v2680_v51 = vrot.slane %v2679_v41, 4  ;;  %v701_v53 = vrot.slane %v699_v43, 5  ;;  %v707_v54 = vrot.slane %v705_v44, 5  ;;  %4733 = vmatpush1.bf16.msra.mxu1 %v4791_v20  ;;  %v5330_v20 = vld [vmem:[%s4915_s22 + $0x50] sm:$0x1]  ;;  %v4797_v21 = vld [vmem:[%s6083_s1 + $0x28] sm:$0xff]  }
  0x98   : > { %v2690_v60 = vrot.slane %v2689_v48, 4  ;;  %v711_v61 = vrot.slane %v709_v49, 4  ;;  %v715_v62 = vshll.u32 %v436_v32, 16  ;;  %v600_v63 = vshrl.u32 %v422_v34, 16  ;;  %4725 = vmatprep.subr.bf16.mxu1 %v4861_v55  ;;  %v4230_v32 = vld [vmem:[%s4915_s22 + $0x88] sm:$0xf] }
  0x99   : > { %2449 = vrot.lane.b32.xlu0 %v4788_v28, %s4855_s24  ;;  %v2685_v3 = vsel %vm4950_vm5, %v2680_v51, %v2684_v31  ;;  %v702_v4 = vor.u32 %v701_v53, %v698_v42  ;;  %v603_v5 = vshll.u32 %v422_v34, 16  ;;  %v609_v6 = vshll.u32 %v5292_v40, 16  ;;  %3496 = vmatpush1.bf16.msra.mxu0 %v4792_v45  ;;  %v4799_v48 = vld [vmem:[%s6083_s1 + $0x30] sm:$0xff]   ;;  %v4231_v51 = vld [vmem:[%s4915_s22 + $0x8c] sm:$0x1] }
  0x9a   : > { %3002 = vrot.lane.b32.xlu1 %v4448_v50, %s4860_s29  ;;  %v2695_v9 = vsel %vm4950_vm5, %v2690_v60, %v2694_v39  ;;  %v712_v10 = vor.u32 %v711_v61, %v707_v54  ;;  %v717_v11 = vrot.slane %v715_v62, 5  ;;  %v602_v12 = vrot.slane %v600_v63, 4  ;;  %3497 = vmatprep.subr.bf16.mxu0 %v4861_v55  ;;  %v4793_v62 = vld [vmem:[%s4915_s22 + $0x84] sm:$0xff]  }
  0x9b   : > { %v4444_v15 = vcombine.low %v2685_v3, %v2695_v9  ;;  %v703_v16 = vrot.slane %v702_v4, 4  ;;  %v605_v17 = vrot.slane %v603_v5, 5  ;;  %v5326_v18 = vrot.slane %v609_v6, 5  ;;  %4734 = vmatpush1.bf16.msra.mxu1 %v4792_v45  ;;  %v4218_v6 = vld [vmem:[%s4915_s22 + $0x58] sm:$0xf]  ;;  %v4798_v9 = vld [vmem:[%s4915_s22] sm:$0xff]  }
  0x9c   : > { %v713_v22 = vrot.slane %v712_v10, 4  ;;  %v613_v23 = vshrl.u32 %v5292_v40, 16  ;;  %v619_v24 = vshll.u32 %v424_v56, 16  ;;  %v4129_v25 = vrot.slane %v982_v58, 9  ;;  %4726 = vmatprep.subr.bf16.mxu1 %v4861_v55  ;;  %v4217_v56 = vld [vmem:[%s4915_s22 + $0x54] sm:$0xf] }
  0x9d   : > { %2994 = vrot.lane.b32.xlu0 %v4444_v15, %s4860_s29  ;;  %v708_v28 = vsel %vm4950_vm5, %v703_v16, %v707_v54  ;;  %v606_v29 = vor.u32 %v605_v17, %v602_v12  ;;  %v1123_v30 = vrot.slane %v983_v7, 5  ;;  %v1126_v31 = vrot.slane %v984_v13, 5  ;;  %3498 = vmatpush1.bf16.msra.mxu0 %v4795_v59  ;;  %v4796_v7 = vld [vmem:[%s4915_s22 + $0xc] sm:$0xff]   ;;  %v5379_v10 = vld [vmem:[%s6083_s1 + $0x38] sm:$0xff]   ;;  %v4807_v12 = vld [vmem:[%s4915_s22 + $0x24] sm:$0xff]   ;;  %388 = vst.msk [vmem:[#allocation2] sm:$0xff] %vm387_vm6, %v4798_v9 }
  0x9e   : > { %v718_v33 = vsel %vm4950_vm5, %v713_v22, %v717_v11  ;;  %v615_v34 = vrot.slane %v613_v23, 4  ;;  %v621_v36 = vrot.slane %v619_v24, 5  ;;  %v4125_v37 = vrot.slane %v970_v14, 9  ;;  %3499 = vmatprep.subr.bf16.mxu0 %v4861_v55  ;;  %v4804_v11 = vld [vmem:[%s4915_s22 + $0x18] sm:$0xff]   ;;  %v4810_v13 = vld [vmem:[%s4915_s22 + $0x60] sm:$0xff]   ;;  %v4811_v22 = vld [vmem:[%s4915_s22 + $0x30] sm:$0xff]  }
  0x9f   : > { %v4113_v39 = vcombine.low %v708_v28, %v718_v33  ;;  %v607_v40 = vrot.slane %v606_v29, 4  ;;  %v1124_v41 = vsel %vm4908_vm2, %v4129_v25, %v1123_v30  ;;  %v1125_v42 = vrot.slane %v1123_v30, 4  ;;  %v5349_v43 = vpop.permute.xlu0 %887  ;;  %4735 = vmatpush1.bf16.msra.mxu1 %v4795_v59  ;;  %v4219_v17 = vld [vmem:[%s4915_s22 + $0x5c] sm:$0x1]  ;;  %v4293_v28 = vld [vmem:[%s4915_s22 + $0x84] sm:$0xe] }
  0xa0   : > { %v616_v44 = vor.u32 %v615_v34, %v5326_v18  ;;  %v1095_v45 = vrot.slane %v971_v19, 5  ;;  %v1098_v46 = vrot.slane %v5330_v20, 5  ;;  %v1746_v47 = vshrl.u32 %v4229_v26, 16  ;;  %4727 = vmatprep.subr.bf16.mxu1 %v4861_v55  ;;  %v890_v19 = vpop.permute.xlu1 %889  ;;  %v4294_v29 = vld [vmem:[%s4915_s22 + $0x88] sm:$0xf]  ;;  %v4817_v30 = vld [vmem:[%s4915_s22 + $0x3c] sm:$0xff]  }
  0xa1   : > { %907 = vrot.lane.b32.xlu1 %v4113_v39, %s4859_s28  ;;  %v612_v49 = vsel %vm4950_vm5, %v607_v40, %v5326_v18  ;;  %v1127_v50 = vsel %vm4908_vm2, %v1125_v42, %v1126_v31  ;;  %v1749_v53 = vshll.u32 %v4229_v26, 16  ;;  %v1755_v54 = vshll.u32 %v4230_v32, 16  ;;  %3500 = vmatpush1.bf16.msra.mxu0 %v4797_v21  ;;  %389 = vst.msk [vmem:[#allocation2 + $0x10] sm:$0xff] %vm387_vm6, %v4796_v7 }
  0xa2   : > { %v617_v58 = vrot.slane %v616_v44, 4  ;;  %v4145_v59 = vcombine.low %v1124_v41, %v1127_v50  ;;  %v5367_v60 = vsel %vm4908_vm2, %v4125_v37, %v1095_v45  ;;  %v1097_v61 = vrot.slane %v1095_v45, 4  ;;  %3501 = vmatprep.subr.bf16.mxu0 %v4861_v55  ;;  %v5411_v45 = vld [vmem:[%s4915_s22 + $0x54] sm:$0xe]  ;;  %390 = vst.msk [vmem:[#allocation2 + $0x20] sm:$0xff] %vm387_vm6, %v4804_v11  ;;  %391 = vst.msk [vmem:[#allocation2 + $0x30] sm:$0xff] %vm387_vm6, %v4807_v12 }
  0xa3   : > { %v1748_v63 = vrot.slane %v1746_v47, 4  ;;  %v1751_v3 = vrot.slane %v1749_v53, 5  ;;  %v5371_v4 = vrot.slane %v1755_v54, 5  ;;  %v1759_v5 = vshrl.u32 %v4230_v32, 16  ;;  %4736 = vmatpush1.bf16.msra.mxu1 %v4797_v21  ;;  %v4816_v21 = vld [vmem:[%s4915_s22 + $0x6c] sm:$0xff]   ;;  %v4803_v54 = vld [vmem:[%s6083_s1 + $0x40] sm:$0xff]  }
  0xa4   : > { %v622_v14 = vsel %vm4950_vm5, %v617_v58, %v621_v36  ;;  %v5388_v15 = vsel %vm4908_vm2, %v1097_v61, %v1098_v46  ;;  %v1765_v16 = vshll.u32 %v4231_v51, 16  ;;  %v1650_v18 = vshrl.u32 %v4217_v56, 16  ;;  %v5391_v20 = vpop.permute.xlu0 %2984  ;;  %4728 = vmatprep.subr.bf16.mxu1 %v4861_v55  ;;  %v5403_v36 = vld [vmem:[%s4915_s22 + $0x8c] sm:$0x1]  ;;  %v5413_v46 = vpop.permute.xlu1 %2260  ;;  %v4282_v51 = vld [vmem:[%s4915_s22 + $0x58] sm:$0xf] }
  0xa5   : > { %v4109_v23 = vcombine.low %v612_v49, %v622_v14  ;;  %1231 = vrot.lane.b32.xlu1 %v4145_v59, %s4856_s25  ;;  %v4141_v24 = vcombine.low %v5367_v60, %v5388_v15  ;;  %v1752_v25 = vor.u32 %v1751_v3, %v1748_v63  ;;  %v1761_v26 = vrot.slane %v1759_v5, 4  ;;  %3502 = vmatpush1.bf16.msra.mxu0 %v4799_v48  ;;  %v4283_v61 = vld [vmem:[%s4915_s22 + $0x5c] sm:$0x1]  ;;  %v4423_v12 = vld [vmem:[%s4915_s22 + $0x98] sm:$0x1] }
  0xa6   : > { %v1767_v31 = vrot.slane %v1765_v16, 5  ;;  %v1652_v32 = vrot.slane %v1650_v18, 4  ;;  %v1653_v33 = vshll.u32 %v4217_v56, 16  ;;  %v1659_v34 = vshll.u32 %v4218_v6, 16  ;;  %3503 = vmatprep.subr.bf16.mxu0 %v4861_v55  ;;  %396 = vst.msk [vmem:[#allocation2 + $0x80] sm:$0xff] %vm387_vm6, %v4810_v13  ;;  %392 = vst.msk [vmem:[#allocation2 + $0x40] sm:$0xff] %vm387_vm6, %v4811_v22 }
  0xa7   : > { %899 = vrot.lane.b32.xlu0 %v4109_v23, %s4859_s28  ;;  %v1753_v37 = vrot.slane %v1752_v25, 4  ;;  %v1762_v39 = vor.u32 %v1761_v26, %v5371_v4  ;;  %v1663_v40 = vshrl.u32 %v4218_v6, 16  ;;  %v1669_v41 = vshll.u32 %v4219_v17, 16  ;;  %4737 = vmatpush1.bf16.msra.mxu1 %v4799_v48  ;;  %397 = vst.msk [vmem:[#allocation2 + $0x90] sm:$0xff] %vm387_vm6, %v4816_v21  ;;  %393 = vst.msk [vmem:[#allocation2 + $0x50] sm:$0xff] %vm387_vm6, %v4817_v30  ;;  %v4794_v56 = vld [vmem:[%s4915_s22 + $0x54] sm:$0xff]  }
  0xa8   : > { %v1655_v42 = vrot.slane %v1653_v33, 5  ;;  %v5408_v44 = vrot.slane %v1659_v34, 5  ;;  %4729 = vmatprep.subr.bf16.mxu1 %v4861_v55  ;;  %937 = vst.msk [vmem:[#allocation2 + $0x10] sm:$0xff] %vm935_vm7, %v890_v19  ;;  %v4321_v59 = vrot.slane %v4293_v28, 9  ;;  %v2170_v60 = vrot.slane %v4294_v29, 5  ;;  %936 = vst.msk [vmem:[#allocation2] sm:$0xff] %vm935_vm7, %v5349_v43 }
  0xa9   : > { %1412 = vrot.lane.b32.xlu1 %v4793_v62, %s4854_s23  ;;  %v1758_v47 = vsel %vm4950_vm5, %v1753_v37, %v5371_v4  ;;  %v1763_v49 = vrot.slane %v1762_v39, 4  ;;  %v1665_v48 = vrot.slane %v1663_v40, 4  ;;  %v5420_v50 = vrot.slane %v1669_v41, 5  ;;  %3504 = vmatpush1.bf16.msra.mxu0 %v5379_v10  ;;  %v1940_v53 = vpop.permute.xlu0 %1939  ;;  %1261 = vst.msk [vmem:[#allocation2 + $0x10] sm:$0xff] %vm1259_vm8, %v5318_v8  ;;  %1260 = vst.msk [vmem:[#allocation2] sm:$0xff] %vm1259_vm8, %v5264_v1  ;;  %v4822_v22 = vld [vmem:[%s4915_s22 + $0x78] sm:$0xff]  }
  0xaa   : > { %v1656_v58 = vor.u32 %v1655_v42, %v1652_v32  ;;  %3505 = vmatprep.subr.bf16.mxu0 %v4861_v55  ;;  %v2173_v3 = vrot.slane %v5403_v36, 5  ;;  %v2171_v5 = vsel %vm4908_vm2, %v4321_v59, %v2170_v60  ;;  %v2172_v6 = vrot.slane %v2170_v60, 4  ;;  %1441 = vst.msk [vmem:[#allocation2] sm:$0xff] %vm1440_vm9, %v5254_v57  ;;  %1442 = vst.msk [vmem:[#allocation2 + $0x10] sm:$0xff] %vm1440_vm9, %v5310_v2  ;;  %v4409_v18 = vld [vmem:[%s4915_s22 + $0x60] sm:$0xf] }
  0xab   : > { %1223 = vrot.lane.b32.xlu0 %v4141_v24, %s4856_s25  ;;  %v1768_v62 = vsel %vm4950_vm5, %v1763_v49, %v1767_v31  ;;  %v1666_v63 = vor.u32 %v1665_v48, %v5408_v44  ;;  %4738 = vmatpush1.bf16.msra.mxu1 %v5379_v10  ;;  %v4317_v1 = vrot.slane %v5411_v45, 9  ;;  %v2142_v7 = vrot.slane %v4282_v51, 5  ;;  %v4421_v10 = vld [vmem:[%s4915_s22 + $0x90] sm:$0xf]  ;;  %1986 = vst.msk [vmem:[#allocation2] sm:$0xff] %vm1985_vm10, %v5344_v38  ;;  %v4823_v25 = vld [vmem:[%s4915_s22 + $0x48] sm:$0xff]  }
  0xac   : > { %v4257_v43 = vcombine.low %v1758_v47, %v1768_v62  ;;  %v1657_v4 = vrot.slane %v1656_v58, 4  ;;  %4730 = vmatprep.subr.bf16.mxu1 %v4861_v55  ;;  %v2145_v9 = vrot.slane %v4283_v61, 5  ;;  %v2174_v2 = vsel %vm4908_vm2, %v2172_v6, %v2173_v3  ;;  %v4422_v55 = vld [vmem:[%s4915_s22 + $0x94] sm:$0xf]  ;;  %1987 = vst.msk [vmem:[#allocation2 + $0x10] sm:$0xff] %vm1985_vm10, %v1940_v53 }
  0xad   : > { %v1667_v8 = vrot.slane %v1666_v63, 4  ;;  %3506 = vmatpush1.bf16.msra.mxu0 %v4803_v54  ;;  %v2442_v11 = vpop.permute.xlu0 %2441  ;;  %v4337_v15 = vcombine.low %v2171_v5, %v2174_v2  ;;  %v2143_v16 = vsel %vm4908_vm2, %v4317_v1, %v2142_v7  ;;  %v2144_v17 = vrot.slane %v2142_v7, 4  ;;  %v4410_v19 = vld [vmem:[%s4915_s22 + $0x64] sm:$0xf]  ;;  %2307 = vst.msk [vmem:[#allocation2] sm:$0xff] %vm2306_vm11, %v5289_v35  ;;  %2308 = vst.msk [vmem:[#allocation2 + $0x10] sm:$0xff] %vm2306_vm11, %v5413_v46 }
  0xae   : > { %1957 = vrot.lane.b32.xlu1 %v4257_v43, %s4858_s27  ;;  %v1662_v57 = vsel %vm4950_vm5, %v1657_v4, %v5408_v44  ;;  %v2987_v13 = vpop.permute.xlu1 %2986  ;;  %v2793_v23 = vshrl.u32 %v4421_v10, 16  ;;  %v4411_v24 = vld [vmem:[%s4915_s22 + $0x68] sm:$0x1]  ;;  %2488 = vst.msk [vmem:[#allocation2] sm:$0xff] %vm2487_vm12, %v5284_v27  ;;  %v2796_v26 = vshll.u32 %v4421_v10, 16  ;;  %v2802_v28 = vshll.u32 %v4422_v55, 16 }
  0xaf   : > { %1404 = vrot.lane.b32.xlu0 %v4794_v56, %s4854_s23  ;;  %v1672_v14 = vsel %vm4950_vm5, %v1667_v8, %v5420_v50  ;;  %4739 = vmatpush1.bf16.msra.mxu1 %v4803_v54  ;;  %v2146_v38 = vsel %vm4908_vm2, %v2144_v17, %v2145_v9  ;;  %v2806_v29 = vshrl.u32 %v4422_v55, 16  ;;  %2489 = vst.msk [vmem:[#allocation2 + $0x10] sm:$0xff] %vm2487_vm12, %v2442_v11  ;;  %v4800_v30 = vld [vmem:[%s4915_s22 + $0x90] sm:$0xff]   ;;  %v2812_v32 = vshll.u32 %v4423_v12, 16  ;;  %v437_v40 = vld [vmem:[%s4915_s22 + $0x84] sm:$0xf] }
  0xb0   : > { %v4253_v21 = vcombine.low %v1662_v57, %v1672_v14  ;;  %398 = vst.msk [vmem:[#allocation2 + $0xa0] sm:$0xff] %vm387_vm6, %v4822_v22  ;;  %v4333_v35 = vcombine.low %v2143_v16, %v2146_v38  ;;  %v2795_v31 = vrot.slane %v2793_v23, 4  ;;  %v2697_v33 = vshrl.u32 %v4409_v18, 16  ;;  %394 = vst.msk [vmem:[#allocation2 + $0x60] sm:$0xff] %vm387_vm6, %v4823_v25  ;;  %v4801_v46 = vld [vmem:[%s4915_s22 + $0x60] sm:$0xff]  }
  0xb1   : > { %3033 = vst.msk [vmem:[#allocation2] sm:$0xff] %vm3032_vm13, %v5391_v20  ;;  %3034 = vst.msk [vmem:[#allocation2 + $0x10] sm:$0xff] %vm3032_vm13, %v2987_v13  ;;  %v2798_v34 = vrot.slane %v2796_v26, 5  ;;  %v2804_v36 = vrot.slane %v2802_v28, 5  ;;  %v2808_v37 = vrot.slane %v2806_v29, 4  ;;  %v2700_v39 = vshll.u32 %v4409_v18, 16 }
  0xb2   : > { %2278 = vrot.lane.b32.xlu1 %v4337_v15, %s4857_s26  ;;  %v1216_v27 = vpop.permute.xlu1 %1215  ;;  %v2814_v20 = vrot.slane %v2812_v32, 5  ;;  %v2699_v42 = vrot.slane %v2697_v33, 4  ;;  %v2706_v44 = vshll.u32 %v4410_v19, 16  ;;  %v2710_v45 = vshrl.u32 %v4410_v19, 16  ;;  %v438_v51 = vld [vmem:[%s4915_s22 + $0x88] sm:$0xf] }
  0xb3   : > { %1949 = vrot.lane.b32.xlu0 %v4253_v21, %s4858_s27  ;;  %v892_v41 = vpop.permute.xlu0 %891  ;;  %v2799_v47 = vor.u32 %v2798_v34, %v2795_v31  ;;  %v2809_v49 = vor.u32 %v2808_v37, %v2804_v36  ;;  %v2702_v48 = vrot.slane %v2700_v39, 5  ;;  %v2716_v50 = vshll.u32 %v4411_v24, 16  ;;  %v439_v56 = vld [vmem:[%s4915_s22 + $0x8c] sm:$0x1]  ;;  %v4455_v3 = vld [vmem:[%s4915_s22 + $0x18] sm:$0xe] }
  0xb4   : > { %938 = vst.msk [vmem:[#allocation2 + $0x20] sm:$0xff] %vm935_vm7, %v892_v41  ;;  %v2708_v53 = vrot.slane %v2706_v44, 5  ;;  %v2712_v54 = vrot.slane %v2710_v45, 4  ;;  %v720_v58 = vshrl.u32 %v437_v40, 16  ;;  %v723_v59 = vshll.u32 %v437_v40, 16  ;;  %v4824_v4 = vld [vmem:[%s4915_s22 + $0x84] sm:$0xff]  }
  0xb5   : > { %1262 = vst.msk [vmem:[#allocation2 + $0x20] sm:$0xff] %vm1259_vm8, %v1216_v27  ;;  %v2800_v60 = vrot.slane %v2799_v47, 4  ;;  %v2810_v61 = vrot.slane %v2809_v49, 4  ;;  %v2703_v62 = vor.u32 %v2702_v48, %v2699_v42  ;;  %v2718_v63 = vrot.slane %v2716_v50, 5  ;;  %v4456_v7 = vld [vmem:[%s4915_s22 + $0x1c] sm:$0xf] }
  0xb6   : > { %2459 = vrot.lane.b32.xlu1 %v4800_v30, %s4855_s24  ;;  %v2713_v5 = vor.u32 %v2712_v54, %v2708_v53  ;;  %v722_v6 = vrot.slane %v720_v58, 4  ;;  %v725_v8 = vrot.slane %v723_v59, 5  ;;  %v729_v1 = vshll.u32 %v438_v51, 16  ;;  %v4457_v55 = vld [vmem:[%s4915_s22 + $0x20] sm:$0x1]  ;;  %399 = vst.msk [vmem:[#allocation2 + $0xb0] sm:$0xff] %vm387_vm6, %v4824_v4 }
  0xb7   : > { %2270 = vrot.lane.b32.xlu0 %v4333_v35, %s4857_s26  ;;  %v1397_v43 = vpop.permute.xlu0 %1396  ;;  %v2805_v10 = vsel %vm4950_vm5, %v2800_v60, %v2804_v36  ;;  %v2815_v11 = vsel %vm4950_vm5, %v2810_v61, %v2814_v20  ;;  %v2704_v57 = vrot.slane %v2703_v62, 4  ;;  %v733_v2 = vshrl.u32 %v438_v51, 16  ;;  %v425_v12 = vld [vmem:[%s4915_s22 + $0x54] sm:$0xf]  ;;  %v426_v17 = vld [vmem:[%s4915_s22 + $0x58] sm:$0xf] }
  0xb8   : > { %v1942_v9 = vpop.permute.xlu1 %1941  ;;  %1443 = vst.msk [vmem:[#allocation2 + $0x20] sm:$0xff] %vm1440_vm9, %v1397_v43  ;;  %v4449_v13 = vcombine.low %v2805_v10, %v2815_v11  ;;  %v2714_v14 = vrot.slane %v2713_v5, 4  ;;  %v726_v15 = vor.u32 %v725_v8, %v722_v6  ;;  %v731_v16 = vrot.slane %v729_v1, 5  ;;  %v427_v23 = vld [vmem:[%s4915_s22 + $0x5c] sm:$0x1]  ;;  %v4825_v30 = vld [vmem:[%s4915_s22 + $0x54] sm:$0xff]  }
  0xb9   : > { %1988 = vst.msk [vmem:[#allocation2 + $0x20] sm:$0xff] %vm1985_vm10, %v1942_v9  ;;  %v2709_v18 = vsel %vm4950_vm5, %v2704_v57, %v2708_v53  ;;  %v735_v19 = vrot.slane %v733_v2, 4  ;;  %v739_v22 = vshll.u32 %v439_v56, 16  ;;  %v4503_v21 = vrot.slane %v4455_v3, 9  ;;  %v985_v24 = vld [vmem:[%s4915_s22 + $0x84] sm:$0xe] }
  0xba   : > { %3004 = vrot.lane.b32.xlu1 %v4449_v13, %s4860_s29  ;;  %v2719_v38 = vsel %vm4950_vm5, %v2714_v14, %v2718_v63  ;;  %v727_v26 = vrot.slane %v726_v15, 4  ;;  %v3147_v28 = vrot.slane %v4456_v7, 5  ;;  %v3150_v29 = vrot.slane %v4457_v55, 5  ;;  %v986_v34 = vld [vmem:[%s4915_s22 + $0x88] sm:$0xf]  ;;  %395 = vst.msk [vmem:[#allocation2 + $0x70] sm:$0xff] %vm387_vm6, %v4825_v30 }
  0xbb   : > { %2451 = vrot.lane.b32.xlu0 %v4801_v46, %s4855_s24  ;;  %v2263_v25 = vpop.permute.xlu0 %2262  ;;  %v4445_v31 = vcombine.low %v2709_v18, %v2719_v38  ;;  %v736_v32 = vor.u32 %v735_v19, %v731_v16  ;;  %v741_v33 = vrot.slane %v739_v22, 5  ;;  %v624_v27 = vshrl.u32 %v425_v12, 16  ;;  %v987_v41 = vld [vmem:[%s4915_s22 + $0x8c] sm:$0x1]  ;;  %v973_v20 = vld [vmem:[%s4915_s22 + $0x54] sm:$0xe] }
  0xbc   : > { %v2444_v35 = vpop.permute.xlu1 %2443  ;;  %2309 = vst.msk [vmem:[#allocation2 + $0x20] sm:$0xff] %vm2306_vm11, %v2263_v25  ;;  %v732_v36 = vsel %vm4950_vm5, %v727_v26, %v731_v16  ;;  %v3148_v37 = vsel %vm4908_vm2, %v4503_v21, %v3147_v28  ;;  %v3149_v39 = vrot.slane %v3147_v28, 4  ;;  %v627_v40 = vshll.u32 %v425_v12, 16  ;;  %v974_v47 = vld [vmem:[%s4915_s22 + $0x58] sm:$0xf]  ;;  %v4805_v28 = vld [vmem:[%s4915_s22 + $0x90] sm:$0xff]  }
  0xbd   : > { %2490 = vst.msk [vmem:[#allocation2 + $0x20] sm:$0xff] %vm2487_vm12, %v2444_v35  ;;  %v737_v42 = vrot.slane %v736_v32, 4  ;;  %v626_v44 = vrot.slane %v624_v27, 4  ;;  %v633_v45 = vshll.u32 %v426_v17, 16  ;;  %v637_v46 = vshrl.u32 %v426_v17, 16  ;;  %v3337_v32 = vld [vmem:[#allocation2] sm:$0xff] }
  0xbe   : > { %v3151_v49 = vsel %vm4908_vm2, %v3149_v39, %v3150_v29  ;;  %v629_v48 = vrot.slane %v627_v40, 5  ;;  %v643_v50 = vshll.u32 %v427_v23, 16  ;;  %v4130_v51 = vrot.slane %v985_v24, 9  ;;  %v975_v53 = vld [vmem:[%s4915_s22 + $0x5c] sm:$0x1] }
  0xbf   : > { %2996 = vrot.lane.b32.xlu0 %v4445_v31, %s4860_s29  ;;  %v742_v56 = vsel %vm4950_vm5, %v737_v42, %v741_v33  ;;  %v4519_v58 = vcombine.low %v3148_v37, %v3151_v49  ;;  %v635_v59 = vrot.slane %v633_v45, 5  ;;  %v639_v60 = vrot.slane %v637_v46, 4  ;;  %v4458_v61 = vld [vmem:[%s4915_s22 + $0x24] sm:$0xe]  ;;  %v4459_v62 = vld [vmem:[%s4915_s22 + $0x28] sm:$0xf] }
  0xc0   : > { %v894_v54 = vpop.permute.xlu1 %893  ;;  %v4114_v63 = vcombine.low %v732_v36, %v742_v56  ;;  %v630_v3 = vor.u32 %v629_v48, %v626_v44  ;;  %v645_v43 = vrot.slane %v643_v50, 5  ;;  %v1130_v4 = vrot.slane %v986_v34, 5  ;;  %v4460_v5 = vld [vmem:[%s4915_s22 + $0x2c] sm:$0x1]  ;;  %v4232_v6 = vld [vmem:[%s4915_s22 + $0x90] sm:$0xf] }
  0xc1   : > { %939 = vst.msk [vmem:[#allocation2 + $0x30] sm:$0xff] %vm935_vm7, %v894_v54  ;;  %v640_v1 = vor.u32 %v639_v60, %v635_v59  ;;  %v1133_v7 = vrot.slane %v987_v41, 5  ;;  %v4126_v9 = vrot.slane %v973_v20, 9  ;;  %v1102_v10 = vrot.slane %v974_v47, 5  ;;  %v4233_v21 = vld [vmem:[%s4915_s22 + $0x94] sm:$0xf] }
  0xc2   : > { %v2989_v8 = vpop.permute.xlu0 %2988  ;;  %3321 = vst.msk [vmem:[#allocation2 + $0x8] sm:$0xff] %vm387_vm6, %v4519_v58  ;;  %909 = vrot.lane.b32.xlu1 %v4114_v63, %s4859_s28  ;;  %v631_v11 = vrot.slane %v630_v3, 4  ;;  %v1131_v57 = vsel %vm4908_vm2, %v4130_v51, %v1130_v4  ;;  %v1132_v2 = vrot.slane %v1130_v4, 4  ;;  %v1105_v55 = vrot.slane %v975_v53, 5  ;;  %v4234_v23 = vld [vmem:[%s4915_s22 + $0x98] sm:$0x1] }
  0xc3   : > { %3035 = vst.msk [vmem:[#allocation2 + $0x20] sm:$0xff] %vm3032_vm13, %v2989_v8  ;;  %v641_v13 = vrot.slane %v640_v1, 4  ;;  %v1103_v14 = vsel %vm4908_vm2, %v4126_v9, %v1102_v10  ;;  %v1104_v15 = vrot.slane %v1102_v10, 4  ;;  %v4504_v16 = vrot.slane %v4458_v61, 9  ;;  %v4220_v35 = vld [vmem:[%s4915_s22 + $0x60] sm:$0xf] }
  0xc4   : > { %v1399_v12 = vpop.permute.xlu1 %1398  ;;  %v636_v17 = vsel %vm4950_vm5, %v631_v11, %v635_v59  ;;  %v1134_v18 = vsel %vm4908_vm2, %v1132_v2, %v1133_v7  ;;  %v3154_v19 = vrot.slane %v4459_v62, 5  ;;  %v3157_v22 = vrot.slane %v4460_v5, 5  ;;  %v4221_v30 = vld [vmem:[%s4915_s22 + $0x64] sm:$0xf]  ;;  %v4222_v36 = vld [vmem:[%s4915_s22 + $0x68] sm:$0x1] }
  0xc5   : > { %v646_v25 = vsel %vm4950_vm5, %v641_v13, %v645_v43  ;;  %v4146_v38 = vcombine.low %v1131_v57, %v1134_v18  ;;  %v1106_v26 = vsel %vm4908_vm2, %v1104_v15, %v1105_v55  ;;  %v1770_v29 = vshrl.u32 %v4232_v6, 16  ;;  %v4296_v42 = vld [vmem:[%s4915_s22 + $0x90] sm:$0xe]  ;;  %v4297_v48 = vld [vmem:[%s4915_s22 + $0x94] sm:$0xf] }
  0xc6   : > { %v1218_v24 = vpop.permute.xlu0 %1217  ;;  %v4110_v31 = vcombine.low %v636_v17, %v646_v25  ;;  %v4142_v33 = vcombine.low %v1103_v14, %v1106_v26  ;;  %v3155_v27 = vsel %vm4908_vm2, %v4504_v16, %v3154_v19  ;;  %v3156_v34 = vrot.slane %v3154_v19, 4  ;;  %v4298_v4 = vld [vmem:[%s4915_s22 + $0x98] sm:$0x1]  ;;  %v4284_v5 = vld [vmem:[%s4915_s22 + $0x60] sm:$0xe] }
  0xc7   : > { %1263 = vst.msk [vmem:[#allocation2 + $0x30] sm:$0xff] %vm1259_vm8, %v1218_v24  ;;  %1233 = vrot.lane.b32.xlu1 %v4146_v38, %s4856_s25  ;;  %v1772_v39 = vrot.slane %v1770_v29, 4  ;;  %v1773_v40 = vshll.u32 %v4232_v6, 16  ;;  %v1779_v41 = vshll.u32 %v4233_v21, 16  ;;  %v1783_v20 = vshrl.u32 %v4233_v21, 16  ;;  %v4806_v6 = vld [vmem:[%s4915_s22 + $0x60] sm:$0xff]  }
  0xc8   : > { %1444 = vst.msk [vmem:[#allocation2 + $0x30] sm:$0xff] %vm1440_vm9, %v1399_v12  ;;  %v2265_v37 = vpop.permute.xlu1 %2264  ;;  %901 = vrot.lane.b32.xlu0 %v4110_v31, %s4859_s28  ;;  %v3158_v45 = vsel %vm4908_vm2, %v3156_v34, %v3157_v22  ;;  %v1789_v46 = vshll.u32 %v4234_v23, 16  ;;  %v1674_v47 = vshrl.u32 %v4220_v35, 16  ;;  %v1677_v49 = vshll.u32 %v4220_v35, 16  ;;  %v4285_v10 = vld [vmem:[%s4915_s22 + $0x64] sm:$0xf] }
  0xc9   : > { %v3338_v44 = vld [vmem:[#allocation2 + $0x8] sm:$0xff]  ;;  %v4520_v50 = vcombine.low %v3155_v27, %v3158_v45  ;;  %v1775_v51 = vrot.slane %v1773_v40, 5  ;;  %v1781_v53 = vrot.slane %v1779_v41, 5  ;;  %v1785_v54 = vrot.slane %v1783_v20, 4  ;;  %v4424_v19 = vld [vmem:[%s4915_s22 + $0x9c] sm:$0xf] }
  0xca   : > { %4544 = vmatprep.mubr.msk.bf16.mxu0 %vm387_vm6, %v3338_v44  ;;  %v1791_v58 = vrot.slane %v1789_v46, 5  ;;  %v1676_v59 = vrot.slane %v1674_v47, 4  ;;  %v1679_v60 = vrot.slane %v1677_v49, 5  ;;  %v1683_v61 = vshll.u32 %v4221_v30, 16  ;;  %v4286_v13 = vld [vmem:[%s4915_s22 + $0x68] sm:$0x1] }
  0xcb   : > { %v1944_v56 = vpop.permute.xlu0 %1943  ;;  %3522 = vmatmul.mubr.bf16.vlgmr.msra.gmra.mrb[0].mxu0 %v3337_v32  ;;  %1414 = vrot.lane.b32.xlu1 %v4805_v28, %s4854_s23  ;;  %3322 = vst.msk [vmem:[#allocation2 + $0x18] sm:$0xff] %vm387_vm6, %v4520_v50  ;;  %v1776_v62 = vor.u32 %v1775_v51, %v1772_v39  ;;  %v1786_v63 = vor.u32 %v1785_v54, %v1781_v53  ;;  %v1687_v3 = vshrl.u32 %v4221_v30, 16  ;;  %v1693_v43 = vshll.u32 %v4222_v36, 16  ;;  %v4425_v25 = vld [vmem:[%s4915_s22 + $0xa0] sm:$0xf]  ;;  %v3339_v32 = vld [vmem:[#allocation2 + $0x10] sm:$0xff] }
  0xcc   : > { %1989 = vst.msk [vmem:[#allocation2 + $0x30] sm:$0xff] %vm1985_vm10, %v1944_v56  ;;  %1225 = vrot.lane.b32.xlu0 %v4142_v33, %s4856_s25  ;;  %v1680_v8 = vor.u32 %v1679_v60, %v1676_v59  ;;  %v1685_v1 = vrot.slane %v1683_v61, 5  ;;  %v4322_v7 = vrot.slane %v4296_v42, 9  ;;  %v2177_v9 = vrot.slane %v4297_v48, 5  ;;  %v4426_v35 = vld [vmem:[%s4915_s22 + $0xa4] sm:$0x1] }
  0xcd   : > { %2310 = vst.msk [vmem:[#allocation2 + $0x30] sm:$0xff] %vm2306_vm11, %v2265_v37  ;;  %v1777_v57 = vrot.slane %v1776_v62, 4  ;;  %v1787_v2 = vrot.slane %v1786_v63, 4  ;;  %v1689_v55 = vrot.slane %v1687_v3, 4  ;;  %v1695_v12 = vrot.slane %v1693_v43, 5  ;;  %v4808_v3 = vld [vmem:[%s4915_s22 + $0x9c] sm:$0xff]  }
  0xce   : > { %v2991_v11 = vpop.permute.xlu1 %2990  ;;  %v1681_v15 = vrot.slane %v1680_v8, 4  ;;  %v2178_v16 = vsel %vm4908_vm2, %v4322_v7, %v2177_v9  ;;  %v2179_v17 = vrot.slane %v2177_v9, 4  ;;  %v2180_v18 = vrot.slane %v4298_v4, 5  ;;  %v4461_v30 = vld [vmem:[%s4915_s22 + $0x30] sm:$0xe] }
  0xcf   : > { %v2446_v14 = vpop.permute.xlu0 %2445  ;;  %v1782_v22 = vsel %vm4950_vm5, %v1777_v57, %v1781_v53  ;;  %v1792_v21 = vsel %vm4950_vm5, %v1787_v2, %v1791_v58  ;;  %v1690_v23 = vor.u32 %v1689_v55, %v1685_v1  ;;  %v4318_v24 = vrot.slane %v4284_v5, 9  ;;  %v4462_v37 = vld [vmem:[%s4915_s22 + $0x34] sm:$0xf]  ;;  %v4463_v39 = vld [vmem:[%s4915_s22 + $0x38] sm:$0x1]  ;;  %v4809_v57 = vld [vmem:[%s4915_s22 + $0x6c] sm:$0xff]  }
  0xd0   : > { %2491 = vst.msk [vmem:[#allocation2 + $0x30] sm:$0xff] %vm2487_vm12, %v2446_v14  ;;  %1406 = vrot.lane.b32.xlu0 %v4806_v6, %s4854_s23  ;;  %v4258_v38 = vcombine.low %v1782_v22, %v1792_v21  ;;  %v1686_v26 = vsel %vm4950_vm5, %v1681_v15, %v1685_v1  ;;  %v2181_v28 = vsel %vm4908_vm2, %v2179_v17, %v2180_v18  ;;  %v2149_v29 = vrot.slane %v4285_v10, 5  ;;  %v4412_v48 = vld [vmem:[%s4915_s22 + $0x6c] sm:$0xf]  ;;  %v4413_v56 = vld [vmem:[%s4915_s22 + $0x70] sm:$0xf] }
  0xd1   : > { %3036 = vst.msk [vmem:[#allocation2 + $0x30] sm:$0xff] %vm3032_vm13, %v2991_v11  ;;  %v1691_v33 = vrot.slane %v1690_v23, 4  ;;  %v4338_v27 = vcombine.low %v2178_v16, %v2181_v28  ;;  %v2152_v34 = vrot.slane %v4286_v13, 5  ;;  %v2817_v36 = vshrl.u32 %v4424_v19, 16  ;;  %v4414_v6 = vld [vmem:[%s4915_s22 + $0x74] sm:$0x1] }
  0xd2   : > { %v904_v31 = vpop.permute.xlu1 %903  ;;  %v3340_v40 = vld [vmem:[#allocation2 + $0x18] sm:$0xff]  ;;  %1959 = vrot.lane.b32.xlu1 %v4258_v38, %s4858_s27  ;;  %v2150_v41 = vsel %vm4908_vm2, %v4318_v24, %v2149_v29  ;;  %v2151_v20 = vrot.slane %v2149_v29, 4  ;;  %v2820_v42 = vshll.u32 %v4424_v19, 16  ;;  %v2826_v44 = vshll.u32 %v4425_v25, 16  ;;  %v440_v11 = vld [vmem:[%s4915_s22 + $0x90] sm:$0xf] }
  0xd3   : > { %944 = vst.msk [vmem:[#allocation2 + $0x80] sm:$0xff] %vm935_vm7, %v904_v31  ;;  %4545 = vmatprep.mubr.msk.bf16.mxu0 %vm387_vm6, %v3340_v40  ;;  %v1696_v45 = vsel %vm4950_vm5, %v1691_v33, %v1695_v12  ;;  %v2819_v46 = vrot.slane %v2817_v36, 4  ;;  %v2830_v47 = vshrl.u32 %v4425_v25, 16  ;;  %v2836_v49 = vshll.u32 %v4426_v35, 16  ;;  %v441_v19 = vld [vmem:[%s4915_s22 + $0x94] sm:$0xf] }
  0xd4   : > { %3530 = vmatmul.mubr.bf16.gmra.mrb[4].mxu0 %v3339_v32  ;;  %v4254_v50 = vcombine.low %v1686_v26, %v1696_v45  ;;  %v2153_v51 = vsel %vm4908_vm2, %v2151_v20, %v2152_v34  ;;  %v2822_v53 = vrot.slane %v2820_v42, 5  ;;  %v2828_v54 = vrot.slane %v2826_v44, 5  ;;  %v442_v25 = vld [vmem:[%s4915_s22 + $0x98] sm:$0x1]  ;;  %v989_v31 = vld [vmem:[%s4915_s22 + $0x94] sm:$0xf] }
  0xd5   : > { %v4334_v59 = vcombine.low %v2150_v41, %v2153_v51  ;;  %v2832_v60 = vrot.slane %v2830_v47, 4  ;;  %v2838_v61 = vrot.slane %v2836_v49, 5  ;;  %v4505_v62 = vrot.slane %v4461_v30, 9  ;;  %v988_v30 = vld [vmem:[%s4915_s22 + $0x90] sm:$0xe] }
  0xd6   : > { %v1228_v58 = vpop.permute.xlu1 %1227  ;;  %1951 = vrot.lane.b32.xlu0 %v4254_v50, %s4858_s27  ;;  %2280 = vrot.lane.b32.xlu1 %v4338_v27, %s4857_s26  ;;  %v2823_v43 = vor.u32 %v2822_v53, %v2819_v46  ;;  %v3161_v4 = vrot.slane %v4462_v37, 5  ;;  %v3164_v5 = vrot.slane %v4463_v39, 5  ;;  %v2721_v8 = vshrl.u32 %v4412_v48, 16  ;;  %v990_v36 = vld [vmem:[%s4915_s22 + $0x98] sm:$0x1]  ;;  %v4826_v39 = vld [vmem:[%s4915_s22 + $0x90] sm:$0xff]  }
  0xd7   : > { %v896_v63 = vpop.permute.xlu0 %895  ;;  %1268 = vst.msk [vmem:[#allocation2 + $0x80] sm:$0xff] %vm1259_vm8, %v1228_v58  ;;  %v2833_v1 = vor.u32 %v2832_v60, %v2828_v54  ;;  %v2724_v7 = vshll.u32 %v4412_v48, 16  ;;  %v2730_v9 = vshll.u32 %v4413_v56, 16  ;;  %v2734_v10 = vshrl.u32 %v4413_v56, 16  ;;  %v4235_v44 = vld [vmem:[%s4915_s22 + $0x9c] sm:$0xf] }
  0xd8   : > { %940 = vst.msk [vmem:[#allocation2 + $0x40] sm:$0xff] %vm935_vm7, %v896_v63  ;;  %v2824_v2 = vrot.slane %v2823_v43, 4  ;;  %v3162_v55 = vsel %vm4908_vm2, %v4505_v62, %v3161_v4  ;;  %v3163_v12 = vrot.slane %v3161_v4, 4  ;;  %v2723_v13 = vrot.slane %v2721_v8, 4  ;;  %v4236_v50 = vld [vmem:[%s4915_s22 + $0xa0] sm:$0xf] }
  0xd9   : > { %v2834_v15 = vrot.slane %v2833_v1, 4  ;;  %v2726_v16 = vrot.slane %v2724_v7, 5  ;;  %v2732_v17 = vrot.slane %v2730_v9, 5  ;;  %v2736_v18 = vrot.slane %v2734_v10, 4  ;;  %400 = vst.msk [vmem:[#allocation2 + $0xc0] sm:$0xff] %vm387_vm6, %v4826_v39 }
  0xda   : > { %v1409_v14 = vpop.permute.xlu1 %1408  ;;  %2272 = vrot.lane.b32.xlu0 %v4334_v59, %s4857_s26  ;;  %2461 = vrot.lane.b32.xlu1 %v4808_v3, %s4855_s24  ;;  %v2829_v21 = vsel %vm4950_vm5, %v2824_v2, %v2828_v54  ;;  %v3165_v23 = vsel %vm4908_vm2, %v3163_v12, %v3164_v5  ;;  %v2740_v24 = vshll.u32 %v4414_v6, 16  ;;  %v744_v38 = vshrl.u32 %v440_v11, 16  ;;  %v4237_v58 = vld [vmem:[%s4915_s22 + $0xa4] sm:$0x1]  ;;  %v4464_v63 = vld [vmem:[%s4915_s22 + $0x3c] sm:$0xe] }
  0xdb   : > { %v1220_v22 = vpop.permute.xlu0 %1219  ;;  %1449 = vst.msk [vmem:[#allocation2 + $0x80] sm:$0xff] %vm1440_vm9, %v1409_v14  ;;  %v2839_v26 = vsel %vm4950_vm5, %v2834_v15, %v2838_v61  ;;  %v4521_v28 = vcombine.low %v3162_v55, %v3165_v23  ;;  %v2727_v29 = vor.u32 %v2726_v16, %v2723_v13  ;;  %v2737_v35 = vor.u32 %v2736_v18, %v2732_v17  ;;  %v4465_v8 = vld [vmem:[%s4915_s22 + $0x40] sm:$0xf]  ;;  %v4466_v1 = vld [vmem:[%s4915_s22 + $0x44] sm:$0x1] }
  0xdc   : > { %1264 = vst.msk [vmem:[#allocation2 + $0x40] sm:$0xff] %vm1259_vm8, %v1220_v22  ;;  %v4450_v32 = vcombine.low %v2829_v21, %v2839_v26  ;;  %v2742_v33 = vrot.slane %v2740_v24, 5  ;;  %v746_v27 = vrot.slane %v744_v38, 4  ;;  %v747_v34 = vshll.u32 %v440_v11, 16  ;;  %v4299_v2 = vld [vmem:[%s4915_s22 + $0x9c] sm:$0xe] }
  0xdd   : > { %3323 = vst.msk [vmem:[#allocation2 + $0x28] sm:$0xff] %vm387_vm6, %v4521_v28  ;;  %v2728_v40 = vrot.slane %v2727_v29, 4  ;;  %v2738_v41 = vrot.slane %v2737_v35, 4  ;;  %v753_v20 = vshll.u32 %v441_v19, 16  ;;  %v757_v42 = vshrl.u32 %v441_v19, 16  ;;  %v3341_v13 = vld [vmem:[#allocation2 + $0x20] sm:$0xff] }
  0xde   : > { %v1954_v37 = vpop.permute.xlu1 %1953  ;;  %2453 = vrot.lane.b32.xlu0 %v4809_v57, %s4855_s24  ;;  %3006 = vrot.lane.b32.xlu1 %v4450_v32, %s4860_s29  ;;  %v749_v46 = vrot.slane %v747_v34, 5  ;;  %v763_v47 = vshll.u32 %v442_v25, 16  ;;  %v4131_v49 = vrot.slane %v988_v30, 9  ;;  %v1137_v48 = vrot.slane %v989_v31, 5  ;;  %v4300_v55 = vld [vmem:[%s4915_s22 + $0xa0] sm:$0xf] }
  0xdf   : > { %v1401_v45 = vpop.permute.xlu0 %1400  ;;  %1994 = vst.msk [vmem:[#allocation2 + $0x80] sm:$0xff] %vm1985_vm10, %v1954_v37  ;;  %v2733_v51 = vsel %vm4950_vm5, %v2728_v40, %v2732_v17  ;;  %v2743_v53 = vsel %vm4950_vm5, %v2738_v41, %v2742_v33  ;;  %v755_v54 = vrot.slane %v753_v20, 5  ;;  %v759_v56 = vrot.slane %v757_v42, 4  ;;  %v4301_v12 = vld [vmem:[%s4915_s22 + $0xa4] sm:$0x1]  ;;  %v4812_v40 = vld [vmem:[%s4915_s22 + $0x9c] sm:$0xff]  }
  0xe0   : > { %1445 = vst.msk [vmem:[#allocation2 + $0x40] sm:$0xff] %vm1440_vm9, %v1401_v45  ;;  %v4446_v59 = vcombine.low %v2733_v51, %v2743_v53  ;;  %v750_v60 = vor.u32 %v749_v46, %v746_v27  ;;  %v765_v61 = vrot.slane %v763_v47, 5  ;;  %v1138_v62 = vsel %vm4908_vm2, %v4131_v49, %v1137_v48  ;;  %v4427_v29 = vld [vmem:[%s4915_s22 + $0xa8] sm:$0xf]  ;;  %v4428_v39 = vld [vmem:[%s4915_s22 + $0xac] sm:$0xf] }
  0xe1   : > { %v760_v43 = vor.u32 %v759_v56, %v755_v54  ;;  %v1139_v4 = vrot.slane %v1137_v48, 4  ;;  %v1140_v5 = vrot.slane %v990_v36, 5  ;;  %v1794_v6 = vshrl.u32 %v4235_v44, 16 }
  0xe2   : > { %v2275_v3 = vpop.permute.xlu1 %2274  ;;  %2998 = vrot.lane.b32.xlu0 %v4446_v59, %s4860_s29  ;;  %v751_v9 = vrot.slane %v750_v60, 4  ;;  %v1797_v10 = vshll.u32 %v4235_v44, 16  ;;  %v1803_v11 = vshll.u32 %v4236_v50, 16  ;;  %v1807_v57 = vshrl.u32 %v4236_v50, 16  ;;  %v4429_v44 = vld [vmem:[%s4915_s22 + $0xb0] sm:$0x1] }
  0xe3   : > { %v1946_v7 = vpop.permute.xlu0 %1945  ;;  %2315 = vst.msk [vmem:[#allocation2 + $0x80] sm:$0xff] %vm2306_vm11, %v2275_v3  ;;  %v761_v14 = vrot.slane %v760_v43, 4  ;;  %v1141_v15 = vsel %vm4908_vm2, %v1139_v4, %v1140_v5  ;;  %v1796_v16 = vrot.slane %v1794_v6, 4  ;;  %v1813_v17 = vshll.u32 %v4237_v58, 16  ;;  %v443_v50 = vld [vmem:[%s4915_s22 + $0x9c] sm:$0xf] }
  0xe4   : > { %1990 = vst.msk [vmem:[#allocation2 + $0x40] sm:$0xff] %vm1985_vm10, %v1946_v7  ;;  %v3342_v18 = vld [vmem:[#allocation2 + $0x28] sm:$0xff]  ;;  %v756_v19 = vsel %vm4950_vm5, %v751_v9, %v755_v54  ;;  %v4147_v22 = vcombine.low %v1138_v62, %v1141_v15  ;;  %v1799_v21 = vrot.slane %v1797_v10, 5  ;;  %v1805_v23 = vrot.slane %v1803_v11, 5  ;;  %v444_v3 = vld [vmem:[%s4915_s22 + $0xa0] sm:$0xf] }
  0xe5   : > { %4546 = vmatprep.mubr.msk.bf16.mxu0 %vm387_vm6, %v3342_v18  ;;  %v766_v25 = vsel %vm4950_vm5, %v761_v14, %v765_v61  ;;  %v1809_v38 = vrot.slane %v1807_v57, 4  ;;  %v1815_v26 = vrot.slane %v1813_v17, 5  ;;  %v4506_v28 = vrot.slane %v4464_v63, 9  ;;  %v445_v43 = vld [vmem:[%s4915_s22 + $0xa4] sm:$0x1]  ;;  %v4827_v4 = vld [vmem:[%s4915_s22 + $0x9c] sm:$0xff]  }
  0xe6   : > { %v2456_v24 = vpop.permute.xlu1 %2455  ;;  %3538 = vmatmul.mubr.bf16.gmra.mrb[8].mxu0 %v3341_v13  ;;  %v4115_v30 = vcombine.low %v756_v19, %v766_v25  ;;  %1235 = vrot.lane.b32.xlu1 %v4147_v22, %s4856_s25  ;;  %v1800_v31 = vor.u32 %v1799_v21, %v1796_v16  ;;  %v3168_v32 = vrot.slane %v4465_v8, 5  ;;  %v3171_v33 = vrot.slane %v4466_v1, 5  ;;  %v991_v7 = vld [vmem:[%s4915_s22 + $0x9c] sm:$0xe]  ;;  %v992_v9 = vld [vmem:[%s4915_s22 + $0xa0] sm:$0xf] }
  0xe7   : > { %v2267_v35 = vpop.permute.xlu0 %2266  ;;  %2496 = vst.msk [vmem:[#allocation2 + $0x80] sm:$0xff] %vm2487_vm12, %v2456_v24  ;;  %v1810_v27 = vor.u32 %v1809_v38, %v1805_v23  ;;  %v4323_v34 = vrot.slane %v4299_v2, 9  ;;  %v2184_v36 = vrot.slane %v4300_v55, 5  ;;  %v2187_v37 = vrot.slane %v4301_v12, 5  ;;  %v4813_v10 = vld [vmem:[%s4915_s22 + $0xa8] sm:$0xff]  }
  0xe8   : > { %2311 = vst.msk [vmem:[#allocation2 + $0x40] sm:$0xff] %vm2306_vm11, %v2267_v35  ;;  %911 = vrot.lane.b32.xlu0 %v4115_v30, %s4859_s28  ;;  %v1801_v41 = vrot.slane %v1800_v31, 4  ;;  %v3169_v20 = vsel %vm4908_vm2, %v4506_v28, %v3168_v32  ;;  %v3170_v42 = vrot.slane %v3168_v32, 4  ;;  %v2841_v45 = vshrl.u32 %v4427_v29, 16  ;;  %v993_v17 = vld [vmem:[%s4915_s22 + $0xa4] sm:$0x1] }
  0xe9   : > { %v1811_v46 = vrot.slane %v1810_v27, 4  ;;  %v2185_v47 = vsel %vm4908_vm2, %v4323_v34, %v2184_v36  ;;  %v2186_v49 = vrot.slane %v2184_v36, 4  ;;  %v2844_v48 = vshll.u32 %v4427_v29, 16  ;;  %401 = vst.msk [vmem:[#allocation2 + $0xd0] sm:$0xff] %vm387_vm6, %v4827_v4  ;;  %v4239_v31 = vld [vmem:[%s4915_s22 + $0xac] sm:$0xf] }
  0xea   : > { %v1806_v53 = vsel %vm4950_vm5, %v1801_v41, %v1805_v23  ;;  %v3172_v54 = vsel %vm4908_vm2, %v3170_v42, %v3171_v33  ;;  %v2843_v56 = vrot.slane %v2841_v45, 4  ;;  %v2850_v58 = vshll.u32 %v4428_v39, 16  ;;  %v4238_v23 = vld [vmem:[%s4915_s22 + $0xa8] sm:$0xf]  ;;  %v4240_v36 = vld [vmem:[%s4915_s22 + $0xb0] sm:$0x1] }
  0xeb   : > { %v2448_v51 = vpop.permute.xlu0 %2447  ;;  %v1816_v60 = vsel %vm4950_vm5, %v1811_v46, %v1815_v26  ;;  %v4522_v61 = vcombine.low %v3169_v20, %v3172_v54  ;;  %v2188_v62 = vsel %vm4908_vm2, %v2186_v49, %v2187_v37  ;;  %v2846_v63 = vrot.slane %v2844_v48, 5  ;;  %v4303_v45 = vld [vmem:[%s4915_s22 + $0xac] sm:$0xf]  ;;  %v4431_v4 = vld [vmem:[%s4915_s22 + $0xb8] sm:$0xf] }
  0xec   : > { %2492 = vst.msk [vmem:[#allocation2 + $0x40] sm:$0xff] %vm2487_vm12, %v2448_v51  ;;  %v3001_v59 = vpop.permute.xlu1 %3000  ;;  %1416 = vrot.lane.b32.xlu0 %v4812_v40, %s4854_s23  ;;  %v4259_v5 = vcombine.low %v1806_v53, %v1816_v60  ;;  %v4339_v6 = vcombine.low %v2185_v47, %v2188_v62  ;;  %v2852_v8 = vrot.slane %v2850_v58, 5  ;;  %v2854_v1 = vshrl.u32 %v4428_v39, 16  ;;  %v4302_v39 = vld [vmem:[%s4915_s22 + $0xa8] sm:$0xe]  ;;  %v3343_v40 = vld [vmem:[#allocation2 + $0x30] sm:$0xff] }
  0xed   : > { %3041 = vst.msk [vmem:[#allocation2 + $0x80] sm:$0xff] %vm3032_vm13, %v3001_v59  ;;  %v2847_v11 = vor.u32 %v2846_v63, %v2843_v56  ;;  %v2860_v57 = vshll.u32 %v4429_v44, 16  ;;  %v768_v2 = vshrl.u32 %v443_v50, 16  ;;  %v771_v55 = vshll.u32 %v443_v50, 16  ;;  %v4304_v51 = vld [vmem:[%s4915_s22 + $0xb0] sm:$0x1] }
  0xee   : > { %3324 = vst.msk [vmem:[#allocation2 + $0x38] sm:$0xff] %vm387_vm6, %v4522_v61  ;;  %1961 = vrot.lane.b32.xlu1 %v4259_v5, %s4858_s27  ;;  %v2856_v13 = vrot.slane %v2854_v1, 4  ;;  %v777_v14 = vshll.u32 %v444_v3, 16  ;;  %v781_v15 = vshrl.u32 %v444_v3, 16  ;;  %v787_v16 = vshll.u32 %v445_v43, 16 }
  0xef   : > { %v2993_v12 = vpop.permute.xlu0 %2992  ;;  %v2848_v18 = vrot.slane %v2847_v11, 4  ;;  %v2862_v19 = vrot.slane %v2860_v57, 5  ;;  %v770_v22 = vrot.slane %v768_v2, 4  ;;  %v773_v21 = vrot.slane %v771_v55, 5  ;;  %v4430_v59 = vld [vmem:[%s4915_s22 + $0xb4] sm:$0xf] }
  0xf0   : > { %3037 = vst.msk [vmem:[#allocation2 + $0x40] sm:$0xff] %vm3032_vm13, %v2993_v12  ;;  %2282 = vrot.lane.b32.xlu0 %v4339_v6, %s4857_s26  ;;  %v2857_v24 = vor.u32 %v2856_v13, %v2852_v8  ;;  %v779_v25 = vrot.slane %v777_v14, 5  ;;  %v783_v38 = vrot.slane %v781_v15, 4  ;;  %v789_v26 = vrot.slane %v787_v16, 5  ;;  %v4814_v6 = vld [vmem:[%s4915_s22 + $0xa8] sm:$0xff]  }
  0xf1   : > { %v2853_v28 = vsel %vm4950_vm5, %v2848_v18, %v2852_v8  ;;  %v774_v29 = vor.u32 %v773_v21, %v770_v22  ;;  %v4132_v35 = vrot.slane %v991_v7, 9  ;;  %v1144_v30 = vrot.slane %v992_v9, 5  ;;  %v4432_v57 = vld [vmem:[%s4915_s22 + $0xbc] sm:$0x1]  ;;  %v446_v15 = vld [vmem:[%s4915_s22 + $0xa8] sm:$0xf] }
  0xf2   : > { %2463 = vrot.lane.b32.xlu1 %v4813_v10, %s4855_s24  ;;  %v2858_v33 = vrot.slane %v2857_v24, 4  ;;  %v784_v27 = vor.u32 %v783_v38, %v779_v25  ;;  %v1147_v34 = vrot.slane %v993_v17, 5  ;;  %v1818_v37 = vshrl.u32 %v4238_v23, 16 }
  0xf3   : > { %v906_v32 = vpop.permute.xlu1 %905  ;;  %v775_v41 = vrot.slane %v774_v29, 4  ;;  %v1145_v20 = vsel %vm4908_vm2, %v4132_v35, %v1144_v30  ;;  %v1146_v42 = vrot.slane %v1144_v30, 4  ;;  %v1821_v44 = vshll.u32 %v4238_v23, 16  ;;  %v447_v23 = vld [vmem:[%s4915_s22 + $0xac] sm:$0xf] }
  0xf4   : > { %945 = vst.msk [vmem:[#allocation2 + $0x90] sm:$0xff] %vm935_vm7, %v906_v32  ;;  %v2863_v47 = vsel %vm4950_vm5, %v2858_v33, %v2862_v19  ;;  %v785_v49 = vrot.slane %v784_v27, 4  ;;  %v1820_v48 = vrot.slane %v1818_v37, 4  ;;  %v1827_v50 = vshll.u32 %v4239_v31, 16  ;;  %v994_v32 = vld [vmem:[%s4915_s22 + $0xa8] sm:$0xe] }
  0xf5   : > { %v3344_v46 = vld [vmem:[#allocation2 + $0x38] sm:$0xff]  ;;  %v4451_v53 = vcombine.low %v2853_v28, %v2863_v47  ;;  %v780_v54 = vsel %vm4950_vm5, %v775_v41, %v779_v25  ;;  %v1148_v56 = vsel %vm4908_vm2, %v1146_v42, %v1147_v34  ;;  %v1823_v58 = vrot.slane %v1821_v44, 5  ;;  %v448_v28 = vld [vmem:[%s4915_s22 + $0xb0] sm:$0x1]  ;;  %v995_v42 = vld [vmem:[%s4915_s22 + $0xac] sm:$0xf] }
  0xf6   : > { %4547 = vmatprep.mubr.msk.bf16.mxu0 %vm387_vm6, %v3344_v46  ;;  %v790_v62 = vsel %vm4950_vm5, %v785_v49, %v789_v26  ;;  %v4148_v63 = vcombine.low %v1145_v20, %v1148_v56  ;;  %v1829_v3 = vrot.slane %v1827_v50, 5  ;;  %v1831_v43 = vshrl.u32 %v4239_v31, 16  ;;  %v4815_v47 = vld [vmem:[%s4915_s22 + $0xb4] sm:$0xff]  }
  0xf7   : > { %v898_v60 = vpop.permute.xlu0 %897  ;;  %v1230_v61 = vpop.permute.xlu1 %1229  ;;  %3546 = vmatmul.mubr.bf16.gmra.mrb[12].mxu0 %v3343_v40  ;;  %3008 = vrot.lane.b32.xlu0 %v4451_v53, %s4860_s29  ;;  %v4116_v5 = vcombine.low %v780_v54, %v790_v62  ;;  %v1824_v8 = vor.u32 %v1823_v58, %v1820_v48  ;;  %v1837_v1 = vshll.u32 %v4240_v36, 16  ;;  %v4324_v7 = vrot.slane %v4302_v39, 9  ;;  %v4479_v53 = vld [vmem:[%s4915_s22 + $0x78] sm:$0xe] }
  0xf8   : > { %941 = vst.msk [vmem:[#allocation2 + $0x50] sm:$0xff] %vm935_vm7, %v898_v60  ;;  %v1833_v9 = vrot.slane %v1831_v43, 4  ;;  %v2191_v10 = vrot.slane %v4303_v45, 5  ;;  %v2194_v11 = vrot.slane %v4304_v51, 5  ;;  %v2865_v2 = vshrl.u32 %v4430_v59, 16  ;;  %v4828_v45 = vld [vmem:[%s4915_s22 + $0xa8] sm:$0xff]  }
  0xf9   : > { %1269 = vst.msk [vmem:[#allocation2 + $0x90] sm:$0xff] %vm1259_vm8, %v1230_v61  ;;  %913 = vrot.lane.b32.xlu1 %v4116_v5, %s4859_s28  ;;  %v1825_v55 = vrot.slane %v1824_v8, 4  ;;  %v1839_v12 = vrot.slane %v1837_v1, 5  ;;  %v2868_v13 = vshll.u32 %v4430_v59, 16  ;;  %v2874_v14 = vshll.u32 %v4431_v4, 16 }
  0xfa   : > { %v1834_v18 = vor.u32 %v1833_v9, %v1829_v3  ;;  %v2192_v19 = vsel %vm4908_vm2, %v4324_v7, %v2191_v10  ;;  %v2193_v22 = vrot.slane %v2191_v10, 4  ;;  %v2867_v21 = vrot.slane %v2865_v2, 4  ;;  %v996_v51 = vld [vmem:[%s4915_s22 + $0xb0] sm:$0x1]  ;;  %v4480_v60 = vld [vmem:[%s4915_s22 + $0x7c] sm:$0xf] }
  0xfb   : > { %v1222_v16 = vpop.permute.xlu0 %1221  ;;  %v1411_v17 = vpop.permute.xlu1 %1410  ;;  %1237 = vrot.lane.b32.xlu0 %v4148_v63, %s4856_s25  ;;  %v1830_v24 = vsel %vm4950_vm5, %v1825_v55, %v1829_v3  ;;  %v2870_v25 = vrot.slane %v2868_v13, 5  ;;  %v2876_v38 = vrot.slane %v2874_v14, 5  ;;  %v2878_v26 = vshrl.u32 %v4431_v4, 16  ;;  %402 = vst.msk [vmem:[#allocation2 + $0xe0] sm:$0xff] %vm387_vm6, %v4828_v45  ;;  %v4481_v43 = vld [vmem:[%s4915_s22 + $0x80] sm:$0x1] }
  0xfc   : > { %1265 = vst.msk [vmem:[#allocation2 + $0x50] sm:$0xff] %vm1259_vm8, %v1222_v16  ;;  %v1835_v29 = vrot.slane %v1834_v18, 4  ;;  %v2195_v35 = vsel %vm4908_vm2, %v2193_v22, %v2194_v11  ;;  %v2884_v30 = vshll.u32 %v4432_v57, 16  ;;  %v792_v31 = vshrl.u32 %v446_v15, 16  ;;  %v4241_v4 = vld [vmem:[%s4915_s22 + $0xb4] sm:$0xf] }
  0xfd   : > { %1450 = vst.msk [vmem:[#allocation2 + $0x90] sm:$0xff] %vm1440_vm9, %v1411_v17  ;;  %1418 = vrot.lane.b32.xlu1 %v4814_v6, %s4854_s23  ;;  %v4340_v33 = vcombine.low %v2192_v19, %v2195_v35  ;;  %v2871_v27 = vor.u32 %v2870_v25, %v2867_v21  ;;  %v2880_v34 = vrot.slane %v2878_v26, 4  ;;  %v795_v36 = vshll.u32 %v446_v15, 16  ;;  %v4242_v55 = vld [vmem:[%s4915_s22 + $0xb8] sm:$0xf] }
  0xfe   : > { %v1840_v39 = vsel %vm4950_vm5, %v1835_v29, %v1839_v12  ;;  %v2886_v40 = vrot.slane %v2884_v30, 5  ;;  %v794_v41 = vrot.slane %v792_v31, 4  ;;  %v801_v20 = vshll.u32 %v447_v23, 16  ;;  %v4243_v16 = vld [vmem:[%s4915_s22 + $0xbc] sm:$0x1] }
  0xff   : > { %v1403_v37 = vpop.permute.xlu0 %1402  ;;  %v4260_v46 = vcombine.low %v1830_v24, %v1840_v39  ;;  %v2872_v49 = vrot.slane %v2871_v27, 4  ;;  %v2881_v48 = vor.u32 %v2880_v34, %v2876_v38  ;;  %v797_v50 = vrot.slane %v795_v36, 5  ;;  %v4467_v17 = vld [vmem:[%s4915_s22 + $0x48] sm:$0xe]  ;;  %v4469_v24 = vld [vmem:[%s4915_s22 + $0x50] sm:$0x1] }
 0x100   : > { %1446 = vst.msk [vmem:[#allocation2 + $0x50] sm:$0xff] %vm1440_vm9, %v1403_v37  ;;  %v1956_v44 = vpop.permute.xlu1 %1955  ;;  %v803_v54 = vrot.slane %v801_v20, 5  ;;  %v805_v56 = vshrl.u32 %v447_v23, 16  ;;  %v811_v58 = vshll.u32 %v448_v28, 16  ;;  %v4133_v59 = vrot.slane %v994_v32, 9 }
 0x101   : > { %1995 = vst.msk [vmem:[#allocation2 + $0x90] sm:$0xff] %vm1985_vm10, %v1956_v44  ;;  %1963 = vrot.lane.b32.xlu0 %v4260_v46, %s4858_s27  ;;  %2284 = vrot.lane.b32.xlu1 %v4340_v33, %s4857_s26  ;;  %v2877_v61 = vsel %vm4950_vm5, %v2872_v49, %v2876_v38  ;;  %v2882_v62 = vrot.slane %v2881_v48, 4  ;;  %v798_v63 = vor.u32 %v797_v50, %v794_v41  ;;  %v1151_v3 = vrot.slane %v995_v42, 5  ;;  %v4468_v23 = vld [vmem:[%s4915_s22 + $0x4c] sm:$0xf]  ;;  %v4818_v44 = vld [vmem:[%s4915_s22 + $0xb4] sm:$0xff]  }
 0x102   : > { %v807_v6 = vrot.slane %v805_v56, 4  ;;  %v813_v8 = vrot.slane %v811_v58, 5  ;;  %v1154_v1 = vrot.slane %v996_v51, 5  ;;  %v4511_v7 = vrot.slane %v4479_v53, 9  ;;  %v4305_v27 = vld [vmem:[%s4915_s22 + $0xb4] sm:$0xe] }
 0x103   : > { %v1948_v5 = vpop.permute.xlu0 %1947  ;;  %v2887_v10 = vsel %vm4950_vm5, %v2882_v62, %v2886_v40  ;;  %v799_v11 = vrot.slane %v798_v63, 4  ;;  %v1152_v57 = vsel %vm4908_vm2, %v4133_v59, %v1151_v3  ;;  %v1153_v2 = vrot.slane %v1151_v3, 4  ;;  %v4306_v40 = vld [vmem:[%s4915_s22 + $0xb8] sm:$0xf]  ;;  %v4307_v41 = vld [vmem:[%s4915_s22 + $0xbc] sm:$0x1] }
 0x104   : > { %1991 = vst.msk [vmem:[#allocation2 + $0x50] sm:$0xff] %vm1985_vm10, %v1948_v5  ;;  %v2277_v9 = vpop.permute.xlu1 %2276  ;;  %v4452_v12 = vcombine.low %v2877_v61, %v2887_v10  ;;  %v808_v13 = vor.u32 %v807_v6, %v803_v54  ;;  %v3203_v14 = vrot.slane %v4480_v60, 5  ;;  %v3206_v15 = vrot.slane %v4481_v43, 5 }
 0x105   : > { %2316 = vst.msk [vmem:[#allocation2 + $0x90] sm:$0xff] %vm2306_vm11, %v2277_v9  ;;  %2465 = vrot.lane.b32.xlu0 %v4815_v47, %s4855_s24  ;;  %v804_v18 = vsel %vm4950_vm5, %v799_v11, %v803_v54  ;;  %v1155_v19 = vsel %vm4908_vm2, %v1153_v2, %v1154_v1  ;;  %v1842_v22 = vshrl.u32 %v4241_v4, 16  ;;  %v1845_v21 = vshll.u32 %v4241_v4, 16  ;;  %v4433_v47 = vld [vmem:[%s4915_s22 + $0xc0] sm:$0xf] }
 0x106   : > { %3010 = vrot.lane.b32.xlu1 %v4452_v12, %s4860_s29  ;;  %v809_v38 = vrot.slane %v808_v13, 4  ;;  %v4149_v26 = vcombine.low %v1152_v57, %v1155_v19  ;;  %v3204_v28 = vsel %vm4908_vm2, %v4511_v7, %v3203_v14  ;;  %v3205_v29 = vrot.slane %v3203_v14, 4  ;;  %v4434_v54 = vld [vmem:[%s4915_s22 + $0xc4] sm:$0xf]  ;;  %v449_v2 = vld [vmem:[%s4915_s22 + $0xb4] sm:$0xf] }
 0x107   : > { %v2269_v25 = vpop.permute.xlu0 %2268  ;;  %v1844_v30 = vrot.slane %v1842_v22, 4  ;;  %v1847_v31 = vrot.slane %v1845_v21, 5  ;;  %v1851_v32 = vshll.u32 %v4242_v55, 16  ;;  %v1855_v33 = vshrl.u32 %v4242_v55, 16  ;;  %v3353_v55 = vld [vmem:[#allocation2 + $0x80] sm:$0xff] }
 0x108   : > { %2312 = vst.msk [vmem:[#allocation2 + $0x50] sm:$0xff] %vm2306_vm11, %v2269_v25  ;;  %v2458_v35 = vpop.permute.xlu1 %2457  ;;  %v814_v34 = vsel %vm4950_vm5, %v809_v38, %v813_v8  ;;  %v3207_v36 = vsel %vm4908_vm2, %v3205_v29, %v3206_v15  ;;  %v1861_v37 = vshll.u32 %v4243_v16, 16  ;;  %v4507_v39 = vrot.slane %v4467_v17, 9  ;;  %v4435_v8 = vld [vmem:[%s4915_s22 + $0xc8] sm:$0x1] }
 0x109   : > { %2497 = vst.msk [vmem:[#allocation2 + $0x90] sm:$0xff] %vm2487_vm12, %v2458_v35  ;;  %v4117_v20 = vcombine.low %v804_v18, %v814_v34  ;;  %v4527_v42 = vcombine.low %v3204_v28, %v3207_v36  ;;  %v1848_v45 = vor.u32 %v1847_v31, %v1844_v30  ;;  %v1853_v46 = vrot.slane %v1851_v32, 5  ;;  %v450_v16 = vld [vmem:[%s4915_s22 + $0xb8] sm:$0xf]  ;;  %v451_v17 = vld [vmem:[%s4915_s22 + $0xbc] sm:$0x1] }
 0x10a   : > { %1239 = vrot.lane.b32.xlu1 %v4149_v26, %s4856_s25  ;;  %v1857_v48 = vrot.slane %v1855_v33, 4  ;;  %v1863_v50 = vrot.slane %v1861_v37, 5  ;;  %v3175_v51 = vrot.slane %v4468_v23, 5  ;;  %v3178_v53 = vrot.slane %v4469_v24, 5  ;;  %v997_v23 = vld [vmem:[%s4915_s22 + $0xb4] sm:$0xe] }
 0x10b   : > { %v2450_v49 = vpop.permute.xlu0 %2449  ;;  %915 = vrot.lane.b32.xlu0 %v4117_v20, %s4859_s28  ;;  %3329 = vst.msk [vmem:[#allocation2 + $0x88] sm:$0xff] %vm387_vm6, %v4527_v42  ;;  %v1849_v58 = vrot.slane %v1848_v45, 4  ;;  %v4325_v59 = vrot.slane %v4305_v27, 9  ;;  %v2198_v60 = vrot.slane %v4306_v40, 5  ;;  %v2201_v61 = vrot.slane %v4307_v41, 5  ;;  %v4819_v31 = vld [vmem:[%s4915_s22 + $0xc0] sm:$0xff]  }
 0x10c   : > { %2493 = vst.msk [vmem:[#allocation2 + $0x50] sm:$0xff] %vm2487_vm12, %v2450_v49  ;;  %v3003_v56 = vpop.permute.xlu1 %3002  ;;  %v1858_v62 = vor.u32 %v1857_v48, %v1853_v46  ;;  %v3176_v63 = vsel %vm4908_vm2, %v4507_v39, %v3175_v51  ;;  %v3177_v3 = vrot.slane %v3175_v51, 4  ;;  %v2889_v43 = vshrl.u32 %v4433_v47, 16  ;;  %v998_v24 = vld [vmem:[%s4915_s22 + $0xb8] sm:$0xf] }
 0x10d   : > { %3042 = vst.msk [vmem:[#allocation2 + $0x90] sm:$0xff] %vm3032_vm13, %v3003_v56  ;;  %v1854_v4 = vsel %vm4950_vm5, %v1849_v58, %v1853_v46  ;;  %v2199_v5 = vsel %vm4908_vm2, %v4325_v59, %v2198_v60  ;;  %v2200_v6 = vrot.slane %v2198_v60, 4  ;;  %v2892_v1 = vshll.u32 %v4433_v47, 16  ;;  %v999_v29 = vld [vmem:[%s4915_s22 + $0xbc] sm:$0x1]  ;;  %v4829_v20 = vld [vmem:[%s4915_s22 + $0xb4] sm:$0xff]  }
 0x10e   : > { %v1859_v9 = vrot.slane %v1858_v62, 4  ;;  %v3179_v10 = vsel %vm4908_vm2, %v3177_v3, %v3178_v53  ;;  %v2891_v11 = vrot.slane %v2889_v43, 4  ;;  %v2898_v57 = vshll.u32 %v4434_v54, 16  ;;  %v4244_v41 = vld [vmem:[%s4915_s22 + $0xc0] sm:$0xf]  ;;  %403 = vst.msk [vmem:[#allocation2 + $0xf0] sm:$0xff] %vm387_vm6, %v4829_v20 }
 0x10f   : > { %v2995_v7 = vpop.permute.xlu0 %2994  ;;  %1420 = vrot.lane.b32.xlu0 %v4818_v44, %s4854_s23  ;;  %v4523_v12 = vcombine.low %v3176_v63, %v3179_v10  ;;  %v2202_v13 = vsel %vm4908_vm2, %v2200_v6, %v2201_v61  ;;  %v2894_v14 = vrot.slane %v2892_v1, 5  ;;  %v2902_v15 = vshrl.u32 %v4434_v54, 16  ;;  %v3345_v47 = vld [vmem:[#allocation2 + $0x40] sm:$0xff]  ;;  %v4246_v60 = vld [vmem:[%s4915_s22 + $0xc8] sm:$0x1] }
 0x110   : > { %3038 = vst.msk [vmem:[#allocation2 + $0x50] sm:$0xff] %vm3032_vm13, %v2995_v7  ;;  %v1864_v18 = vsel %vm4950_vm5, %v1859_v9, %v1863_v50  ;;  %v4341_v19 = vcombine.low %v2199_v5, %v2202_v13  ;;  %v2900_v22 = vrot.slane %v2898_v57, 5  ;;  %v2908_v21 = vshll.u32 %v4435_v8, 16  ;;  %v4245_v59 = vld [vmem:[%s4915_s22 + $0xc4] sm:$0xf] }
 0x111   : > { %v4261_v25 = vcombine.low %v1854_v4, %v1864_v18  ;;  %3325 = vst.msk [vmem:[#allocation2 + $0x48] sm:$0xff] %vm387_vm6, %v4523_v12  ;;  %v2895_v38 = vor.u32 %v2894_v14, %v2891_v11  ;;  %v2904_v26 = vrot.slane %v2902_v15, 4  ;;  %v816_v28 = vshrl.u32 %v449_v2, 16  ;;  %v4308_v4 = vld [vmem:[%s4915_s22 + $0xc0] sm:$0xe] }
 0x112   : > { %v3354_v30 = vld [vmem:[#allocation2 + $0x88] sm:$0xff]  ;;  %v2910_v32 = vrot.slane %v2908_v21, 5  ;;  %v819_v33 = vshll.u32 %v449_v2, 16  ;;  %v825_v27 = vshll.u32 %v450_v16, 16  ;;  %v829_v34 = vshrl.u32 %v450_v16, 16 }
 0x113   : > { %v908_v35 = vpop.permute.xlu1 %907  ;;  %4552 = vmatprep.mubr.msk.bf16.mxu1 %vm387_vm6, %v3354_v30  ;;  %1965 = vrot.lane.b32.xlu1 %v4261_v25, %s4858_s27  ;;  %v2896_v36 = vrot.slane %v2895_v38, 4  ;;  %v2905_v37 = vor.u32 %v2904_v26, %v2900_v22  ;;  %v818_v39 = vrot.slane %v816_v28, 4  ;;  %v835_v40 = vshll.u32 %v451_v17, 16  ;;  %v4309_v5 = vld [vmem:[%s4915_s22 + $0xc4] sm:$0xf] }
 0x114   : > { %946 = vst.msk [vmem:[#allocation2 + $0xa0] sm:$0xff] %vm935_vm7, %v908_v35  ;;  %3586 = vmatmul.mubr.bf16.vlgmr.msra.gmra.mrb[0].mxu1 %v3353_v55  ;;  %2286 = vrot.lane.b32.xlu0 %v4341_v19, %s4857_s26  ;;  %v821_v42 = vrot.slane %v819_v33, 5  ;;  %v827_v44 = vrot.slane %v825_v27, 5  ;;  %v831_v45 = vrot.slane %v829_v34, 4  ;;  %v4134_v46 = vrot.slane %v997_v23, 9 }
 0x115   : > { %v2901_v49 = vsel %vm4950_vm5, %v2896_v36, %v2900_v22  ;;  %v2906_v48 = vrot.slane %v2905_v37, 4  ;;  %v837_v50 = vrot.slane %v835_v40, 5  ;;  %v1158_v51 = vrot.slane %v998_v24, 5  ;;  %v4310_v12 = vld [vmem:[%s4915_s22 + $0xc8] sm:$0x1] }
 0x116   : > { %v822_v54 = vor.u32 %v821_v42, %v818_v39  ;;  %v832_v56 = vor.u32 %v831_v45, %v827_v44  ;;  %v1161_v58 = vrot.slane %v999_v29, 5  ;;  %v1866_v61 = vshrl.u32 %v4244_v41, 16  ;;  %v4436_v18 = vld [vmem:[%s4915_s22 + $0xcc] sm:$0xf]  ;;  %v4437_v19 = vld [vmem:[%s4915_s22 + $0xd0] sm:$0xf] }
 0x117   : > { %v1232_v53 = vpop.permute.xlu1 %1231  ;;  %2467 = vrot.lane.b32.xlu1 %v4819_v31, %s4855_s24  ;;  %v2911_v62 = vsel %vm4950_vm5, %v2906_v48, %v2910_v32  ;;  %v1159_v63 = vsel %vm4908_vm2, %v4134_v46, %v1158_v51  ;;  %v1160_v3 = vrot.slane %v1158_v51, 4  ;;  %v1869_v43 = vshll.u32 %v4244_v41, 16  ;;  %v4438_v25 = vld [vmem:[%s4915_s22 + $0xd4] sm:$0x1]  ;;  %v4482_v30 = vld [vmem:[%s4915_s22 + $0x84] sm:$0xe] }
 0x118   : > { %1270 = vst.msk [vmem:[#allocation2 + $0xa0] sm:$0xff] %vm1259_vm8, %v1232_v53  ;;  %v3346_v8 = vld [vmem:[#allocation2 + $0x48] sm:$0xff]  ;;  %v4453_v1 = vcombine.low %v2901_v49, %v2911_v62  ;;  %v823_v7 = vrot.slane %v822_v54, 4  ;;  %v833_v9 = vrot.slane %v832_v56, 4  ;;  %v1868_v10 = vrot.slane %v1866_v61, 4  ;;  %v4820_v31 = vld [vmem:[%s4915_s22 + $0xc0] sm:$0xff]  }
 0x119   : > { %v900_v6 = vpop.permute.xlu0 %899  ;;  %4548 = vmatprep.mubr.msk.bf16.mxu0 %vm387_vm6, %v3346_v8  ;;  %v1162_v11 = vsel %vm4908_vm2, %v1160_v3, %v1161_v58  ;;  %v1871_v57 = vrot.slane %v1869_v43, 5  ;;  %v1875_v2 = vshll.u32 %v4245_v59, 16  ;;  %v1879_v55 = vshrl.u32 %v4245_v59, 16  ;;  %v4483_v36 = vld [vmem:[%s4915_s22 + $0x88] sm:$0xf] }
 0x11a   : > { %942 = vst.msk [vmem:[#allocation2 + $0x60] sm:$0xff] %vm935_vm7, %v900_v6  ;;  %3554 = vmatmul.mubr.bf16.gmra.mrb[16].mxu0 %v3345_v47  ;;  %3012 = vrot.lane.b32.xlu0 %v4453_v1, %s4860_s29  ;;  %v828_v14 = vsel %vm4950_vm5, %v823_v7, %v827_v44  ;;  %v838_v15 = vsel %vm4950_vm5, %v833_v9, %v837_v50  ;;  %v1885_v17 = vshll.u32 %v4246_v60, 16  ;;  %v4326_v28 = vrot.slane %v4308_v4, 9  ;;  %v4484_v20 = vld [vmem:[%s4915_s22 + $0x8c] sm:$0x1] }
 0x11b   : > { %v1413_v13 = vpop.permute.xlu1 %1412  ;;  %v4150_v16 = vcombine.low %v1159_v63, %v1162_v11  ;;  %v4118_v22 = vcombine.low %v828_v14, %v838_v15  ;;  %v1872_v21 = vor.u32 %v1871_v57, %v1868_v10  ;;  %v1877_v23 = vrot.slane %v1875_v2, 5  ;;  %v4470_v42 = vld [vmem:[%s4915_s22 + $0x54] sm:$0xe]  ;;  %v4471_v44 = vld [vmem:[%s4915_s22 + $0x58] sm:$0xf] }
 0x11c   : > { %1451 = vst.msk [vmem:[#allocation2 + $0xa0] sm:$0xff] %vm1440_vm9, %v1413_v13  ;;  %v1881_v24 = vrot.slane %v1879_v55, 4  ;;  %v1887_v26 = vrot.slane %v1885_v17, 5  ;;  %v2205_v29 = vrot.slane %v4309_v5, 5  ;;  %v2208_v35 = vrot.slane %v4310_v12, 5  ;;  %v4821_v55 = vld [vmem:[%s4915_s22 + $0xcc] sm:$0xff]  }
 0x11d   : > { %v1224_v38 = vpop.permute.xlu0 %1223  ;;  %917 = vrot.lane.b32.xlu1 %v4118_v22, %s4859_s28  ;;  %v1873_v32 = vrot.slane %v1872_v21, 4  ;;  %v2913_v27 = vshrl.u32 %v4436_v18, 16  ;;  %v2916_v34 = vshll.u32 %v4436_v18, 16  ;;  %v2922_v40 = vshll.u32 %v4437_v19, 16  ;;  %v4472_v62 = vld [vmem:[%s4915_s22 + $0x5c] sm:$0x1]  ;;  %s247_s28 = scalar_lea.vmem %s6085_s3, %s6096_s15 }
 0x11e   : > { %1266 = vst.msk [vmem:[#allocation2 + $0x60] sm:$0xff] %vm1259_vm8, %v1224_v38  ;;  %v1882_v33 = vor.u32 %v1881_v24, %v1877_v23  ;;  %1241 = vrot.lane.b32.xlu0 %v4150_v16, %s4856_s25  ;;  %v2206_v37 = vsel %vm4908_vm2, %v4326_v28, %v2205_v29  ;;  %v2207_v39 = vrot.slane %v2205_v29, 4  ;;  %v2926_v41 = vshrl.u32 %v4437_v19, 16  ;;  %v4485_v63 = vld [vmem:[%s4915_s22 + $0x90] sm:$0xe] }
 0x11f   : > { %v1878_v46 = vsel %vm4950_vm5, %v1873_v32, %v1877_v23  ;;  %v2915_v49 = vrot.slane %v2913_v27, 4  ;;  %v2918_v48 = vrot.slane %v2916_v34, 5  ;;  %v2924_v53 = vrot.slane %v2922_v40, 5  ;;  %v4486_v8 = vld [vmem:[%s4915_s22 + $0x94] sm:$0xf] }
 0x120   : > { %v1958_v45 = vpop.permute.xlu1 %1957  ;;  %v1883_v47 = vrot.slane %v1882_v33, 4  ;;  %v2209_v51 = vsel %vm4908_vm2, %v2207_v39, %v2208_v35  ;;  %v2928_v54 = vrot.slane %v2926_v41, 4  ;;  %v2932_v56 = vshll.u32 %v4438_v25, 16  ;;  %v4487_v1 = vld [vmem:[%s4915_s22 + $0x98] sm:$0x1] }
 0x121   : > { %v1405_v50 = vpop.permute.xlu0 %1404  ;;  %1996 = vst.msk [vmem:[#allocation2 + $0xa0] sm:$0xff] %vm1985_vm10, %v1958_v45  ;;  %1422 = vrot.lane.b32.xlu1 %v4820_v31, %s4854_s23  ;;  %v4342_v59 = vcombine.low %v2206_v37, %v2209_v51  ;;  %v2919_v60 = vor.u32 %v2918_v48, %v2915_v49  ;;  %v4512_v61 = vrot.slane %v4482_v30, 9  ;;  %v3210_v5 = vrot.slane %v4483_v36, 5  ;;  %v4473_v2 = vld [vmem:[%s4915_s22 + $0x60] sm:$0xe] }
 0x122   : > { %1447 = vst.msk [vmem:[#allocation2 + $0x60] sm:$0xff] %vm1440_vm9, %v1405_v50  ;;  %v1888_v58 = vsel %vm4950_vm5, %v1883_v47, %v1887_v26  ;;  %v2929_v43 = vor.u32 %v2928_v54, %v2924_v53  ;;  %v2934_v4 = vrot.slane %v2932_v56, 5  ;;  %v3213_v9 = vrot.slane %v4484_v20, 5  ;;  %v4474_v16 = vld [vmem:[%s4915_s22 + $0x64] sm:$0xf] }
 0x123   : > { %v4262_v3 = vcombine.low %v1878_v46, %v1888_v58  ;;  %v2920_v7 = vrot.slane %v2919_v60, 4  ;;  %v4508_v10 = vrot.slane %v4470_v42, 9  ;;  %v3182_v11 = vrot.slane %v4471_v44, 5  ;;  %v4475_v21 = vld [vmem:[%s4915_s22 + $0x68] sm:$0x1] }
 0x124   : > { %v2279_v6 = vpop.permute.xlu1 %2278  ;;  %v2930_v12 = vrot.slane %v2929_v43, 4  ;;  %v3211_v13 = vsel %vm4908_vm2, %v4512_v61, %v3210_v5  ;;  %v3212_v14 = vrot.slane %v3210_v5, 4  ;;  %v3185_v15 = vrot.slane %v4472_v62, 5  ;;  %v4488_v23 = vld [vmem:[%s4915_s22 + $0x9c] sm:$0xe] }
 0x125   : > { %v1950_v57 = vpop.permute.xlu0 %1949  ;;  %2317 = vst.msk [vmem:[#allocation2 + $0xa0] sm:$0xff] %vm2306_vm11, %v2279_v6  ;;  %1967 = vrot.lane.b32.xlu0 %v4262_v3, %s4858_s27  ;;  %2288 = vrot.lane.b32.xlu1 %v4342_v59, %s4857_s26  ;;  %v2925_v17 = vsel %vm4950_vm5, %v2920_v7, %v2924_v53  ;;  %v3183_v18 = vsel %vm4908_vm2, %v4508_v10, %v3182_v11  ;;  %v3184_v19 = vrot.slane %v3182_v11, 4  ;;  %v4513_v22 = vrot.slane %v4485_v63, 9  ;;  %v4489_v29 = vld [vmem:[%s4915_s22 + $0xa0] sm:$0xf] }
 0x126   : > { %1992 = vst.msk [vmem:[#allocation2 + $0x60] sm:$0xff] %vm1985_vm10, %v1950_v57  ;;  %v2935_v24 = vsel %vm4950_vm5, %v2930_v12, %v2934_v4  ;;  %v3214_v25 = vsel %vm4908_vm2, %v3212_v14, %v3213_v9  ;;  %v3217_v26 = vrot.slane %v4486_v8, 5  ;;  %v3220_v28 = vrot.slane %v4487_v1, 5  ;;  %v4490_v35 = vld [vmem:[%s4915_s22 + $0xa4] sm:$0x1] }
 0x127   : > { %v4454_v30 = vcombine.low %v2925_v17, %v2935_v24  ;;  %v4528_v31 = vcombine.low %v3211_v13, %v3214_v25  ;;  %v3186_v32 = vsel %vm4908_vm2, %v3184_v19, %v3185_v15  ;;  %v4509_v52 = vrot.slane %v4473_v2, 9  ;;  %v4476_v27 = vld [vmem:[%s4915_s22 + $0x6c] sm:$0xe]  ;;  %v4477_v34 = vld [vmem:[%s4915_s22 + $0x70] sm:$0xf] }
 0x128   : > { %v2460_v38 = vpop.permute.xlu1 %2459  ;;  %v4524_v36 = vcombine.low %v3183_v18, %v3186_v32  ;;  %v3218_v37 = vsel %vm4908_vm2, %v4513_v22, %v3217_v26  ;;  %v3219_v39 = vrot.slane %v3217_v26, 4  ;;  %v3189_v40 = vrot.slane %v4474_v16, 5  ;;  %v4478_v41 = vld [vmem:[%s4915_s22 + $0x74] sm:$0x1]  ;;  %v4491_v20 = vld [vmem:[%s4915_s22 + $0xa8] sm:$0xe] }
 0x129   : > { %v2271_v33 = vpop.permute.xlu0 %2270  ;;  %2498 = vst.msk [vmem:[#allocation2 + $0xa0] sm:$0xff] %vm2487_vm12, %v2460_v38  ;;  %2469 = vrot.lane.b32.xlu0 %v4821_v55, %s4855_s24  ;;  %3014 = vrot.lane.b32.xlu1 %v4454_v30, %s4860_s29  ;;  %v3192_v42 = vrot.slane %v4475_v21, 5  ;;  %v4514_v44 = vrot.slane %v4488_v23, 9  ;;  %v3224_v45 = vrot.slane %v4489_v29, 5  ;;  %v3227_v46 = vrot.slane %v4490_v35, 5  ;;  %v3355_v15 = vld [vmem:[#allocation2 + $0x90] sm:$0xff] }
 0x12a   : > { %2313 = vst.msk [vmem:[#allocation2 + $0x60] sm:$0xff] %vm2306_vm11, %v2271_v33  ;;  %v4492_v47 = vld [vmem:[%s4915_s22 + $0xac] sm:$0xf]  ;;  %v3221_v49 = vsel %vm4908_vm2, %v3219_v39, %v3220_v28  ;;  %v3190_v48 = vsel %vm4908_vm2, %v4509_v52, %v3189_v40  ;;  %v3191_v50 = vrot.slane %v3189_v40, 4  ;;  %v4510_v51 = vrot.slane %v4476_v27, 9  ;;  %v3347_v24 = vld [vmem:[#allocation2 + $0x50] sm:$0xff] }
 0x12b   : > { %3330 = vst.msk [vmem:[#allocation2 + $0x98] sm:$0xff] %vm387_vm6, %v4528_v31  ;;  %3326 = vst.msk [vmem:[#allocation2 + $0x58] sm:$0xff] %vm387_vm6, %v4524_v36  ;;  %v4493_v53 = vld [vmem:[%s4915_s22 + $0xb0] sm:$0x1]  ;;  %v4529_v56 = vcombine.low %v3218_v37, %v3221_v49  ;;  %v3225_v58 = vsel %vm4908_vm2, %v4514_v44, %v3224_v45  ;;  %v3226_v59 = vrot.slane %v3224_v45, 4  ;;  %v3196_v60 = vrot.slane %v4477_v34, 5 }
 0x12c   : > { %v4494_v61 = vld [vmem:[%s4915_s22 + $0xb4] sm:$0xe]  ;;  %v4495_v62 = vld [vmem:[%s4915_s22 + $0xb8] sm:$0xf]  ;;  %v3005_v63 = vpop.permute.xlu1 %3004  ;;  %v3193_v3 = vsel %vm4908_vm2, %v3191_v50, %v3192_v42  ;;  %v3199_v43 = vrot.slane %v4478_v41, 5  ;;  %v4515_v4 = vrot.slane %v4491_v20, 9 }
 0x12d   : > { %v2452_v54 = vpop.permute.xlu0 %2451  ;;  %v3231_v5 = vrot.slane %v4492_v47, 5  ;;  %v4496_v6 = vld [vmem:[%s4915_s22 + $0xbc] sm:$0x1]  ;;  %3043 = vst.msk [vmem:[#allocation2 + $0xa0] sm:$0xff] %vm3032_vm13, %v3005_v63  ;;  %v4525_v8 = vcombine.low %v3190_v48, %v3193_v3  ;;  %v3228_v1 = vsel %vm4908_vm2, %v3226_v59, %v3227_v46  ;;  %v3197_v7 = vsel %vm4908_vm2, %v4510_v51, %v3196_v60  ;;  %v4497_v10 = vld [vmem:[%s4915_s22 + $0xc0] sm:$0xe] }
 0x12e   : > { %2494 = vst.msk [vmem:[#allocation2 + $0x60] sm:$0xff] %vm2487_vm12, %v2452_v54  ;;  %v3198_v9 = vrot.slane %v3196_v60, 4  ;;  %v4498_v11 = vld [vmem:[%s4915_s22 + $0xc4] sm:$0xf]  ;;  %v4530_v57 = vcombine.low %v3225_v58, %v3228_v1  ;;  %v3234_v12 = vrot.slane %v4493_v53, 5  ;;  %v4516_v18 = vrot.slane %v4494_v61, 9 }
 0x12f   : > { %3331 = vst.msk [vmem:[#allocation2 + $0xa8] sm:$0xff] %vm387_vm6, %v4529_v56  ;;  %v3232_v2 = vsel %vm4908_vm2, %v4515_v4, %v3231_v5  ;;  %v3233_v55 = vrot.slane %v3231_v5, 4  ;;  %v4499_v13 = vld [vmem:[%s4915_s22 + $0xc8] sm:$0x1]  ;;  %v4500_v14 = vld [vmem:[%s4915_s22 + $0xcc] sm:$0xe] }
 0x130   : > { %3327 = vst.msk [vmem:[#allocation2 + $0x68] sm:$0xff] %vm387_vm6, %v4525_v8  ;;  %v3200_v17 = vsel %vm4908_vm2, %v3198_v9, %v3199_v43  ;;  %v3238_v19 = vrot.slane %v4495_v62, 5  ;;  %v3241_v22 = vrot.slane %v4496_v6, 5  ;;  %v4501_v21 = vld [vmem:[%s4915_s22 + $0xd0] sm:$0xf]  ;;  %3332 = vst.msk [vmem:[#allocation2 + $0xb8] sm:$0xff] %vm387_vm6, %v4530_v57 }
 0x131   : > { %v2997_v16 = vpop.permute.xlu0 %2996  ;;  %v4526_v25 = vcombine.low %v3197_v7, %v3200_v17  ;;  %v3235_v38 = vsel %vm4908_vm2, %v3233_v55, %v3234_v12  ;;  %v4517_v26 = vrot.slane %v4497_v10, 9  ;;  %v3245_v28 = vrot.slane %v4498_v11, 5  ;;  %v4502_v29 = vld [vmem:[%s4915_s22 + $0xd4] sm:$0x1]  ;;  %s4594_s22 = sshll.u32 %s6096_s15, 7 }
 0x132   : > { %v3356_v23 = vld [vmem:[#allocation2 + $0x98] sm:$0xff]  ;;  %3039 = vst.msk [vmem:[#allocation2 + $0x60] sm:$0xff] %vm3032_vm13, %v2997_v16  ;;  %v4531_v30 = vcombine.low %v3232_v2, %v3235_v38  ;;  %v3239_v31 = vsel %vm4908_vm2, %v4516_v18, %v3238_v19  ;;  %v3240_v32 = vrot.slane %v3238_v19, 4  ;;  %v3248_v33 = vrot.slane %v4499_v13, 5  ;;  %s6035_s25 = scalar_lea.vmem %s6084_s2, %s4594_s22 }
 0x133   : > { %4553 = vmatprep.mubr.msk.bf16.mxu1 %vm387_vm6, %v3356_v23  ;;  %v3348_v35 = vld [vmem:[#allocation2 + $0x58] sm:$0xff]  ;;  %3328 = vst.msk [vmem:[#allocation2 + $0x78] sm:$0xff] %vm387_vm6, %v4526_v25  ;;  %v3246_v52 = vsel %vm4908_vm2, %v4517_v26, %v3245_v28  ;;  %v3247_v27 = vrot.slane %v3245_v28, 4  ;;  %v4518_v34 = vrot.slane %v4500_v14, 9  ;;  %v3252_v36 = vrot.slane %v4501_v21, 5 }
 0x134   : > { %3594 = vmatmul.mubr.bf16.gmra.mrb[4].mxu1 %v3355_v15  ;;  %4549 = vmatprep.mubr.msk.bf16.mxu0 %vm387_vm6, %v3348_v35  ;;  %3333 = vst.msk [vmem:[#allocation2 + $0xc8] sm:$0xff] %vm387_vm6, %v4531_v30  ;;  %v3242_v37 = vsel %vm4908_vm2, %v3240_v32, %v3241_v22  ;;  %v3255_v39 = vrot.slane %v4502_v29, 5  ;;  %v910_v40 = vpop.permute.xlu1 %909  ;;  %v3357_v48 = vld [vmem:[#allocation2 + $0xa0] sm:$0xff] }
 0x135   : > { %3562 = vmatmul.mubr.bf16.gmra.mrb[20].mxu0 %v3347_v24  ;;  %v4532_v20 = vcombine.low %v3239_v31, %v3242_v37  ;;  %v3249_v42 = vsel %vm4908_vm2, %v3247_v27, %v3248_v33  ;;  %v3253_v44 = vsel %vm4908_vm2, %v4518_v34, %v3252_v36  ;;  %v3254_v45 = vrot.slane %v3252_v36, 4  ;;  %947 = vst.msk [vmem:[#allocation2 + $0xb0] sm:$0xff] %vm935_vm7, %v910_v40 }
 0x136   : > { %v3358_v41 = vld [vmem:[#allocation2 + $0xa8] sm:$0xff]  ;;  %v4533_v46 = vcombine.low %v3246_v52, %v3249_v42 }
 0x137   : > { %4554 = vmatprep.mubr.msk.bf16.mxu1 %vm387_vm6, %v3358_v41  ;;  %v3350_v47 = vld [vmem:[#allocation2 + $0x68] sm:$0xff]  ;;  %3334 = vst.msk [vmem:[#allocation2 + $0xd8] sm:$0xff] %vm387_vm6, %v4532_v20  ;;  %v3256_v49 = vsel %vm4908_vm2, %v3254_v45, %v3255_v39  ;;  %v3360_v53 = vld [vmem:[#allocation2 + $0xb8] sm:$0xff] }
 0x138   : > { %4550 = vmatprep.mubr.msk.bf16.mxu0 %vm387_vm6, %v3350_v47  ;;  %3335 = vst.msk [vmem:[#allocation2 + $0xe8] sm:$0xff] %vm387_vm6, %v4533_v46  ;;  %v4534_v50 = vcombine.low %v3253_v44, %v3256_v49 }
 0x139   : > { %v3349_v51 = vld [vmem:[#allocation2 + $0x60] sm:$0xff]  ;;  %v1234_v54 = vpop.permute.xlu1 %1233 }
 0x13a   : > { %v3352_v56 = vld [vmem:[#allocation2 + $0x78] sm:$0xff]  ;;  %3336 = vst.msk [vmem:[#allocation2 + $0xf8] sm:$0xff] %vm387_vm6, %v4534_v50  ;;  %v902_v58 = vpop.permute.xlu0 %901 }
 0x13b   : > { %1271 = vst.msk [vmem:[#allocation2 + $0xb0] sm:$0xff] %vm1259_vm8, %v1234_v54  ;;  %v3362_v8 = vld [vmem:[#allocation2 + $0xc8] sm:$0xff] }
 0x13c   : > { %3602 = vmatmul.mubr.bf16.gmra.mrb[8].mxu1 %v3357_v48  ;;  %943 = vst.msk [vmem:[#allocation2 + $0x70] sm:$0xff] %vm935_vm7, %v902_v58 }
 0x13d   : > { %3570 = vmatmul.mubr.bf16.gmra.mrb[24].mxu0 %v3349_v51  ;;  %4555 = vmatprep.mubr.msk.bf16.mxu1 %vm387_vm6, %v3360_v53  ;;  %v1415_v0 = vpop.permute.xlu1 %1414 }
 0x13e   : > { %4551 = vmatprep.mubr.msk.bf16.mxu0 %vm387_vm6, %v3352_v56  ;;  %v1226_v59 = vpop.permute.xlu0 %1225  ;;  %1452 = vst.msk [vmem:[#allocation2 + $0xb0] sm:$0xff] %vm1440_vm9, %v1415_v0  ;;  %v3364_v16 = vld [vmem:[#allocation2 + $0xd8] sm:$0xff] }
 0x13f   : > { %1267 = vst.msk [vmem:[#allocation2 + $0x70] sm:$0xff] %vm1259_vm8, %v1226_v59  ;;  %v3366_v25 = vld [vmem:[#allocation2 + $0xe8] sm:$0xff] }
 0x141   : > { %v3368_v52 = vld [vmem:[#allocation2 + $0xf8] sm:$0xff] }
 0x142   : > { %v1407_v60 = vpop.permute.xlu0 %1406 }
 0x143   : > { %1448 = vst.msk [vmem:[#allocation2 + $0x70] sm:$0xff] %vm1440_vm9, %v1407_v60 }
 0x144   : > { %v1960_v61 = vpop.permute.xlu1 %1959 }
 0x145   : > { %1997 = vst.msk [vmem:[#allocation2 + $0xb0] sm:$0xff] %vm1985_vm10, %v1960_v61 }
 0x148   : > { %v1952_v62 = vpop.permute.xlu0 %1951  ;;  %v2281_v63 = vpop.permute.xlu1 %2280 }
 0x149   : > { %1993 = vst.msk [vmem:[#allocation2 + $0x70] sm:$0xff] %vm1985_vm10, %v1952_v62 }
 0x14a   : > { %2318 = vst.msk [vmem:[#allocation2 + $0xb0] sm:$0xff] %vm2306_vm11, %v2281_v63 }
 0x14c   : > { %v2273_v3 = vpop.permute.xlu0 %2272  ;;  %v2462_v43 = vpop.permute.xlu1 %2461 }
 0x14d   : > { %2314 = vst.msk [vmem:[#allocation2 + $0x70] sm:$0xff] %vm2306_vm11, %v2273_v3 }
 0x14e   : > { %2499 = vst.msk [vmem:[#allocation2 + $0xb0] sm:$0xff] %vm2487_vm12, %v2462_v43 }
 0x150   : > { %v2454_v4 = vpop.permute.xlu0 %2453  ;;  %v3007_v5 = vpop.permute.xlu1 %3006 }
 0x151   : > { %2495 = vst.msk [vmem:[#allocation2 + $0x70] sm:$0xff] %vm2487_vm12, %v2454_v4 }
 0x152   : > { %3044 = vst.msk [vmem:[#allocation2 + $0xb0] sm:$0xff] %vm3032_vm13, %v3007_v5 }
 0x154   : > { %v2999_v6 = vpop.permute.xlu0 %2998 }
 0x155   : > { %3040 = vst.msk [vmem:[#allocation2 + $0x70] sm:$0xff] %vm3032_vm13, %v2999_v6 }
 0x158   : > { %v1236_v7 = vpop.permute.xlu1 %1235 }
 0x159   : > { %v3359_v1 = vld [vmem:[#allocation2 + $0xb0] sm:$0xff] }
 0x15a   : > { %3610 = vmatmul.mubr.bf16.gmra.mrb[12].mxu1 %v3359_v1  ;;  %v912_v9 = vpop.permute.xlu0 %911 }
 0x15b   : > { %4556 = vmatprep.mubr.msk.bf16.mxu1 %vm387_vm6, %v3362_v8  ;;  %948 = vst.msk [vmem:[#allocation2 + $0xc0] sm:$0xff] %vm935_vm7, %v912_v9 }
 0x15c   : > { %1272 = vst.msk [vmem:[#allocation2 + $0xc0] sm:$0xff] %vm1259_vm8, %v1236_v7  ;;  %v3351_v10 = vld [vmem:[#allocation2 + $0x70] sm:$0xff] }
 0x15d   : > { %3578 = vmatmul.mubr.bf16.gmra.mrb[28].mxu0 %v3351_v10 }
 0x15e   : > { %v1417_v11 = vpop.permute.xlu0 %1416 }
 0x15f   : > { %1453 = vst.msk [vmem:[#allocation2 + $0xc0] sm:$0xff] %vm1440_vm9, %v1417_v11 }
 0x160   : > { %v1962_v57 = vpop.permute.xlu1 %1961 }
 0x161   : > { %1998 = vst.msk [vmem:[#allocation2 + $0xc0] sm:$0xff] %vm1985_vm10, %v1962_v57 }
 0x162   : > { %v2283_v2 = vpop.permute.xlu0 %2282 }
 0x163   : > { %2319 = vst.msk [vmem:[#allocation2 + $0xc0] sm:$0xff] %vm2306_vm11, %v2283_v2 }
 0x164   : > { %v2464_v55 = vpop.permute.xlu1 %2463 }
 0x165   : > { %2500 = vst.msk [vmem:[#allocation2 + $0xc0] sm:$0xff] %vm2487_vm12, %v2464_v55 }
 0x169   : > { %v3009_v12 = vpop.permute.xlu0 %3008 }
 0x16a   : > { %3045 = vst.msk [vmem:[#allocation2 + $0xc0] sm:$0xff] %vm3032_vm13, %v3009_v12 }
 0x16b   : > { %v914_v13 = vpop.permute.xlu1 %913 }
 0x16c   : > { %949 = vst.msk [vmem:[#allocation2 + $0xd0] sm:$0xff] %vm935_vm7, %v914_v13 }
 0x16d   : > { %v1238_v14 = vpop.permute.xlu0 %1237 }
 0x16e   : > { %1273 = vst.msk [vmem:[#allocation2 + $0xd0] sm:$0xff] %vm1259_vm8, %v1238_v14 }
 0x16f   : > { %v1419_v15 = vpop.permute.xlu1 %1418 }
 0x170   : > { %1454 = vst.msk [vmem:[#allocation2 + $0xd0] sm:$0xff] %vm1440_vm9, %v1419_v15 }
 0x171   : > { %v3361_v17 = vld [vmem:[#allocation2 + $0xc0] sm:$0xff] }
 0x172   : > { %3618 = vmatmul.mubr.bf16.gmra.mrb[16].mxu1 %v3361_v17 }
 0x173   : > { %v1964_v18 = vpop.permute.xlu0 %1963  ;;  %v2285_v19 = vpop.permute.xlu1 %2284  ;;  %4557 = vmatprep.mubr.msk.bf16.mxu1 %vm387_vm6, %v3364_v16 }
 0x174   : > { %1999 = vst.msk [vmem:[#allocation2 + $0xd0] sm:$0xff] %vm1985_vm10, %v1964_v18 }
 0x175   : > { %2320 = vst.msk [vmem:[#allocation2 + $0xd0] sm:$0xff] %vm2306_vm11, %v2285_v19 }
 0x177   : > { %v2466_v22 = vpop.permute.xlu0 %2465 }
 0x178   : > { %2501 = vst.msk [vmem:[#allocation2 + $0xd0] sm:$0xff] %vm2487_vm12, %v2466_v22  ;;  %v3011_v21 = vpop.permute.xlu1 %3010 }
 0x179   : > { %3046 = vst.msk [vmem:[#allocation2 + $0xd0] sm:$0xff] %vm3032_vm13, %v3011_v21 }
 0x17c   : > { %v1240_v23 = vpop.permute.xlu1 %1239 }
 0x17d   : > { %v916_v24 = vpop.permute.xlu0 %915 }
 0x17e   : > { %950 = vst.msk [vmem:[#allocation2 + $0xe0] sm:$0xff] %vm935_vm7, %v916_v24 }
 0x17f   : > { %1274 = vst.msk [vmem:[#allocation2 + $0xe0] sm:$0xff] %vm1259_vm8, %v1240_v23 }
 0x180   : > { %v3363_v38 = vld [vmem:[#allocation2 + $0xd0] sm:$0xff] }
 0x181   : > { %v1421_v26 = vpop.permute.xlu0 %1420  ;;  %3626 = vmatmul.mubr.bf16.gmra.mrb[20].mxu1 %v3363_v38 }
 0x182   : > { %1455 = vst.msk [vmem:[#allocation2 + $0xe0] sm:$0xff] %vm1440_vm9, %v1421_v26  ;;  %4558 = vmatprep.mubr.msk.bf16.mxu1 %vm387_vm6, %v3366_v25 }
 0x185   : > { %v1966_v28 = vpop.permute.xlu1 %1965 }
 0x186   : > { %2000 = vst.msk [vmem:[#allocation2 + $0xe0] sm:$0xff] %vm1985_vm10, %v1966_v28  ;;  %v2287_v29 = vpop.permute.xlu0 %2286 }
 0x187   : > { %2321 = vst.msk [vmem:[#allocation2 + $0xe0] sm:$0xff] %vm2306_vm11, %v2287_v29 }
 0x189   : > { %v2468_v35 = vpop.permute.xlu1 %2467 }
 0x18a   : > { %2502 = vst.msk [vmem:[#allocation2 + $0xe0] sm:$0xff] %vm2487_vm12, %v2468_v35 }
 0x18c   : > { %v3013_v30 = vpop.permute.xlu0 %3012 }
 0x18d   : > { %3047 = vst.msk [vmem:[#allocation2 + $0xe0] sm:$0xff] %vm3032_vm13, %v3013_v30 }
 0x18f   : > { %v918_v31 = vpop.permute.xlu1 %917 }
 0x190   : > { %951 = vst.msk [vmem:[#allocation2 + $0xf0] sm:$0xff] %vm935_vm7, %v918_v31  ;;  %v1242_v32 = vpop.permute.xlu0 %1241 }
 0x191   : > { %1275 = vst.msk [vmem:[#allocation2 + $0xf0] sm:$0xff] %vm1259_vm8, %v1242_v32 }
 0x193   : > { %v1423_v33 = vpop.permute.xlu1 %1422 }
 0x194   : > { %1456 = vst.msk [vmem:[#allocation2 + $0xf0] sm:$0xff] %vm1440_vm9, %v1423_v33  ;;  %v3365_v27 = vld [vmem:[#allocation2 + $0xe0] sm:$0xff] }
 0x195   : > { %3634 = vmatmul.mubr.bf16.gmra.mrb[24].mxu1 %v3365_v27 }
 0x196   : > { %4559 = vmatprep.mubr.msk.bf16.mxu1 %vm387_vm6, %v3368_v52 }
 0x197   : > { %v1968_v34 = vpop.permute.xlu0 %1967  ;;  %v2289_v36 = vpop.permute.xlu1 %2288 }
 0x198   : > { %2001 = vst.msk [vmem:[#allocation2 + $0xf0] sm:$0xff] %vm1985_vm10, %v1968_v34 }
 0x199   : > { %2322 = vst.msk [vmem:[#allocation2 + $0xf0] sm:$0xff] %vm2306_vm11, %v2289_v36 }
 0x19b   : > { %v2470_v37 = vpop.permute.xlu0 %2469  ;;  %v3015_v39 = vpop.permute.xlu1 %3014 }
 0x19c   : > { %2503 = vst.msk [vmem:[#allocation2 + $0xf0] sm:$0xff] %vm2487_vm12, %v2470_v37 }
 0x19d   : > { %3048 = vst.msk [vmem:[#allocation2 + $0xf0] sm:$0xff] %vm3032_vm13, %v3015_v39 }
 0x19e   : > { %v3523_v40 = vpop.f32.mrb[0].mxu0 }
 0x19f   : > { %v3525_v41 = vpop.f32.mrb[1].mxu0  ;;  %v3848_v42 = vmul.f32 %v3523_v40, %v3523_v40 }
 0x1a0   : > { %v3526_v20 = vpop.f32.mrb[2].mxu0 }
 0x1a1   : > { %v4630_v44 = vpack.c.bf16 %v3526_v20, %v3523_v40  ;;  %v3810_v45 = vadd.f32 %v3526_v20, %v3523_v40  ;;  %v3849_v46 = vmul.f32 %v3526_v20, %v3526_v20  ;;  %v3528_v47 = vpop.f32.mrb[3].mxu0 }
 0x1a3   : > { %4631 = vst [vmem:[%s6035_s25] sm:$0xff] %v4630_v44   ;;  %v3880_v49 = vadd.f32 %v3849_v46, %v3848_v42 }
 0x1a4   : > { %v3367_v48 = vld [vmem:[#allocation2 + $0xf0] sm:$0xff] }
 0x1a5   : > { %3642 = vmatmul.mubr.bf16.gmra.mrb[28].mxu1 %v3367_v48 }
 0x1a7   : > { %v3531_v50 = vpop.f32.mrb[4].mxu0 }
 0x1a8   : > { %v3811_v51 = vadd.f32 %v3810_v45, %v3531_v50  ;;  %v3850_v53 = vmul.f32 %v3531_v50, %v3531_v50  ;;  %v3533_v54 = vpop.f32.mrb[5].mxu0 }
 0x1a9   : > { %v3534_v56 = vpop.f32.mrb[6].mxu0 }
 0x1aa   : > { %v3881_v58 = vadd.f32 %v3880_v49, %v3850_v53  ;;  %v4635_v0 = vpack.c.bf16 %v3534_v56, %v3531_v50  ;;  %v3812_v59 = vadd.f32 %v3811_v51, %v3534_v56  ;;  %v3851_v60 = vmul.f32 %v3534_v56, %v3534_v56  ;;  %v3536_v61 = vpop.f32.mrb[7].mxu0 }
 0x1ac   : > { %4707 = vst [vmem:[%s6035_s25 + $0x8] sm:$0xff] %v4635_v0   ;;  %v3882_v62 = vadd.f32 %v3881_v58, %v3851_v60 }
 0x1b9   : > { %v3539_v63 = vpop.f32.mrb[8].mxu0 }
 0x1ba   : > { %v3813_v3 = vadd.f32 %v3812_v59, %v3539_v63  ;;  %v3852_v43 = vmul.f32 %v3539_v63, %v3539_v63  ;;  %v3541_v4 = vpop.f32.mrb[9].mxu0 }
 0x1bb   : > { %v3542_v5 = vpop.f32.mrb[10].mxu0 }
 0x1bc   : > { %v3883_v6 = vadd.f32 %v3882_v62, %v3852_v43  ;;  %v4640_v8 = vpack.c.bf16 %v3542_v5, %v3539_v63  ;;  %v3814_v1 = vadd.f32 %v3813_v3, %v3542_v5  ;;  %v3853_v7 = vmul.f32 %v3542_v5, %v3542_v5  ;;  %v3544_v9 = vpop.f32.mrb[11].mxu0 }
 0x1be   : > { %4708 = vst [vmem:[%s6035_s25 + $0x10] sm:$0xff] %v4640_v8   ;;  %v3884_v10 = vadd.f32 %v3883_v6, %v3853_v7 }
 0x1ca   : > { %v3547_v11 = vpop.f32.mrb[12].mxu0 }
 0x1cb   : > { %v3815_v57 = vadd.f32 %v3814_v1, %v3547_v11  ;;  %v3854_v2 = vmul.f32 %v3547_v11, %v3547_v11  ;;  %v3549_v55 = vpop.f32.mrb[13].mxu0 }
 0x1cc   : > { %v3550_v12 = vpop.f32.mrb[14].mxu0 }
 0x1cd   : > { %v3885_v13 = vadd.f32 %v3884_v10, %v3854_v2  ;;  %v4645_v14 = vpack.c.bf16 %v3550_v12, %v3547_v11  ;;  %v3816_v15 = vadd.f32 %v3815_v57, %v3550_v12  ;;  %v3855_v16 = vmul.f32 %v3550_v12, %v3550_v12  ;;  %v3552_v17 = vpop.f32.mrb[15].mxu0 }
 0x1cf   : > { %4709 = vst [vmem:[%s6035_s25 + $0x18] sm:$0xff] %v4645_v14   ;;  %v3886_v18 = vadd.f32 %v3885_v13, %v3855_v16 }
 0x1e7   : > { %v6041_v19 = vpop.f32.mrb[0].mxu1 }
 0x1e8   : > { %v3589_v22 = vpop.f32.mrb[1].mxu1 }
 0x1e9   : > { %v6043_v21 = vpop.f32.mrb[2].mxu1 }
 0x1ea   : > { %v4670_v23 = vpack.c.bf16 %v6043_v21, %v6041_v19  ;;  %v3592_v24 = vpop.f32.mrb[3].mxu1 }
 0x1eb   : > { %v3865_v24 = vmul.f32 %v6043_v21, %v6043_v21 }
 0x1ec   : > { %4714 = vst [vmem:[%s6035_s25 + $0x40] sm:$0xff] %v4670_v23  }
 0x1ed   : > { %v3555_v25 = vpop.f32.mrb[16].mxu0 }
 0x1ee   : > { %v3817_v38 = vadd.f32 %v3816_v15, %v3555_v25  ;;  %v3856_v26 = vmul.f32 %v3555_v25, %v3555_v25  ;;  %v3557_v28 = vpop.f32.mrb[17].mxu0 }
 0x1ef   : > { %v3558_v29 = vpop.f32.mrb[18].mxu0 }
 0x1f0   : > { %v3887_v35 = vadd.f32 %v3886_v18, %v3856_v26  ;;  %v4650_v30 = vpack.c.bf16 %v3558_v29, %v3555_v25  ;;  %v3818_v31 = vadd.f32 %v3817_v38, %v3558_v29  ;;  %v3857_v32 = vmul.f32 %v3558_v29, %v3558_v29  ;;  %v3560_v33 = vpop.f32.mrb[19].mxu0 }
 0x1f1   : > { %v3864_v18 = vmul.f32 %v6041_v19, %v6041_v19 }
 0x1f2   : > { %4710 = vst [vmem:[%s6035_s25 + $0x20] sm:$0xff] %v4650_v30   ;;  %v3888_v52 = vadd.f32 %v3887_v35, %v3857_v32 }
 0x207   : > { %v3595_v27 = vpop.f32.mrb[4].mxu1 }
 0x208   : > { %v3597_v34 = vpop.f32.mrb[5].mxu1  ;;  %v3563_v36 = vpop.f32.mrb[20].mxu0  ;;  %v3866_v26 = vmul.f32 %v3595_v27, %v3595_v27 }
 0x209   : > { %v3819_v37 = vadd.f32 %v3818_v31, %v3563_v36  ;;  %v3858_v39 = vmul.f32 %v3563_v36, %v3563_v36  ;;  %v3598_v40 = vpop.f32.mrb[6].mxu1  ;;  %v3565_v41 = vpop.f32.mrb[21].mxu0 }
 0x20a   : > { %v4675_v20 = vpack.c.bf16 %v3598_v40, %v3595_v27  ;;  %v3600_v42 = vpop.f32.mrb[7].mxu1  ;;  %v3566_v44 = vpop.f32.mrb[22].mxu0  ;;  %v3867_v35 = vmul.f32 %v3598_v40, %v3598_v40 }
 0x20b   : > { %v3889_v45 = vadd.f32 %v3888_v52, %v3858_v39  ;;  %v4655_v46 = vpack.c.bf16 %v3566_v44, %v3563_v36  ;;  %v3820_v47 = vadd.f32 %v3819_v37, %v3566_v44  ;;  %v3859_v49 = vmul.f32 %v3566_v44, %v3566_v44  ;;  %v3568_v48 = vpop.f32.mrb[23].mxu0 }
 0x20c   : > { %4715 = vst [vmem:[%s6035_s25 + $0x48] sm:$0xff] %v4675_v20  }
 0x20d   : > { %4711 = vst [vmem:[%s6035_s25 + $0x28] sm:$0xff] %v4655_v46   ;;  %v3890_v50 = vadd.f32 %v3889_v45, %v3859_v49 }
 0x20f   : > { %v3603_v51 = vpop.f32.mrb[8].mxu1 }
 0x210   : > { %v3605_v53 = vpop.f32.mrb[9].mxu1  ;;  %v3571_v54 = vpop.f32.mrb[24].mxu0  ;;  %v3868_v32 = vmul.f32 %v3603_v51, %v3603_v51 }
 0x211   : > { %v3821_v56 = vadd.f32 %v3820_v47, %v3571_v54  ;;  %v3860_v58 = vmul.f32 %v3571_v54, %v3571_v54  ;;  %v3606_v0 = vpop.f32.mrb[10].mxu1  ;;  %v3573_v59 = vpop.f32.mrb[25].mxu0 }
 0x212   : > { %v4680_v60 = vpack.c.bf16 %v3606_v0, %v3603_v51  ;;  %v3608_v61 = vpop.f32.mrb[11].mxu1  ;;  %v3574_v62 = vpop.f32.mrb[26].mxu0  ;;  %v3869_v34 = vmul.f32 %v3606_v0, %v3606_v0 }
 0x213   : > { %v3891_v63 = vadd.f32 %v3890_v50, %v3860_v58  ;;  %v4660_v3 = vpack.c.bf16 %v3574_v62, %v3571_v54  ;;  %v3822_v43 = vadd.f32 %v3821_v56, %v3574_v62  ;;  %v3861_v4 = vmul.f32 %v3574_v62, %v3574_v62  ;;  %v3576_v5 = vpop.f32.mrb[27].mxu0 }
 0x214   : > { %4716 = vst [vmem:[%s6035_s25 + $0x50] sm:$0xff] %v4680_v60  }
 0x215   : > { %4712 = vst [vmem:[%s6035_s25 + $0x30] sm:$0xff] %v4660_v3   ;;  %v3892_v6 = vadd.f32 %v3891_v63, %v3861_v4 }
 0x22d   : > { %v3611_v8 = vpop.f32.mrb[12].mxu1 }
 0x22e   : > { %v3613_v1 = vpop.f32.mrb[13].mxu1 }
 0x22f   : > { %v3614_v7 = vpop.f32.mrb[14].mxu1 }
 0x230   : > { %v4685_v9 = vpack.c.bf16 %v3614_v7, %v3611_v8  ;;  %v3616_v10 = vpop.f32.mrb[15].mxu1  ;;  %v3579_v11 = vpop.f32.mrb[28].mxu0  ;;  %v3871_v20 = vmul.f32 %v3614_v7, %v3614_v7 }
 0x231   : > { %v3823_v57 = vadd.f32 %v3822_v43, %v3579_v11  ;;  %v3862_v2 = vmul.f32 %v3579_v11, %v3579_v11  ;;  %v3581_v55 = vpop.f32.mrb[29].mxu0 }
 0x232   : > { %4717 = vst [vmem:[%s6035_s25 + $0x58] sm:$0xff] %v4685_v9   ;;  %v3582_v12 = vpop.f32.mrb[30].mxu0 }
 0x233   : > { %v3893_v13 = vadd.f32 %v3892_v6, %v3862_v2  ;;  %v4665_v14 = vpack.c.bf16 %v3582_v12, %v3579_v11  ;;  %v3824_v15 = vadd.f32 %v3823_v57, %v3582_v12  ;;  %v3863_v16 = vmul.f32 %v3582_v12, %v3582_v12  ;;  %v3584_v17 = vpop.f32.mrb[31].mxu0 }
 0x235   : > { %4713 = vst [vmem:[%s6035_s25 + $0x38] sm:$0xff] %v4665_v14   ;;  %v3825_v22 = vadd.f32 %v3824_v15, %v6041_v19  ;;  %v3894_v23 = vadd.f32 %v3893_v13, %v3863_v16  ;;  %v3870_v19 = vmul.f32 %v3611_v8, %v3611_v8 }
 0x237   : > { %v3826_v25 = vadd.f32 %v3825_v22, %v6043_v21  ;;  %v3895_v38 = vadd.f32 %v3894_v23, %v3864_v18 }
 0x239   : > { %v3827_v28 = vadd.f32 %v3826_v25, %v3595_v27  ;;  %v3896_v29 = vadd.f32 %v3895_v38, %v3865_v24 }
 0x23b   : > { %v3828_v30 = vadd.f32 %v3827_v28, %v3598_v40  ;;  %v3897_v31 = vadd.f32 %v3896_v29, %v3866_v26 }
 0x23d   : > { %v3898_v33 = vadd.f32 %v3897_v31, %v3867_v35  ;;  %v3829_v52 = vadd.f32 %v3828_v30, %v3603_v51 }
 0x23f   : > { %v3830_v36 = vadd.f32 %v3829_v52, %v3606_v0  ;;  %v3899_v37 = vadd.f32 %v3898_v33, %v3868_v32 }
 0x241   : > { %v3831_v39 = vadd.f32 %v3830_v36, %v3611_v8  ;;  %v3900_v41 = vadd.f32 %v3899_v37, %v3869_v34 }
 0x243   : > { %v3832_v42 = vadd.f32 %v3831_v39, %v3614_v7  ;;  %v3901_v21 = vadd.f32 %v3900_v41, %v3870_v19 }
 0x245   : > { %v3619_v44 = vpop.f32.mrb[16].mxu1  ;;  %v3902_v45 = vadd.f32 %v3901_v21, %v3871_v20 }
 0x246   : > { %v3833_v27 = vadd.f32 %v3832_v42, %v3619_v44  ;;  %v3872_v46 = vmul.f32 %v3619_v44, %v3619_v44  ;;  %v3621_v47 = vpop.f32.mrb[17].mxu1 }
 0x247   : > { %v3622_v40 = vpop.f32.mrb[18].mxu1 }
 0x248   : > { %v3903_v49 = vadd.f32 %v3902_v45, %v3872_v46  ;;  %v4690_v48 = vpack.c.bf16 %v3622_v40, %v3619_v44  ;;  %v3834_v50 = vadd.f32 %v3833_v27, %v3622_v40  ;;  %v3873_v51 = vmul.f32 %v3622_v40, %v3622_v40  ;;  %v3624_v53 = vpop.f32.mrb[19].mxu1 }
 0x24a   : > { %4718 = vst [vmem:[%s6035_s25 + $0x60] sm:$0xff] %v4690_v48   ;;  %v3904_v54 = vadd.f32 %v3903_v49, %v3873_v51 }
 0x254   : > { %v3627_v56 = vpop.f32.mrb[20].mxu1 }
 0x255   : > { %v3835_v58 = vadd.f32 %v3834_v50, %v3627_v56  ;;  %v3874_v0 = vmul.f32 %v3627_v56, %v3627_v56  ;;  %v3629_v59 = vpop.f32.mrb[21].mxu1 }
 0x256   : > { %v3630_v60 = vpop.f32.mrb[22].mxu1 }
 0x257   : > { %v3905_v61 = vadd.f32 %v3904_v54, %v3874_v0  ;;  %v4695_v62 = vpack.c.bf16 %v3630_v60, %v3627_v56  ;;  %v3836_v63 = vadd.f32 %v3835_v58, %v3630_v60  ;;  %v3875_v3 = vmul.f32 %v3630_v60, %v3630_v60  ;;  %v3632_v43 = vpop.f32.mrb[23].mxu1 }
 0x259   : > { %4719 = vst [vmem:[%s6035_s25 + $0x68] sm:$0xff] %v4695_v62   ;;  %v3906_v4 = vadd.f32 %v3905_v61, %v3875_v3 }
 0x268   : > { %v3635_v5 = vpop.f32.mrb[24].mxu1 }
 0x269   : > { %v3837_v6 = vadd.f32 %v3836_v63, %v3635_v5  ;;  %v3876_v8 = vmul.f32 %v3635_v5, %v3635_v5  ;;  %v3637_v1 = vpop.f32.mrb[25].mxu1 }
 0x26a   : > { %v3638_v7 = vpop.f32.mrb[26].mxu1 }
 0x26b   : > { %v3907_v9 = vadd.f32 %v3906_v4, %v3876_v8  ;;  %v4700_v10 = vpack.c.bf16 %v3638_v7, %v3635_v5  ;;  %v3838_v11 = vadd.f32 %v3837_v6, %v3638_v7  ;;  %v3877_v57 = vmul.f32 %v3638_v7, %v3638_v7  ;;  %v3640_v2 = vpop.f32.mrb[27].mxu1 }
 0x26d   : > { %4720 = vst [vmem:[%s6035_s25 + $0x70] sm:$0xff] %v4700_v10   ;;  %v3908_v55 = vadd.f32 %v3907_v9, %v3877_v57 }
 0x278   : > { %v3643_v12 = vpop.f32.mrb[28].mxu1 }
 0x279   : > { %v3839_v13 = vadd.f32 %v3838_v11, %v3643_v12  ;;  %v3878_v14 = vmul.f32 %v3643_v12, %v3643_v12  ;;  %v3645_v15 = vpop.f32.mrb[29].mxu1 }
 0x27a   : > { %v3646_v16 = vpop.f32.mrb[30].mxu1 }
 0x27b   : > { %v3909_v17 = vadd.f32 %v3908_v55, %v3878_v14  ;;  %v4705_v18 = vpack.c.bf16 %v3646_v16, %v3643_v12  ;;  %v3840_v22 = vadd.f32 %v3839_v13, %v3646_v16  ;;  %v3879_v23 = vmul.f32 %v3646_v16, %v3646_v16  ;;  %v3648_v24 = vpop.f32.mrb[31].mxu1 }
 0x27d   : > { %4721 = vst [vmem:[%s6035_s25 + $0x78] sm:$0xff] %v4705_v18   ;;  %v3841_v25 = vrot.slane %v3840_v22, 4  ;;  %v3910_v38 = vadd.f32 %v3909_v17, %v3879_v23 }
 0x27f   : > { %v3842_v26 = vadd.f32 %v3841_v25, %v3840_v22  ;;  %v3911_v28 = vrot.slane %v3910_v38, 4 }
 0x281   : > { %v3843_v29 = vrot.slane %v3842_v26, 2  ;;  %v3912_v35 = vadd.f32 %v3911_v28, %v3910_v38 }
 0x283   : > { %v3844_v30 = vadd.f32 %v3843_v29, %v3842_v26  ;;  %v3913_v31 = vrot.slane %v3912_v35, 2 }
 0x285   : > { %v3845_v32 = vrot.slane %v3844_v30, 1  ;;  %v3914_v33 = vadd.f32 %v3913_v31, %v3912_v35 }
 0x287   : > { %v3846_v52 = vadd.f32 %v3845_v32, %v3844_v30  ;;  %v3915_v34 = vrot.slane %v3914_v33, 1 }
 0x289   : > { %3847 = vst [vmem:[%s247_s28] sm:$0x1] %v3846_v52  ;;  %v3916_v36 = vadd.f32 %v3915_v34, %v3914_v33 }
 0x28b   : > { %3917 = vst [vmem:[%s253_s9] sm:$0x1] %v3916_v36 }
 0x28c PF: > { %s15_s17 = sadd.s32 1, %s4852_s17   ;;  %s6091_s15 = smov %s4848_s16 }
 0x28d   : > { %p12_p5 = scmp.ge.s32.totalorder %s15_s17, 4   ;;  %s6092_s16 = smov %s6094_s18 }
 0x28f   :  { %14 = sbr.rel (!%p12_p5) target bundleno = 2 (0x2), region = 85 }

</bundles_post_ra>
